<compile_context>
chip_gen: v6e
topology: v6e:2x2x1
jax: 0.10.0
libtpu: 0.0.40
codegen_flags: <defaults>
</compile_context>

<pallas_src>
import numpy as np
import jax
import jax.numpy as jnp
from jax.experimental import pallas as pl
from jax.experimental.pallas import tpu as pltpu

# ----------------------------- model hyper-params (small) -----------------------------
D_MODEL   = 32
D_FFN     = 64
N_HEADS   = 4
HEAD_DIM  = D_MODEL // N_HEADS
N_LEVELS  = 2
N_POINTS  = 2
LP        = N_LEVELS * N_POINTS          # softmax group size per head
NHLP      = N_HEADS * LP                 # 16 (head, level, point) lanes
LN_EPS    = 1e-5

BATCH     = 2
LEN_Q     = 8                            # number of decoder queries
SPATIAL_SHAPES = [(8, 8), (4, 4)]        # (H, W) per source level
LEVEL_START    = [0, 64]
LEN_IN    = sum(h * w for h, w in SPATIAL_SHAPES)   # 80


# ----------------------------- in-kernel helpers -----------------------------
def _linear(x, w_ref, b_ref):
    # x: (M, Din); w_ref: (Dout, Din) (PyTorch Linear layout); b_ref: (1, Dout)
    return jax.lax.dot_general(
        x, w_ref[...], (((1,), (1,)), ((), ())),
        preferred_element_type=jnp.float32) + b_ref[...]


def _layer_norm(x, g, b):
    mu = jnp.mean(x, axis=-1, keepdims=True)
    var = jnp.mean((x - mu) ** 2, axis=-1, keepdims=True)
    return (x - mu) * jax.lax.rsqrt(var + LN_EPS) * g + b


# ----------------------------- the fused decoder-layer kernel -----------------------------
def _decoder_layer_kernel(
        # per-batch blocks
        tgt_ref, qpos_ref, src_ref, spos_ref, refx_ref, refy_ref,
        # small constant tables
        geom_ref, gmat_ref, loc_ref,
        # self-attention + norm2 params
        sa_wqk_ref, sa_bqk_ref, sa_wv_ref, sa_bv_ref, sa_wo_ref, sa_bo_ref,
        ln2_g_ref, ln2_b_ref,
        # MSDeformAttn + norm1 params
        ca_wv_ref, ca_bv_ref, ca_wso_ref, ca_bso_ref, ca_waw_ref, ca_baw_ref,
        ca_wo_ref, ca_bo_ref, ln1_g_ref, ln1_b_ref,
        # FFN + norm3 params
        ff_w1_ref, ff_b1_ref, ff_w2_ref, ff_b2_ref, ln3_g_ref, ln3_b_ref,
        # output
        out_ref):

    tgt = tgt_ref[0]                          # (Lq, D)
    qpos = qpos_ref[0]                        # (Lq, D)

    # ---- 1) self-attention (q = k = tgt + query_pos, v = tgt) + residual + norm2 ----
    qk_in = tgt + qpos
    qk = _linear(qk_in, sa_wqk_ref, sa_bqk_ref)      # (Lq, 2D) fused q|k projection
    q = qk[:, :D_MODEL]
    k = qk[:, D_MODEL:]
    v = _linear(tgt, sa_wv_ref, sa_bv_ref)           # (Lq, D)
    scale = HEAD_DIM ** -0.5
    heads = []
    for h in range(N_HEADS):                         # static unroll over heads
        sl = slice(h * HEAD_DIM, (h + 1) * HEAD_DIM)
        qh = q[:, sl] * scale
        kh = k[:, sl]
        vh = v[:, sl]
        s = jax.lax.dot_general(qh, kh, (((1,), (1,)), ((), ())),
                                preferred_element_type=jnp.float32)
        s = s - jnp.max(s, axis=-1, keepdims=True)
        e = jnp.exp(s)
        prob = e * pl.reciprocal(jnp.sum(e, axis=-1, keepdims=True), approx=True)
        heads.append(jax.lax.dot_general(prob, vh, (((1,), (0,)), ((), ())),
                                         preferred_element_type=jnp.float32))
    sa_out = jnp.concatenate(heads, axis=-1)         # (Lq, D)
    tgt = _layer_norm(tgt + _linear(sa_out, sa_wo_ref, sa_bo_ref),
                      ln2_g_ref[...], ln2_b_ref[...])

    # ---- 2) MSDeformAttn projections ----
    query = tgt + qpos                               # (Lq, D)
    srcp = src_ref[0] + spos_ref[0]                  # (Lin, D)
    value = _linear(srcp, ca_wv_ref, ca_bv_ref)      # (Lin, D) value_proj
    off = _linear(query, ca_wso_ref, ca_bso_ref)     # (Lq, 2*NHLP) = [x lanes | y lanes]
    aw = _linear(query, ca_waw_ref, ca_baw_ref)      # (Lq, NHLP) in [h,l,p] lane order
    # grouped softmax over (n_levels*n_points) per head; row-max subtraction is a
    # per-group constant so the result is identical to per-group stabilization.
    aw = aw - jnp.max(aw, axis=-1, keepdims=True)
    e = jnp.exp(aw)
    denom = jax.lax.dot_general(e, gmat_ref[...], (((1,), (0,)), ((), ())),
                                preferred_element_type=jnp.float32)
    attn_w = e * pl.reciprocal(denom, approx=True)   # (Lq, NHLP)

    # ---- 3) deformable bilinear sampling, fully in-kernel ----
    geom = geom_ref[...]                             # (8, NHLP) per-lane geometry
    w_l = geom[0:1, :]
    h_l = geom[1:2, :]
    iw_l = geom[2:3, :]
    ih_l = geom[3:4, :]
    st_l = geom[4:5, :]
    off_x = off[:, :NHLP]
    off_y = off[:, NHLP:]
    # sampling loc = ref + off / (W, H); grid_sample align_corners=False -> loc*size-0.5
    ix = (refx_ref[0] + off_x * iw_l) * w_l - 0.5
    iy = (refy_ref[0] + off_y * ih_l) * h_l - 0.5
    x0 = jnp.floor(ix)
    y0 = jnp.floor(iy)
    x1 = x0 + 1.0
    y1 = y0 + 1.0
    wx1 = ix - x0
    wx0 = 1.0 - wx1
    wy1 = iy - y0
    wy0 = 1.0 - wy1
    idx_list = []
    cw_list = []
    for xc, yc, wc in ((x0, y0, wx0 * wy0), (x1, y0, wx1 * wy0),
                       (x0, y1, wx0 * wy1), (x1, y1, wx1 * wy1)):
        valid = ((xc >= 0.0) & (xc < w_l) & (yc >= 0.0) & (yc < h_l)).astype(jnp.float32)
        xi = jnp.clip(xc, 0.0, w_l - 1.0)
        yi = jnp.clip(yc, 0.0, h_l - 1.0)
        idx_list.append(st_l + yi * w_l + xi)        # (Lq, NHLP) integer-valued f32
        cw_list.append(attn_w * wc * valid)          # (Lq, NHLP) attn * bilinear * valid

    loc_grid = loc_ref[...]                          # (Lq, Lin) = 0..Lin-1 per lane
    head_outs = []
    for h in range(N_HEADS):                         # per-head one-hot gather matrix
        acc = jnp.zeros((LEN_Q, LEN_IN), jnp.float32)
        for c in range(4):                           # 4 bilinear corners
            idx_c = idx_list[c]
            cw_c = cw_list[c]
            for p in range(LP):                      # level*point samples of this head
                s = h * LP + p
                onehot = (idx_c[:, s:s + 1] == loc_grid).astype(jnp.float32)
                acc = acc + onehot * cw_c[:, s:s + 1]
        vh = value[:, h * HEAD_DIM:(h + 1) * HEAD_DIM]       # (Lin, Dh)
        head_outs.append(jax.lax.dot_general(acc, vh, (((1,), (0,)), ((), ())),
                                             preferred_element_type=jnp.float32))
    msda = jnp.concatenate(head_outs, axis=-1)       # (Lq, D)

    # ---- 4) output_proj + residual + norm1 ----
    tgt = _layer_norm(tgt + _linear(msda, ca_wo_ref, ca_bo_ref),
                      ln1_g_ref[...], ln1_b_ref[...])

    # ---- 5) FFN (linear1 -> relu -> linear2) + residual + norm3 ----
    hid = jnp.maximum(_linear(tgt, ff_w1_ref, ff_b1_ref), 0.0)
    tgt = _layer_norm(tgt + _linear(hid, ff_w2_ref, ff_b2_ref),
                      ln3_g_ref[...], ln3_b_ref[...])

    out_ref[0] = tgt


# ----------------------------- BlockSpec helpers -----------------------------
def _bspec(shape):
    nd = len(shape)
    return pl.BlockSpec((1,) + tuple(shape[1:]),
                        lambda b, _nd=nd: (b,) + (0,) * (_nd - 1))


def _fspec(shape):
    nd = len(shape)
    return pl.BlockSpec(tuple(shape), lambda b, _nd=nd: (0,) * _nd)


# ----------------------------- static lane-geometry tables -----------------------------
def _static_tables():
    # lane layout is [head, level, point]; level of lane s:
    lvl = np.array([(s % LP) // N_POINTS for s in range(NHLP)], np.int32)
    ws = np.array([w for (_h, w) in SPATIAL_SHAPES], np.float32)
    hs = np.array([h for (h, _w) in SPATIAL_SHAPES], np.float32)
    starts = np.array(LEVEL_START, np.float32)
    geom = np.zeros((8, NHLP), np.float32)
    geom[0] = ws[lvl]
    geom[1] = hs[lvl]
    geom[2] = 1.0 / ws[lvl]
    geom[3] = 1.0 / hs[lvl]
    geom[4] = starts[lvl]
    gid = np.arange(NHLP) // LP
    gmat = (gid[:, None] == gid[None, :]).astype(np.float32)          # per-head group sum
    locg = np.tile(np.arange(LEN_IN, dtype=np.float32)[None, :], (LEN_Q, 1))
    # permute sampling_offsets rows from [h,l,p,xy] to [x(h,l,p) | y(h,l,p)]
    perm = np.concatenate([2 * np.arange(NHLP), 2 * np.arange(NHLP) + 1]).astype(np.int32)
    return geom, gmat, locg, perm


# ----------------------------- jitted forward (single pallas_call) -----------------------------
@jax.jit
def _layer_impl(params, tgt, query_pos, src_pos, ref_points, src):
    nb, lq, d = tgt.shape
    lin = src.shape[1]
    geom_np, gmat_np, locg_np, perm_np = _static_tables()
    geom = jnp.asarray(geom_np)
    gmat = jnp.asarray(gmat_np)
    locg = jnp.asarray(locg_np)

    # fused / permuted parameter views
    sa_wqk = jnp.concatenate([params["sa_wq"], params["sa_wk"]], axis=0)   # (2D, D)
    sa_bqk = jnp.concatenate([params["sa_bq"], params["sa_bk"]], axis=1)   # (1, 2D)
    ca_wso = params["ca_wso"][perm_np, :]                                  # (2*NHLP, D)
    ca_bso = params["ca_bso"][:, perm_np]                                  # (1, 2*NHLP)

    # reference points expanded to the [h,l,p] lane layout
    rx = ref_points[..., 0]                                                # (N, Lq, L)
    ry = ref_points[..., 1]
    refx = jnp.broadcast_to(rx[:, :, None, :, None],
                            (nb, lq, N_HEADS, N_LEVELS, N_POINTS)).reshape(nb, lq, NHLP)
    refy = jnp.broadcast_to(ry[:, :, None, :, None],
                            (nb, lq, N_HEADS, N_LEVELS, N_POINTS)).reshape(nb, lq, NHLP)

    args = (tgt, query_pos, src, src_pos, refx, refy,
            geom, gmat, locg,
            sa_wqk, sa_bqk, params["sa_wv"], params["sa_bv"],
            params["sa_wo"], params["sa_bo"], params["ln2_g"], params["ln2_b"],
            params["ca_wv"], params["ca_bv"], ca_wso, ca_bso,
            params["ca_waw"], params["ca_baw"], params["ca_wo"], params["ca_bo"],
            params["ln1_g"], params["ln1_b"],
            params["ff_w1"], params["ff_b1"], params["ff_w2"], params["ff_b2"],
            params["ln3_g"], params["ln3_b"])

    n_batch_args = 6
    in_specs = [_bspec(a.shape) for a in args[:n_batch_args]] + \
               [_fspec(a.shape) for a in args[n_batch_args:]]

    flops_per_batch = (
        2 * lq * d * (2 * d) + 2 * lq * d * d            # q|k proj, v proj
        + N_HEADS * 4 * lq * lq * HEAD_DIM               # scores + prob@v
        + 2 * lq * d * d                                 # self-attn out proj
        + 2 * lin * d * d                                # value_proj
        + 2 * lq * d * (2 * NHLP) + 2 * lq * d * NHLP    # offsets, attn weights
        + 2 * lq * NHLP * NHLP                           # group sums
        + 4 * NHLP * 3 * lq * lin                        # one-hot accumulation
        + N_HEADS * 2 * lq * lin * HEAD_DIM              # gather matmuls
        + 2 * lq * d * d                                 # msda out proj
        + 2 * lq * d * D_FFN * 2)                        # FFN
    flops = nb * flops_per_batch
    transcendentals = nb * (N_HEADS * lq * lq + lq * NHLP + 8 * lq)
    bytes_accessed = sum(int(np.prod(a.shape)) * 4 for a in args) + nb * lq * d * 4

    return pl.pallas_call(
        _decoder_layer_kernel,
        out_shape=jax.ShapeDtypeStruct((nb, lq, d), jnp.float32),
        grid=(nb,),
        in_specs=in_specs,
        out_specs=_bspec((nb, lq, d)),
        compiler_params=pltpu.CompilerParams(dimension_semantics=("parallel",)),
        cost_estimate=pl.CostEstimate(flops=flops,
                                      transcendentals=transcendentals,
                                      bytes_accessed=bytes_accessed),
    )(*args)


# ----------------------------- full decoder-layer forward (PyTorch signature) -----------------------------
def deformable_decoder_layer(params, tgt, query_pos, src_pos, tgt_reference_points,
                             src_reference_points, src, tgt_spatial_shapes,
                             src_spatial_shapes, tgt_level_start_index,
                             src_level_start_index, src_padding_mask=None, flow=None):
    # src_reference_points / tgt_spatial_shapes / tgt_level_start_index are unused by the
    # reference forward(); src_padding_mask is None; flow is ignored (see TODO above).
    del src_reference_points, tgt_spatial_shapes, tgt_level_start_index
    del src_padding_mask, flow
    assert list(src_spatial_shapes) == SPATIAL_SHAPES
    assert list(src_level_start_index) == LEVEL_START
    return _layer_impl(params, tgt, query_pos, src_pos, tgt_reference_points, src)


# ----------------------------- deterministic parameter init -----------------------------
def init_params(key):
    ks = iter(jax.random.split(key, 32))

    def w(shape, scale=0.05):
        return jax.random.normal(next(ks), shape, jnp.float32) * scale

    p = {}
    # nn.MultiheadAttention: in_proj split into q/k/v + out_proj
    p["sa_wq"] = w((D_MODEL, D_MODEL))
    p["sa_wk"] = w((D_MODEL, D_MODEL))
    p["sa_wv"] = w((D_MODEL, D_MODEL))
    p["sa_bq"] = w((1, D_MODEL), 0.01)
    p["sa_bk"] = w((1, D_MODEL), 0.01)
    p["sa_bv"] = w((1, D_MODEL), 0.01)
    p["sa_wo"] = w((D_MODEL, D_MODEL))
    p["sa_bo"] = w((1, D_MODEL), 0.01)
    # MSDeformAttn
    p["ca_wv"] = w((D_MODEL, D_MODEL))
    p["ca_bv"] = w((1, D_MODEL), 0.01)
    p["ca_wso"] = w((N_HEADS * N_LEVELS * N_POINTS * 2, D_MODEL))
    p["ca_bso"] = w((1, N_HEADS * N_LEVELS * N_POINTS * 2), 0.5)
    p["ca_waw"] = w((N_HEADS * LP, D_MODEL))
    p["ca_baw"] = w((1, N_HEADS * LP), 0.01)
    p["ca_wo"] = w((D_MODEL, D_MODEL))
    p["ca_bo"] = w((1, D_MODEL), 0.01)
    # FFN
    p["ff_w1"] = w((D_FFN, D_MODEL))
    p["ff_b1"] = w((1, D_FFN), 0.01)
    p["ff_w2"] = w((D_MODEL, D_FFN))
    p["ff_b2"] = w((1, D_MODEL), 0.01)
    # LayerNorms
    for name in ("ln1", "ln2", "ln3"):
        p[name + "_g"] = jnp.ones((1, D_MODEL), jnp.float32)
        p[name + "_b"] = jnp.zeros((1, D_MODEL), jnp.float32)
    return p


# ----------------------------- main -----------------------------
if __name__ == "__main__":
    key = jax.random.PRNGKey(0)
    k_par, k_tgt, k_qp, k_src, k_sp, k_ref = jax.random.split(key, 6)

    params = init_params(k_par)

    tgt = jax.random.normal(k_tgt, (BATCH, LEN_Q, D_MODEL), jnp.float32)
    query_pos = jax.random.normal(k_qp, (BATCH, LEN_Q, D_MODEL), jnp.float32)
    src = jax.random.normal(k_src, (BATCH, LEN_IN, D_MODEL), jnp.float32)
    src_pos = jax.random.normal(k_sp, (BATCH, LEN_IN, D_MODEL), jnp.float32)
    tgt_reference_points = jax.random.uniform(
        k_ref, (BATCH, LEN_Q, N_LEVELS, 2), jnp.float32, 0.1, 0.9)

    out = deformable_decoder_layer(
        params, tgt, query_pos, src_pos, tgt_reference_points, None,
        src, None, SPATIAL_SHAPES, None, LEVEL_START,
        src_padding_mask=None, flow=None)

    out = jax.block_until_ready(out)
    assert out.shape == (BATCH, LEN_Q, D_MODEL)
    assert bool(jnp.all(jnp.isfinite(out)))
    print("KERNEL_OK")
</pallas_src>

<mosaic_0001>
module attributes {stable_mosaic.version = 11 : i64} {
  func.func @_decoder_layer_kernel(%arg0: i32, %arg1: memref<1x8x32xf32, #tpu.memory_space<vmem>>, %arg2: memref<1x8x32xf32, #tpu.memory_space<vmem>>, %arg3: memref<1x80x32xf32, #tpu.memory_space<vmem>>, %arg4: memref<1x80x32xf32, #tpu.memory_space<vmem>>, %arg5: memref<1x8x16xf32, #tpu.memory_space<vmem>>, %arg6: memref<1x8x16xf32, #tpu.memory_space<vmem>>, %arg7: memref<8x16xf32, #tpu.memory_space<vmem>>, %arg8: memref<16x16xf32, #tpu.memory_space<vmem>>, %arg9: memref<8x80xf32, #tpu.memory_space<vmem>>, %arg10: memref<64x32xf32, #tpu.memory_space<vmem>>, %arg11: memref<1x64xf32, #tpu.memory_space<vmem>>, %arg12: memref<32x32xf32, #tpu.memory_space<vmem>>, %arg13: memref<1x32xf32, #tpu.memory_space<vmem>>, %arg14: memref<32x32xf32, #tpu.memory_space<vmem>>, %arg15: memref<1x32xf32, #tpu.memory_space<vmem>>, %arg16: memref<1x32xf32, #tpu.memory_space<vmem>>, %arg17: memref<1x32xf32, #tpu.memory_space<vmem>>, %arg18: memref<32x32xf32, #tpu.memory_space<vmem>>, %arg19: memref<1x32xf32, #tpu.memory_space<vmem>>, %arg20: memref<32x32xf32, #tpu.memory_space<vmem>>, %arg21: memref<1x32xf32, #tpu.memory_space<vmem>>, %arg22: memref<16x32xf32, #tpu.memory_space<vmem>>, %arg23: memref<1x16xf32, #tpu.memory_space<vmem>>, %arg24: memref<32x32xf32, #tpu.memory_space<vmem>>, %arg25: memref<1x32xf32, #tpu.memory_space<vmem>>, %arg26: memref<1x32xf32, #tpu.memory_space<vmem>>, %arg27: memref<1x32xf32, #tpu.memory_space<vmem>>, %arg28: memref<64x32xf32, #tpu.memory_space<vmem>>, %arg29: memref<1x64xf32, #tpu.memory_space<vmem>>, %arg30: memref<32x64xf32, #tpu.memory_space<vmem>>, %arg31: memref<1x32xf32, #tpu.memory_space<vmem>>, %arg32: memref<1x32xf32, #tpu.memory_space<vmem>>, %arg33: memref<1x32xf32, #tpu.memory_space<vmem>>, %arg34: memref<1x8x32xf32, #tpu.memory_space<vmem>>) attributes {dimension_semantics = [#tpu.dimension_semantics<parallel>], iteration_bounds = array<i64: 2>, scalar_prefetch = 0 : i64, scratch_operands = 0 : i64, tpu.core_type = #tpu.core_type<tc>, window_params = [{transform_indices = @transform_0, window_bounds = array<i64: 1, 8, 32>}, {transform_indices = @transform_1, window_bounds = array<i64: 1, 8, 32>}, {transform_indices = @transform_2, window_bounds = array<i64: 1, 80, 32>}, {transform_indices = @transform_3, window_bounds = array<i64: 1, 80, 32>}, {transform_indices = @transform_4, window_bounds = array<i64: 1, 8, 16>}, {transform_indices = @transform_5, window_bounds = array<i64: 1, 8, 16>}, {pipeline_mode = #tpu.pipeline_mode<synchronous>, transform_indices = @transform_6, window_bounds = array<i64: 8, 16>}, {pipeline_mode = #tpu.pipeline_mode<synchronous>, transform_indices = @transform_7, window_bounds = array<i64: 16, 16>}, {pipeline_mode = #tpu.pipeline_mode<synchronous>, transform_indices = @transform_8, window_bounds = array<i64: 8, 80>}, {pipeline_mode = #tpu.pipeline_mode<synchronous>, transform_indices = @transform_9, window_bounds = array<i64: 64, 32>}, {pipeline_mode = #tpu.pipeline_mode<synchronous>, transform_indices = @transform_10, window_bounds = array<i64: 1, 64>}, {pipeline_mode = #tpu.pipeline_mode<synchronous>, transform_indices = @transform_11, window_bounds = array<i64: 32, 32>}, {pipeline_mode = #tpu.pipeline_mode<synchronous>, transform_indices = @transform_12, window_bounds = array<i64: 1, 32>}, {pipeline_mode = #tpu.pipeline_mode<synchronous>, transform_indices = @transform_13, window_bounds = array<i64: 32, 32>}, {pipeline_mode = #tpu.pipeline_mode<synchronous>, transform_indices = @transform_14, window_bounds = array<i64: 1, 32>}, {pipeline_mode = #tpu.pipeline_mode<synchronous>, transform_indices = @transform_15, window_bounds = array<i64: 1, 32>}, {pipeline_mode = #tpu.pipeline_mode<synchronous>, transform_indices = @transform_16, window_bounds = array<i64: 1, 32>}, {pipeline_mode = #tpu.pipeline_mode<synchronous>, transform_indices = @transform_17, window_bounds = array<i64: 32, 32>}, {pipeline_mode = #tpu.pipeline_mode<synchronous>, transform_indices = @transform_18, window_bounds = array<i64: 1, 32>}, {pipeline_mode = #tpu.pipeline_mode<synchronous>, transform_indices = @transform_19, window_bounds = array<i64: 32, 32>}, {pipeline_mode = #tpu.pipeline_mode<synchronous>, transform_indices = @transform_20, window_bounds = array<i64: 1, 32>}, {pipeline_mode = #tpu.pipeline_mode<synchronous>, transform_indices = @transform_21, window_bounds = array<i64: 16, 32>}, {pipeline_mode = #tpu.pipeline_mode<synchronous>, transform_indices = @transform_22, window_bounds = array<i64: 1, 16>}, {pipeline_mode = #tpu.pipeline_mode<synchronous>, transform_indices = @transform_23, window_bounds = array<i64: 32, 32>}, {pipeline_mode = #tpu.pipeline_mode<synchronous>, transform_indices = @transform_24, window_bounds = array<i64: 1, 32>}, {pipeline_mode = #tpu.pipeline_mode<synchronous>, transform_indices = @transform_25, window_bounds = array<i64: 1, 32>}, {pipeline_mode = #tpu.pipeline_mode<synchronous>, transform_indices = @transform_26, window_bounds = array<i64: 1, 32>}, {pipeline_mode = #tpu.pipeline_mode<synchronous>, transform_indices = @transform_27, window_bounds = array<i64: 64, 32>}, {pipeline_mode = #tpu.pipeline_mode<synchronous>, transform_indices = @transform_28, window_bounds = array<i64: 1, 64>}, {pipeline_mode = #tpu.pipeline_mode<synchronous>, transform_indices = @transform_29, window_bounds = array<i64: 32, 64>}, {pipeline_mode = #tpu.pipeline_mode<synchronous>, transform_indices = @transform_30, window_bounds = array<i64: 1, 32>}, {pipeline_mode = #tpu.pipeline_mode<synchronous>, transform_indices = @transform_31, window_bounds = array<i64: 1, 32>}, {pipeline_mode = #tpu.pipeline_mode<synchronous>, transform_indices = @transform_32, window_bounds = array<i64: 1, 32>}, {transform_indices = @transform_33, window_bounds = array<i64: 1, 8, 32>}]} {
    %c0 = arith.constant 0 : index
    %c0_0 = arith.constant 0 : index
    %c0_1 = arith.constant 0 : index
    %0 = vector.load %arg1[%c0, %c0_0, %c0_1] : memref<1x8x32xf32, #tpu.memory_space<vmem>>, vector<1x8x32xf32>
    %1 = vector.shape_cast %0 : vector<1x8x32xf32> to vector<8x32xf32>
    %c0_2 = arith.constant 0 : index
    %c0_3 = arith.constant 0 : index
    %c0_4 = arith.constant 0 : index
    %2 = vector.load %arg2[%c0_2, %c0_3, %c0_4] : memref<1x8x32xf32, #tpu.memory_space<vmem>>, vector<1x8x32xf32>
    %3 = vector.shape_cast %2 : vector<1x8x32xf32> to vector<8x32xf32>
    %4 = arith.addf %1, %3 : vector<8x32xf32>
    %c0_5 = arith.constant 0 : index
    %c0_6 = arith.constant 0 : index
    %5 = vector.load %arg10[%c0_5, %c0_6] : memref<64x32xf32, #tpu.memory_space<vmem>>, vector<64x32xf32>
    %cst = arith.constant dense<0.000000e+00> : vector<8x64xf32>
    %6 = tpu.matmul %4, %5, %cst {dimension_numbers = #tpu.dot_dimension_numbers<[1], [1], [0], [0], [0, 0, 1, 0], [], []>} : vector<8x32xf32>, vector<64x32xf32>, vector<8x64xf32> -> vector<8x64xf32>
    %c0_7 = arith.constant 0 : index
    %c0_8 = arith.constant 0 : index
    %7 = vector.load %arg11[%c0_7, %c0_8] : memref<1x64xf32, #tpu.memory_space<vmem>>, vector<1x64xf32>
    %8 = vector.broadcast %7 : vector<1x64xf32> to vector<8x64xf32>
    %9 = arith.addf %6, %8 : vector<8x64xf32>
    %10 = vector.extract_strided_slice %9 {offsets = [0, 0], sizes = [8, 32], strides = [1, 1]} : vector<8x64xf32> to vector<8x32xf32>
    %11 = vector.extract_strided_slice %9 {offsets = [0, 32], sizes = [8, 32], strides = [1, 1]} : vector<8x64xf32> to vector<8x32xf32>
    %c0_9 = arith.constant 0 : index
    %c0_10 = arith.constant 0 : index
    %12 = vector.load %arg12[%c0_9, %c0_10] : memref<32x32xf32, #tpu.memory_space<vmem>>, vector<32x32xf32>
    %cst_11 = arith.constant dense<0.000000e+00> : vector<8x32xf32>
    %13 = tpu.matmul %1, %12, %cst_11 {dimension_numbers = #tpu.dot_dimension_numbers<[1], [1], [0], [0], [0, 0, 1, 0], [], []>} : vector<8x32xf32>, vector<32x32xf32>, vector<8x32xf32> -> vector<8x32xf32>
    %c0_12 = arith.constant 0 : index
    %c0_13 = arith.constant 0 : index
    %14 = vector.load %arg13[%c0_12, %c0_13] : memref<1x32xf32, #tpu.memory_space<vmem>>, vector<1x32xf32>
    %15 = vector.broadcast %14 : vector<1x32xf32> to vector<8x32xf32>
    %16 = arith.addf %13, %15 : vector<8x32xf32>
    %17 = vector.extract_strided_slice %10 {offsets = [0, 0], sizes = [8, 8], strides = [1, 1]} : vector<8x32xf32> to vector<8x8xf32>
    %cst_14 = arith.constant 0.353553385 : f32
    %18 = vector.broadcast %cst_14 : f32 to vector<8x8xf32>
    %19 = arith.mulf %17, %18 : vector<8x8xf32>
    %20 = vector.extract_strided_slice %11 {offsets = [0, 0], sizes = [8, 8], strides = [1, 1]} : vector<8x32xf32> to vector<8x8xf32>
    %21 = vector.extract_strided_slice %16 {offsets = [0, 0], sizes = [8, 8], strides = [1, 1]} : vector<8x32xf32> to vector<8x8xf32>
    %cst_15 = arith.constant dense<0.000000e+00> : vector<8x8xf32>
    %22 = tpu.matmul %19, %20, %cst_15 {dimension_numbers = #tpu.dot_dimension_numbers<[1], [1], [0], [0], [0, 0, 1, 0], [], []>} : vector<8x8xf32>, vector<8x8xf32>, vector<8x8xf32> -> vector<8x8xf32>
    %cst_16 = arith.constant dense<0xFF800000> : vector<8xf32>
    %23 = vector.multi_reduction <maximumf>, %22, %cst_16 [1] : vector<8x8xf32> to vector<8xf32>
    %24 = vector.shape_cast %23 : vector<8xf32> to vector<8x1xf32>
    %25 = vector.broadcast %24 : vector<8x1xf32> to vector<8x8xf32>
    %26 = arith.subf %22, %25 : vector<8x8xf32>
    %27 = math.exp %26 : vector<8x8xf32>
    %cst_17 = arith.constant dense<0.000000e+00> : vector<8xf32>
    %28 = vector.multi_reduction <add>, %27, %cst_17 [1] : vector<8x8xf32> to vector<8xf32>
    %29 = vector.shape_cast %28 : vector<8xf32> to vector<8x1xf32>
    %30 = tpu.reciprocal %29 {approx = true} : vector<8x1xf32> -> vector<8x1xf32>
    %31 = vector.broadcast %30 : vector<8x1xf32> to vector<8x8xf32>
    %32 = arith.mulf %27, %31 : vector<8x8xf32>
    %cst_18 = arith.constant dense<0.000000e+00> : vector<8x8xf32>
    %33 = tpu.matmul %32, %21, %cst_18 {dimension_numbers = #tpu.dot_dimension_numbers<[1], [0], [0], [1], [0, 0, 1, 1], [], []>} : vector<8x8xf32>, vector<8x8xf32>, vector<8x8xf32> -> vector<8x8xf32>
    %34 = vector.extract_strided_slice %10 {offsets = [0, 8], sizes = [8, 8], strides = [1, 1]} : vector<8x32xf32> to vector<8x8xf32>
    %cst_19 = arith.constant 0.353553385 : f32
    %35 = vector.broadcast %cst_19 : f32 to vector<8x8xf32>
    %36 = arith.mulf %34, %35 : vector<8x8xf32>
    %37 = vector.extract_strided_slice %11 {offsets = [0, 8], sizes = [8, 8], strides = [1, 1]} : vector<8x32xf32> to vector<8x8xf32>
    %38 = vector.extract_strided_slice %16 {offsets = [0, 8], sizes = [8, 8], strides = [1, 1]} : vector<8x32xf32> to vector<8x8xf32>
    %cst_20 = arith.constant dense<0.000000e+00> : vector<8x8xf32>
    %39 = tpu.matmul %36, %37, %cst_20 {dimension_numbers = #tpu.dot_dimension_numbers<[1], [1], [0], [0], [0, 0, 1, 0], [], []>} : vector<8x8xf32>, vector<8x8xf32>, vector<8x8xf32> -> vector<8x8xf32>
    %cst_21 = arith.constant dense<0xFF800000> : vector<8xf32>
    %40 = vector.multi_reduction <maximumf>, %39, %cst_21 [1] : vector<8x8xf32> to vector<8xf32>
    %41 = vector.shape_cast %40 : vector<8xf32> to vector<8x1xf32>
    %42 = vector.broadcast %41 : vector<8x1xf32> to vector<8x8xf32>
    %43 = arith.subf %39, %42 : vector<8x8xf32>
    %44 = math.exp %43 : vector<8x8xf32>
    %cst_22 = arith.constant dense<0.000000e+00> : vector<8xf32>
    %45 = vector.multi_reduction <add>, %44, %cst_22 [1] : vector<8x8xf32> to vector<8xf32>
    %46 = vector.shape_cast %45 : vector<8xf32> to vector<8x1xf32>
    %47 = tpu.reciprocal %46 {approx = true} : vector<8x1xf32> -> vector<8x1xf32>
    %48 = vector.broadcast %47 : vector<8x1xf32> to vector<8x8xf32>
    %49 = arith.mulf %44, %48 : vector<8x8xf32>
    %cst_23 = arith.constant dense<0.000000e+00> : vector<8x8xf32>
    %50 = tpu.matmul %49, %38, %cst_23 {dimension_numbers = #tpu.dot_dimension_numbers<[1], [0], [0], [1], [0, 0, 1, 1], [], []>} : vector<8x8xf32>, vector<8x8xf32>, vector<8x8xf32> -> vector<8x8xf32>
    %51 = vector.extract_strided_slice %10 {offsets = [0, 16], sizes = [8, 8], strides = [1, 1]} : vector<8x32xf32> to vector<8x8xf32>
    %cst_24 = arith.constant 0.353553385 : f32
    %52 = vector.broadcast %cst_24 : f32 to vector<8x8xf32>
    %53 = arith.mulf %51, %52 : vector<8x8xf32>
    %54 = vector.extract_strided_slice %11 {offsets = [0, 16], sizes = [8, 8], strides = [1, 1]} : vector<8x32xf32> to vector<8x8xf32>
    %55 = vector.extract_strided_slice %16 {offsets = [0, 16], sizes = [8, 8], strides = [1, 1]} : vector<8x32xf32> to vector<8x8xf32>
    %cst_25 = arith.constant dense<0.000000e+00> : vector<8x8xf32>
    %56 = tpu.matmul %53, %54, %cst_25 {dimension_numbers = #tpu.dot_dimension_numbers<[1], [1], [0], [0], [0, 0, 1, 0], [], []>} : vector<8x8xf32>, vector<8x8xf32>, vector<8x8xf32> -> vector<8x8xf32>
    %cst_26 = arith.constant dense<0xFF800000> : vector<8xf32>
    %57 = vector.multi_reduction <maximumf>, %56, %cst_26 [1] : vector<8x8xf32> to vector<8xf32>
    %58 = vector.shape_cast %57 : vector<8xf32> to vector<8x1xf32>
    %59 = vector.broadcast %58 : vector<8x1xf32> to vector<8x8xf32>
    %60 = arith.subf %56, %59 : vector<8x8xf32>
    %61 = math.exp %60 : vector<8x8xf32>
    %cst_27 = arith.constant dense<0.000000e+00> : vector<8xf32>
    %62 = vector.multi_reduction <add>, %61, %cst_27 [1] : vector<8x8xf32> to vector<8xf32>
    %63 = vector.shape_cast %62 : vector<8xf32> to vector<8x1xf32>
    %64 = tpu.reciprocal %63 {approx = true} : vector<8x1xf32> -> vector<8x1xf32>
    %65 = vector.broadcast %64 : vector<8x1xf32> to vector<8x8xf32>
    %66 = arith.mulf %61, %65 : vector<8x8xf32>
    %cst_28 = arith.constant dense<0.000000e+00> : vector<8x8xf32>
    %67 = tpu.matmul %66, %55, %cst_28 {dimension_numbers = #tpu.dot_dimension_numbers<[1], [0], [0], [1], [0, 0, 1, 1], [], []>} : vector<8x8xf32>, vector<8x8xf32>, vector<8x8xf32> -> vector<8x8xf32>
    %68 = vector.extract_strided_slice %10 {offsets = [0, 24], sizes = [8, 8], strides = [1, 1]} : vector<8x32xf32> to vector<8x8xf32>
    %cst_29 = arith.constant 0.353553385 : f32
    %69 = vector.broadcast %cst_29 : f32 to vector<8x8xf32>
    %70 = arith.mulf %68, %69 : vector<8x8xf32>
    %71 = vector.extract_strided_slice %11 {offsets = [0, 24], sizes = [8, 8], strides = [1, 1]} : vector<8x32xf32> to vector<8x8xf32>
    %72 = vector.extract_strided_slice %16 {offsets = [0, 24], sizes = [8, 8], strides = [1, 1]} : vector<8x32xf32> to vector<8x8xf32>
    %cst_30 = arith.constant dense<0.000000e+00> : vector<8x8xf32>
    %73 = tpu.matmul %70, %71, %cst_30 {dimension_numbers = #tpu.dot_dimension_numbers<[1], [1], [0], [0], [0, 0, 1, 0], [], []>} : vector<8x8xf32>, vector<8x8xf32>, vector<8x8xf32> -> vector<8x8xf32>
    %cst_31 = arith.constant dense<0xFF800000> : vector<8xf32>
    %74 = vector.multi_reduction <maximumf>, %73, %cst_31 [1] : vector<8x8xf32> to vector<8xf32>
    %75 = vector.shape_cast %74 : vector<8xf32> to vector<8x1xf32>
    %76 = vector.broadcast %75 : vector<8x1xf32> to vector<8x8xf32>
    %77 = arith.subf %73, %76 : vector<8x8xf32>
    %78 = math.exp %77 : vector<8x8xf32>
    %cst_32 = arith.constant dense<0.000000e+00> : vector<8xf32>
    %79 = vector.multi_reduction <add>, %78, %cst_32 [1] : vector<8x8xf32> to vector<8xf32>
    %80 = vector.shape_cast %79 : vector<8xf32> to vector<8x1xf32>
    %81 = tpu.reciprocal %80 {approx = true} : vector<8x1xf32> -> vector<8x1xf32>
    %82 = vector.broadcast %81 : vector<8x1xf32> to vector<8x8xf32>
    %83 = arith.mulf %78, %82 : vector<8x8xf32>
    %cst_33 = arith.constant dense<0.000000e+00> : vector<8x8xf32>
    %84 = tpu.matmul %83, %72, %cst_33 {dimension_numbers = #tpu.dot_dimension_numbers<[1], [0], [0], [1], [0, 0, 1, 1], [], []>} : vector<8x8xf32>, vector<8x8xf32>, vector<8x8xf32> -> vector<8x8xf32>
    %85 = tpu.concatenate %33, %50, %67, %84 in 1 : vector<8x8xf32>, vector<8x8xf32>, vector<8x8xf32>, vector<8x8xf32> -> vector<8x32xf32>
    %c0_34 = arith.constant 0 : index
    %c0_35 = arith.constant 0 : index
    %86 = vector.load %arg14[%c0_34, %c0_35] : memref<32x32xf32, #tpu.memory_space<vmem>>, vector<32x32xf32>
    %cst_36 = arith.constant dense<0.000000e+00> : vector<8x32xf32>
    %87 = tpu.matmul %85, %86, %cst_36 {dimension_numbers = #tpu.dot_dimension_numbers<[1], [1], [0], [0], [0, 0, 1, 0], [], []>} : vector<8x32xf32>, vector<32x32xf32>, vector<8x32xf32> -> vector<8x32xf32>
    %c0_37 = arith.constant 0 : index
    %c0_38 = arith.constant 0 : index
    %88 = vector.load %arg15[%c0_37, %c0_38] : memref<1x32xf32, #tpu.memory_space<vmem>>, vector<1x32xf32>
    %89 = vector.broadcast %88 : vector<1x32xf32> to vector<8x32xf32>
    %90 = arith.addf %87, %89 : vector<8x32xf32>
    %91 = arith.addf %1, %90 : vector<8x32xf32>
    %c0_39 = arith.constant 0 : index
    %c0_40 = arith.constant 0 : index
    %92 = vector.load %arg16[%c0_39, %c0_40] : memref<1x32xf32, #tpu.memory_space<vmem>>, vector<1x32xf32>
    %c0_41 = arith.constant 0 : index
    %c0_42 = arith.constant 0 : index
    %93 = vector.load %arg17[%c0_41, %c0_42] : memref<1x32xf32, #tpu.memory_space<vmem>>, vector<1x32xf32>
    %cst_43 = arith.constant dense<0.000000e+00> : vector<8xf32>
    %94 = vector.multi_reduction <add>, %91, %cst_43 [1] : vector<8x32xf32> to vector<8xf32>
    %95 = vector.shape_cast %94 : vector<8xf32> to vector<8x1xf32>
    %cst_44 = arith.constant 3.200000e+01 : f32
    %96 = vector.broadcast %cst_44 : f32 to vector<8x1xf32>
    %97 = arith.divf %95, %96 : vector<8x1xf32>
    %98 = vector.broadcast %97 : vector<8x1xf32> to vector<8x32xf32>
    %99 = arith.subf %91, %98 : vector<8x32xf32>
    %100 = arith.mulf %99, %99 : vector<8x32xf32>
    %cst_45 = arith.constant dense<0.000000e+00> : vector<8xf32>
    %101 = vector.multi_reduction <add>, %100, %cst_45 [1] : vector<8x32xf32> to vector<8xf32>
    %102 = vector.shape_cast %101 : vector<8xf32> to vector<8x1xf32>
    %cst_46 = arith.constant 3.200000e+01 : f32
    %103 = vector.broadcast %cst_46 : f32 to vector<8x1xf32>
    %104 = arith.divf %102, %103 : vector<8x1xf32>
    %105 = vector.broadcast %97 : vector<8x1xf32> to vector<8x32xf32>
    %106 = arith.subf %91, %105 : vector<8x32xf32>
    %cst_47 = arith.constant 9.99999974E-6 : f32
    %107 = vector.broadcast %cst_47 : f32 to vector<8x1xf32>
    %108 = arith.addf %104, %107 : vector<8x1xf32>
    %109 = math.rsqrt %108 : vector<8x1xf32>
    %110 = vector.broadcast %109 : vector<8x1xf32> to vector<8x32xf32>
    %111 = arith.mulf %106, %110 : vector<8x32xf32>
    %112 = vector.broadcast %92 : vector<1x32xf32> to vector<8x32xf32>
    %113 = arith.mulf %111, %112 : vector<8x32xf32>
    %114 = vector.broadcast %93 : vector<1x32xf32> to vector<8x32xf32>
    %115 = arith.addf %113, %114 : vector<8x32xf32>
    %116 = arith.addf %115, %3 : vector<8x32xf32>
    %c0_48 = arith.constant 0 : index
    %c0_49 = arith.constant 0 : index
    %c0_50 = arith.constant 0 : index
    %117 = vector.load %arg3[%c0_48, %c0_49, %c0_50] : memref<1x80x32xf32, #tpu.memory_space<vmem>>, vector<1x80x32xf32>
    %118 = vector.shape_cast %117 : vector<1x80x32xf32> to vector<80x32xf32>
    %c0_51 = arith.constant 0 : index
    %c0_52 = arith.constant 0 : index
    %c0_53 = arith.constant 0 : index
    %119 = vector.load %arg4[%c0_51, %c0_52, %c0_53] : memref<1x80x32xf32, #tpu.memory_space<vmem>>, vector<1x80x32xf32>
    %120 = vector.shape_cast %119 : vector<1x80x32xf32> to vector<80x32xf32>
    %121 = arith.addf %118, %120 : vector<80x32xf32>
    %c0_54 = arith.constant 0 : index
    %c0_55 = arith.constant 0 : index
    %122 = vector.load %arg18[%c0_54, %c0_55] : memref<32x32xf32, #tpu.memory_space<vmem>>, vector<32x32xf32>
    %cst_56 = arith.constant dense<0.000000e+00> : vector<80x32xf32>
    %123 = tpu.matmul %121, %122, %cst_56 {dimension_numbers = #tpu.dot_dimension_numbers<[1], [1], [0], [0], [0, 0, 1, 0], [], []>} : vector<80x32xf32>, vector<32x32xf32>, vector<80x32xf32> -> vector<80x32xf32>
    %c0_57 = arith.constant 0 : index
    %c0_58 = arith.constant 0 : index
    %124 = vector.load %arg19[%c0_57, %c0_58] : memref<1x32xf32, #tpu.memory_space<vmem>>, vector<1x32xf32>
    %125 = vector.broadcast %124 : vector<1x32xf32> to vector<80x32xf32>
    %126 = arith.addf %123, %125 : vector<80x32xf32>
    %c0_59 = arith.constant 0 : index
    %c0_60 = arith.constant 0 : index
    %127 = vector.load %arg20[%c0_59, %c0_60] : memref<32x32xf32, #tpu.memory_space<vmem>>, vector<32x32xf32>
    %cst_61 = arith.constant dense<0.000000e+00> : vector<8x32xf32>
    %128 = tpu.matmul %116, %127, %cst_61 {dimension_numbers = #tpu.dot_dimension_numbers<[1], [1], [0], [0], [0, 0, 1, 0], [], []>} : vector<8x32xf32>, vector<32x32xf32>, vector<8x32xf32> -> vector<8x32xf32>
    %c0_62 = arith.constant 0 : index
    %c0_63 = arith.constant 0 : index
    %129 = vector.load %arg21[%c0_62, %c0_63] : memref<1x32xf32, #tpu.memory_space<vmem>>, vector<1x32xf32>
    %130 = vector.broadcast %129 : vector<1x32xf32> to vector<8x32xf32>
    %131 = arith.addf %128, %130 : vector<8x32xf32>
    %c0_64 = arith.constant 0 : index
    %c0_65 = arith.constant 0 : index
    %132 = vector.load %arg22[%c0_64, %c0_65] : memref<16x32xf32, #tpu.memory_space<vmem>>, vector<16x32xf32>
    %cst_66 = arith.constant dense<0.000000e+00> : vector<8x16xf32>
    %133 = tpu.matmul %116, %132, %cst_66 {dimension_numbers = #tpu.dot_dimension_numbers<[1], [1], [0], [0], [0, 0, 1, 0], [], []>} : vector<8x32xf32>, vector<16x32xf32>, vector<8x16xf32> -> vector<8x16xf32>
    %c0_67 = arith.constant 0 : index
    %c0_68 = arith.constant 0 : index
    %134 = vector.load %arg23[%c0_67, %c0_68] : memref<1x16xf32, #tpu.memory_space<vmem>>, vector<1x16xf32>
    %135 = vector.broadcast %134 : vector<1x16xf32> to vector<8x16xf32>
    %136 = arith.addf %133, %135 : vector<8x16xf32>
    %cst_69 = arith.constant dense<0xFF800000> : vector<8xf32>
    %137 = vector.multi_reduction <maximumf>, %136, %cst_69 [1] : vector<8x16xf32> to vector<8xf32>
    %138 = vector.shape_cast %137 : vector<8xf32> to vector<8x1xf32>
    %139 = vector.broadcast %138 : vector<8x1xf32> to vector<8x16xf32>
    %140 = arith.subf %136, %139 : vector<8x16xf32>
    %141 = math.exp %140 : vector<8x16xf32>
    %c0_70 = arith.constant 0 : index
    %c0_71 = arith.constant 0 : index
    %142 = vector.load %arg8[%c0_70, %c0_71] : memref<16x16xf32, #tpu.memory_space<vmem>>, vector<16x16xf32>
    %cst_72 = arith.constant dense<0.000000e+00> : vector<8x16xf32>
    %143 = tpu.matmul %141, %142, %cst_72 {dimension_numbers = #tpu.dot_dimension_numbers<[1], [0], [0], [1], [0, 0, 1, 1], [], []>} : vector<8x16xf32>, vector<16x16xf32>, vector<8x16xf32> -> vector<8x16xf32>
    %144 = tpu.reciprocal %143 {approx = true} : vector<8x16xf32> -> vector<8x16xf32>
    %145 = arith.mulf %141, %144 : vector<8x16xf32>
    %c0_73 = arith.constant 0 : index
    %c0_74 = arith.constant 0 : index
    %146 = vector.load %arg7[%c0_73, %c0_74] : memref<8x16xf32, #tpu.memory_space<vmem>>, vector<8x16xf32>
    %147 = vector.extract_strided_slice %146 {offsets = [0, 0], sizes = [1, 16], strides = [1, 1]} : vector<8x16xf32> to vector<1x16xf32>
    %148 = vector.extract_strided_slice %146 {offsets = [1, 0], sizes = [1, 16], strides = [1, 1]} : vector<8x16xf32> to vector<1x16xf32>
    %149 = vector.extract_strided_slice %146 {offsets = [2, 0], sizes = [1, 16], strides = [1, 1]} : vector<8x16xf32> to vector<1x16xf32>
    %150 = vector.extract_strided_slice %146 {offsets = [3, 0], sizes = [1, 16], strides = [1, 1]} : vector<8x16xf32> to vector<1x16xf32>
    %151 = vector.extract_strided_slice %146 {offsets = [4, 0], sizes = [1, 16], strides = [1, 1]} : vector<8x16xf32> to vector<1x16xf32>
    %152 = vector.extract_strided_slice %131 {offsets = [0, 0], sizes = [8, 16], strides = [1, 1]} : vector<8x32xf32> to vector<8x16xf32>
    %153 = vector.extract_strided_slice %131 {offsets = [0, 16], sizes = [8, 16], strides = [1, 1]} : vector<8x32xf32> to vector<8x16xf32>
    %c0_75 = arith.constant 0 : index
    %c0_76 = arith.constant 0 : index
    %c0_77 = arith.constant 0 : index
    %154 = vector.load %arg5[%c0_75, %c0_76, %c0_77] : memref<1x8x16xf32, #tpu.memory_space<vmem>>, vector<1x8x16xf32>
    %155 = vector.shape_cast %154 : vector<1x8x16xf32> to vector<8x16xf32>
    %156 = vector.broadcast %149 : vector<1x16xf32> to vector<8x16xf32>
    %157 = arith.mulf %152, %156 : vector<8x16xf32>
    %158 = arith.addf %155, %157 : vector<8x16xf32>
    %159 = vector.broadcast %147 : vector<1x16xf32> to vector<8x16xf32>
    %160 = arith.mulf %158, %159 : vector<8x16xf32>
    %cst_78 = arith.constant 5.000000e-01 : f32
    %161 = vector.broadcast %cst_78 : f32 to vector<8x16xf32>
    %162 = arith.subf %160, %161 : vector<8x16xf32>
    %c0_79 = arith.constant 0 : index
    %c0_80 = arith.constant 0 : index
    %c0_81 = arith.constant 0 : index
    %163 = vector.load %arg6[%c0_79, %c0_80, %c0_81] : memref<1x8x16xf32, #tpu.memory_space<vmem>>, vector<1x8x16xf32>
    %164 = vector.shape_cast %163 : vector<1x8x16xf32> to vector<8x16xf32>
    %165 = vector.broadcast %150 : vector<1x16xf32> to vector<8x16xf32>
    %166 = arith.mulf %153, %165 : vector<8x16xf32>
    %167 = arith.addf %164, %166 : vector<8x16xf32>
    %168 = vector.broadcast %148 : vector<1x16xf32> to vector<8x16xf32>
    %169 = arith.mulf %167, %168 : vector<8x16xf32>
    %cst_82 = arith.constant 5.000000e-01 : f32
    %170 = vector.broadcast %cst_82 : f32 to vector<8x16xf32>
    %171 = arith.subf %169, %170 : vector<8x16xf32>
    %172 = math.floor %162 : vector<8x16xf32>
    %173 = math.floor %171 : vector<8x16xf32>
    %cst_83 = arith.constant 1.000000e+00 : f32
    %174 = vector.broadcast %cst_83 : f32 to vector<8x16xf32>
    %175 = arith.addf %172, %174 : vector<8x16xf32>
    %cst_84 = arith.constant 1.000000e+00 : f32
    %176 = vector.broadcast %cst_84 : f32 to vector<8x16xf32>
    %177 = arith.addf %173, %176 : vector<8x16xf32>
    %178 = arith.subf %162, %172 : vector<8x16xf32>
    %cst_85 = arith.constant 1.000000e+00 : f32
    %179 = vector.broadcast %cst_85 : f32 to vector<8x16xf32>
    %180 = arith.subf %179, %178 : vector<8x16xf32>
    %181 = arith.subf %171, %173 : vector<8x16xf32>
    %cst_86 = arith.constant 1.000000e+00 : f32
    %182 = vector.broadcast %cst_86 : f32 to vector<8x16xf32>
    %183 = arith.subf %182, %181 : vector<8x16xf32>
    %184 = arith.mulf %180, %183 : vector<8x16xf32>
    %185 = arith.mulf %178, %183 : vector<8x16xf32>
    %186 = arith.mulf %180, %181 : vector<8x16xf32>
    %187 = arith.mulf %178, %181 : vector<8x16xf32>
    %cst_87 = arith.constant 0.000000e+00 : f32
    %188 = vector.broadcast %cst_87 : f32 to vector<8x16xf32>
    %189 = arith.cmpf oge, %172, %188 : vector<8x16xf32>
    %190 = vector.broadcast %147 : vector<1x16xf32> to vector<8x16xf32>
    %191 = arith.cmpf olt, %172, %190 : vector<8x16xf32>
    %192 = arith.andi %189, %191 : vector<8x16xi1>
    %cst_88 = arith.constant 0.000000e+00 : f32
    %193 = vector.broadcast %cst_88 : f32 to vector<8x16xf32>
    %194 = arith.cmpf oge, %173, %193 : vector<8x16xf32>
    %195 = arith.andi %192, %194 : vector<8x16xi1>
    %196 = vector.broadcast %148 : vector<1x16xf32> to vector<8x16xf32>
    %197 = arith.cmpf olt, %173, %196 : vector<8x16xf32>
    %198 = arith.andi %195, %197 : vector<8x16xi1>
    %199 = arith.extui %198 : vector<8x16xi1> to vector<8x16xi32>
    %200 = arith.sitofp %199 : vector<8x16xi32> to vector<8x16xf32>
    %cst_89 = arith.constant 1.000000e+00 : f32
    %201 = vector.broadcast %cst_89 : f32 to vector<1x16xf32>
    %202 = arith.subf %147, %201 : vector<1x16xf32>
    %cst_90 = arith.constant 0.000000e+00 : f32
    %203 = vector.broadcast %cst_90 : f32 to vector<8x16xf32>
    %204 = arith.maximumf %203, %172 : vector<8x16xf32>
    %205 = vector.broadcast %202 : vector<1x16xf32> to vector<8x16xf32>
    %206 = arith.minimumf %205, %204 : vector<8x16xf32>
    %cst_91 = arith.constant 1.000000e+00 : f32
    %207 = vector.broadcast %cst_91 : f32 to vector<1x16xf32>
    %208 = arith.subf %148, %207 : vector<1x16xf32>
    %cst_92 = arith.constant 0.000000e+00 : f32
    %209 = vector.broadcast %cst_92 : f32 to vector<8x16xf32>
    %210 = arith.maximumf %209, %173 : vector<8x16xf32>
    %211 = vector.broadcast %208 : vector<1x16xf32> to vector<8x16xf32>
    %212 = arith.minimumf %211, %210 : vector<8x16xf32>
    %213 = vector.broadcast %147 : vector<1x16xf32> to vector<8x16xf32>
    %214 = arith.mulf %212, %213 : vector<8x16xf32>
    %215 = vector.broadcast %151 : vector<1x16xf32> to vector<8x16xf32>
    %216 = arith.addf %215, %214 : vector<8x16xf32>
    %217 = arith.addf %216, %206 : vector<8x16xf32>
    %218 = arith.mulf %145, %184 : vector<8x16xf32>
    %219 = arith.mulf %218, %200 : vector<8x16xf32>
    %cst_93 = arith.constant 0.000000e+00 : f32
    %220 = vector.broadcast %cst_93 : f32 to vector<8x16xf32>
    %221 = arith.cmpf oge, %175, %220 : vector<8x16xf32>
    %222 = vector.broadcast %147 : vector<1x16xf32> to vector<8x16xf32>
    %223 = arith.cmpf olt, %175, %222 : vector<8x16xf32>
    %224 = arith.andi %221, %223 : vector<8x16xi1>
    %cst_94 = arith.constant 0.000000e+00 : f32
    %225 = vector.broadcast %cst_94 : f32 to vector<8x16xf32>
    %226 = arith.cmpf oge, %173, %225 : vector<8x16xf32>
    %227 = arith.andi %224, %226 : vector<8x16xi1>
    %228 = vector.broadcast %148 : vector<1x16xf32> to vector<8x16xf32>
    %229 = arith.cmpf olt, %173, %228 : vector<8x16xf32>
    %230 = arith.andi %227, %229 : vector<8x16xi1>
    %231 = arith.extui %230 : vector<8x16xi1> to vector<8x16xi32>
    %232 = arith.sitofp %231 : vector<8x16xi32> to vector<8x16xf32>
    %cst_95 = arith.constant 1.000000e+00 : f32
    %233 = vector.broadcast %cst_95 : f32 to vector<1x16xf32>
    %234 = arith.subf %147, %233 : vector<1x16xf32>
    %cst_96 = arith.constant 0.000000e+00 : f32
    %235 = vector.broadcast %cst_96 : f32 to vector<8x16xf32>
    %236 = arith.maximumf %235, %175 : vector<8x16xf32>
    %237 = vector.broadcast %234 : vector<1x16xf32> to vector<8x16xf32>
    %238 = arith.minimumf %237, %236 : vector<8x16xf32>
    %cst_97 = arith.constant 1.000000e+00 : f32
    %239 = vector.broadcast %cst_97 : f32 to vector<1x16xf32>
    %240 = arith.subf %148, %239 : vector<1x16xf32>
    %cst_98 = arith.constant 0.000000e+00 : f32
    %241 = vector.broadcast %cst_98 : f32 to vector<8x16xf32>
    %242 = arith.maximumf %241, %173 : vector<8x16xf32>
    %243 = vector.broadcast %240 : vector<1x16xf32> to vector<8x16xf32>
    %244 = arith.minimumf %243, %242 : vector<8x16xf32>
    %245 = vector.broadcast %147 : vector<1x16xf32> to vector<8x16xf32>
    %246 = arith.mulf %244, %245 : vector<8x16xf32>
    %247 = vector.broadcast %151 : vector<1x16xf32> to vector<8x16xf32>
    %248 = arith.addf %247, %246 : vector<8x16xf32>
    %249 = arith.addf %248, %238 : vector<8x16xf32>
    %250 = arith.mulf %145, %185 : vector<8x16xf32>
    %251 = arith.mulf %250, %232 : vector<8x16xf32>
    %cst_99 = arith.constant 0.000000e+00 : f32
    %252 = vector.broadcast %cst_99 : f32 to vector<8x16xf32>
    %253 = arith.cmpf oge, %172, %252 : vector<8x16xf32>
    %254 = vector.broadcast %147 : vector<1x16xf32> to vector<8x16xf32>
    %255 = arith.cmpf olt, %172, %254 : vector<8x16xf32>
    %256 = arith.andi %253, %255 : vector<8x16xi1>
    %cst_100 = arith.constant 0.000000e+00 : f32
    %257 = vector.broadcast %cst_100 : f32 to vector<8x16xf32>
    %258 = arith.cmpf oge, %177, %257 : vector<8x16xf32>
    %259 = arith.andi %256, %258 : vector<8x16xi1>
    %260 = vector.broadcast %148 : vector<1x16xf32> to vector<8x16xf32>
    %261 = arith.cmpf olt, %177, %260 : vector<8x16xf32>
    %262 = arith.andi %259, %261 : vector<8x16xi1>
    %263 = arith.extui %262 : vector<8x16xi1> to vector<8x16xi32>
    %264 = arith.sitofp %263 : vector<8x16xi32> to vector<8x16xf32>
    %cst_101 = arith.constant 1.000000e+00 : f32
    %265 = vector.broadcast %cst_101 : f32 to vector<1x16xf32>
    %266 = arith.subf %147, %265 : vector<1x16xf32>
    %cst_102 = arith.constant 0.000000e+00 : f32
    %267 = vector.broadcast %cst_102 : f32 to vector<8x16xf32>
    %268 = arith.maximumf %267, %172 : vector<8x16xf32>
    %269 = vector.broadcast %266 : vector<1x16xf32> to vector<8x16xf32>
    %270 = arith.minimumf %269, %268 : vector<8x16xf32>
    %cst_103 = arith.constant 1.000000e+00 : f32
    %271 = vector.broadcast %cst_103 : f32 to vector<1x16xf32>
    %272 = arith.subf %148, %271 : vector<1x16xf32>
    %cst_104 = arith.constant 0.000000e+00 : f32
    %273 = vector.broadcast %cst_104 : f32 to vector<8x16xf32>
    %274 = arith.maximumf %273, %177 : vector<8x16xf32>
    %275 = vector.broadcast %272 : vector<1x16xf32> to vector<8x16xf32>
    %276 = arith.minimumf %275, %274 : vector<8x16xf32>
    %277 = vector.broadcast %147 : vector<1x16xf32> to vector<8x16xf32>
    %278 = arith.mulf %276, %277 : vector<8x16xf32>
    %279 = vector.broadcast %151 : vector<1x16xf32> to vector<8x16xf32>
    %280 = arith.addf %279, %278 : vector<8x16xf32>
    %281 = arith.addf %280, %270 : vector<8x16xf32>
    %282 = arith.mulf %145, %186 : vector<8x16xf32>
    %283 = arith.mulf %282, %264 : vector<8x16xf32>
    %cst_105 = arith.constant 0.000000e+00 : f32
    %284 = vector.broadcast %cst_105 : f32 to vector<8x16xf32>
    %285 = arith.cmpf oge, %175, %284 : vector<8x16xf32>
    %286 = vector.broadcast %147 : vector<1x16xf32> to vector<8x16xf32>
    %287 = arith.cmpf olt, %175, %286 : vector<8x16xf32>
    %288 = arith.andi %285, %287 : vector<8x16xi1>
    %cst_106 = arith.constant 0.000000e+00 : f32
    %289 = vector.broadcast %cst_106 : f32 to vector<8x16xf32>
    %290 = arith.cmpf oge, %177, %289 : vector<8x16xf32>
    %291 = arith.andi %288, %290 : vector<8x16xi1>
    %292 = vector.broadcast %148 : vector<1x16xf32> to vector<8x16xf32>
    %293 = arith.cmpf olt, %177, %292 : vector<8x16xf32>
    %294 = arith.andi %291, %293 : vector<8x16xi1>
    %295 = arith.extui %294 : vector<8x16xi1> to vector<8x16xi32>
    %296 = arith.sitofp %295 : vector<8x16xi32> to vector<8x16xf32>
    %cst_107 = arith.constant 1.000000e+00 : f32
    %297 = vector.broadcast %cst_107 : f32 to vector<1x16xf32>
    %298 = arith.subf %147, %297 : vector<1x16xf32>
    %cst_108 = arith.constant 0.000000e+00 : f32
    %299 = vector.broadcast %cst_108 : f32 to vector<8x16xf32>
    %300 = arith.maximumf %299, %175 : vector<8x16xf32>
    %301 = vector.broadcast %298 : vector<1x16xf32> to vector<8x16xf32>
    %302 = arith.minimumf %301, %300 : vector<8x16xf32>
    %cst_109 = arith.constant 1.000000e+00 : f32
    %303 = vector.broadcast %cst_109 : f32 to vector<1x16xf32>
    %304 = arith.subf %148, %303 : vector<1x16xf32>
    %cst_110 = arith.constant 0.000000e+00 : f32
    %305 = vector.broadcast %cst_110 : f32 to vector<8x16xf32>
    %306 = arith.maximumf %305, %177 : vector<8x16xf32>
    %307 = vector.broadcast %304 : vector<1x16xf32> to vector<8x16xf32>
    %308 = arith.minimumf %307, %306 : vector<8x16xf32>
    %309 = vector.broadcast %147 : vector<1x16xf32> to vector<8x16xf32>
    %310 = arith.mulf %308, %309 : vector<8x16xf32>
    %311 = vector.broadcast %151 : vector<1x16xf32> to vector<8x16xf32>
    %312 = arith.addf %311, %310 : vector<8x16xf32>
    %313 = arith.addf %312, %302 : vector<8x16xf32>
    %314 = arith.mulf %145, %187 : vector<8x16xf32>
    %315 = arith.mulf %314, %296 : vector<8x16xf32>
    %c0_111 = arith.constant 0 : index
    %c0_112 = arith.constant 0 : index
    %316 = vector.load %arg9[%c0_111, %c0_112] : memref<8x80xf32, #tpu.memory_space<vmem>>, vector<8x80xf32>
    %cst_113 = arith.constant 0.000000e+00 : f32
    %317 = vector.broadcast %cst_113 : f32 to vector<8x80xf32>
    %318 = vector.extract_strided_slice %217 {offsets = [0, 0], sizes = [8, 1], strides = [1, 1]} : vector<8x16xf32> to vector<8x1xf32>
    %319 = vector.broadcast %318 : vector<8x1xf32> to vector<8x80xf32>
    %320 = arith.cmpf oeq, %319, %316 : vector<8x80xf32>
    %321 = arith.extui %320 : vector<8x80xi1> to vector<8x80xi32>
    %322 = arith.sitofp %321 : vector<8x80xi32> to vector<8x80xf32>
    %323 = vector.extract_strided_slice %219 {offsets = [0, 0], sizes = [8, 1], strides = [1, 1]} : vector<8x16xf32> to vector<8x1xf32>
    %324 = vector.broadcast %323 : vector<8x1xf32> to vector<8x80xf32>
    %325 = arith.mulf %322, %324 : vector<8x80xf32>
    %326 = arith.addf %317, %325 : vector<8x80xf32>
    %327 = vector.extract_strided_slice %217 {offsets = [0, 1], sizes = [8, 1], strides = [1, 1]} : vector<8x16xf32> to vector<8x1xf32>
    %328 = vector.broadcast %327 : vector<8x1xf32> to vector<8x80xf32>
    %329 = arith.cmpf oeq, %328, %316 : vector<8x80xf32>
    %330 = arith.extui %329 : vector<8x80xi1> to vector<8x80xi32>
    %331 = arith.sitofp %330 : vector<8x80xi32> to vector<8x80xf32>
    %332 = vector.extract_strided_slice %219 {offsets = [0, 1], sizes = [8, 1], strides = [1, 1]} : vector<8x16xf32> to vector<8x1xf32>
    %333 = vector.broadcast %332 : vector<8x1xf32> to vector<8x80xf32>
    %334 = arith.mulf %331, %333 : vector<8x80xf32>
    %335 = arith.addf %326, %334 : vector<8x80xf32>
    %336 = vector.extract_strided_slice %217 {offsets = [0, 2], sizes = [8, 1], strides = [1, 1]} : vector<8x16xf32> to vector<8x1xf32>
    %337 = vector.broadcast %336 : vector<8x1xf32> to vector<8x80xf32>
    %338 = arith.cmpf oeq, %337, %316 : vector<8x80xf32>
    %339 = arith.extui %338 : vector<8x80xi1> to vector<8x80xi32>
    %340 = arith.sitofp %339 : vector<8x80xi32> to vector<8x80xf32>
    %341 = vector.extract_strided_slice %219 {offsets = [0, 2], sizes = [8, 1], strides = [1, 1]} : vector<8x16xf32> to vector<8x1xf32>
    %342 = vector.broadcast %341 : vector<8x1xf32> to vector<8x80xf32>
    %343 = arith.mulf %340, %342 : vector<8x80xf32>
    %344 = arith.addf %335, %343 : vector<8x80xf32>
    %345 = vector.extract_strided_slice %217 {offsets = [0, 3], sizes = [8, 1], strides = [1, 1]} : vector<8x16xf32> to vector<8x1xf32>
    %346 = vector.broadcast %345 : vector<8x1xf32> to vector<8x80xf32>
    %347 = arith.cmpf oeq, %346, %316 : vector<8x80xf32>
    %348 = arith.extui %347 : vector<8x80xi1> to vector<8x80xi32>
    %349 = arith.sitofp %348 : vector<8x80xi32> to vector<8x80xf32>
    %350 = vector.extract_strided_slice %219 {offsets = [0, 3], sizes = [8, 1], strides = [1, 1]} : vector<8x16xf32> to vector<8x1xf32>
    %351 = vector.broadcast %350 : vector<8x1xf32> to vector<8x80xf32>
    %352 = arith.mulf %349, %351 : vector<8x80xf32>
    %353 = arith.addf %344, %352 : vector<8x80xf32>
    %354 = vector.extract_strided_slice %249 {offsets = [0, 0], sizes = [8, 1], strides = [1, 1]} : vector<8x16xf32> to vector<8x1xf32>
    %355 = vector.broadcast %354 : vector<8x1xf32> to vector<8x80xf32>
    %356 = arith.cmpf oeq, %355, %316 : vector<8x80xf32>
    %357 = arith.extui %356 : vector<8x80xi1> to vector<8x80xi32>
    %358 = arith.sitofp %357 : vector<8x80xi32> to vector<8x80xf32>
    %359 = vector.extract_strided_slice %251 {offsets = [0, 0], sizes = [8, 1], strides = [1, 1]} : vector<8x16xf32> to vector<8x1xf32>
    %360 = vector.broadcast %359 : vector<8x1xf32> to vector<8x80xf32>
    %361 = arith.mulf %358, %360 : vector<8x80xf32>
    %362 = arith.addf %353, %361 : vector<8x80xf32>
    %363 = vector.extract_strided_slice %249 {offsets = [0, 1], sizes = [8, 1], strides = [1, 1]} : vector<8x16xf32> to vector<8x1xf32>
    %364 = vector.broadcast %363 : vector<8x1xf32> to vector<8x80xf32>
    %365 = arith.cmpf oeq, %364, %316 : vector<8x80xf32>
    %366 = arith.extui %365 : vector<8x80xi1> to vector<8x80xi32>
    %367 = arith.sitofp %366 : vector<8x80xi32> to vector<8x80xf32>
    %368 = vector.extract_strided_slice %251 {offsets = [0, 1], sizes = [8, 1], strides = [1, 1]} : vector<8x16xf32> to vector<8x1xf32>
    %369 = vector.broadcast %368 : vector<8x1xf32> to vector<8x80xf32>
    %370 = arith.mulf %367, %369 : vector<8x80xf32>
    %371 = arith.addf %362, %370 : vector<8x80xf32>
    %372 = vector.extract_strided_slice %249 {offsets = [0, 2], sizes = [8, 1], strides = [1, 1]} : vector<8x16xf32> to vector<8x1xf32>
    %373 = vector.broadcast %372 : vector<8x1xf32> to vector<8x80xf32>
    %374 = arith.cmpf oeq, %373, %316 : vector<8x80xf32>
    %375 = arith.extui %374 : vector<8x80xi1> to vector<8x80xi32>
    %376 = arith.sitofp %375 : vector<8x80xi32> to vector<8x80xf32>
    %377 = vector.extract_strided_slice %251 {offsets = [0, 2], sizes = [8, 1], strides = [1, 1]} : vector<8x16xf32> to vector<8x1xf32>
    %378 = vector.broadcast %377 : vector<8x1xf32> to vector<8x80xf32>
    %379 = arith.mulf %376, %378 : vector<8x80xf32>
    %380 = arith.addf %371, %379 : vector<8x80xf32>
    %381 = vector.extract_strided_slice %249 {offsets = [0, 3], sizes = [8, 1], strides = [1, 1]} : vector<8x16xf32> to vector<8x1xf32>
    %382 = vector.broadcast %381 : vector<8x1xf32> to vector<8x80xf32>
    %383 = arith.cmpf oeq, %382, %316 : vector<8x80xf32>
    %384 = arith.extui %383 : vector<8x80xi1> to vector<8x80xi32>
    %385 = arith.sitofp %384 : vector<8x80xi32> to vector<8x80xf32>
    %386 = vector.extract_strided_slice %251 {offsets = [0, 3], sizes = [8, 1], strides = [1, 1]} : vector<8x16xf32> to vector<8x1xf32>
    %387 = vector.broadcast %386 : vector<8x1xf32> to vector<8x80xf32>
    %388 = arith.mulf %385, %387 : vector<8x80xf32>
    %389 = arith.addf %380, %388 : vector<8x80xf32>
    %390 = vector.extract_strided_slice %281 {offsets = [0, 0], sizes = [8, 1], strides = [1, 1]} : vector<8x16xf32> to vector<8x1xf32>
    %391 = vector.broadcast %390 : vector<8x1xf32> to vector<8x80xf32>
    %392 = arith.cmpf oeq, %391, %316 : vector<8x80xf32>
    %393 = arith.extui %392 : vector<8x80xi1> to vector<8x80xi32>
    %394 = arith.sitofp %393 : vector<8x80xi32> to vector<8x80xf32>
    %395 = vector.extract_strided_slice %283 {offsets = [0, 0], sizes = [8, 1], strides = [1, 1]} : vector<8x16xf32> to vector<8x1xf32>
    %396 = vector.broadcast %395 : vector<8x1xf32> to vector<8x80xf32>
    %397 = arith.mulf %394, %396 : vector<8x80xf32>
    %398 = arith.addf %389, %397 : vector<8x80xf32>
    %399 = vector.extract_strided_slice %281 {offsets = [0, 1], sizes = [8, 1], strides = [1, 1]} : vector<8x16xf32> to vector<8x1xf32>
    %400 = vector.broadcast %399 : vector<8x1xf32> to vector<8x80xf32>
    %401 = arith.cmpf oeq, %400, %316 : vector<8x80xf32>
    %402 = arith.extui %401 : vector<8x80xi1> to vector<8x80xi32>
    %403 = arith.sitofp %402 : vector<8x80xi32> to vector<8x80xf32>
    %404 = vector.extract_strided_slice %283 {offsets = [0, 1], sizes = [8, 1], strides = [1, 1]} : vector<8x16xf32> to vector<8x1xf32>
    %405 = vector.broadcast %404 : vector<8x1xf32> to vector<8x80xf32>
    %406 = arith.mulf %403, %405 : vector<8x80xf32>
    %407 = arith.addf %398, %406 : vector<8x80xf32>
    %408 = vector.extract_strided_slice %281 {offsets = [0, 2], sizes = [8, 1], strides = [1, 1]} : vector<8x16xf32> to vector<8x1xf32>
    %409 = vector.broadcast %408 : vector<8x1xf32> to vector<8x80xf32>
    %410 = arith.cmpf oeq, %409, %316 : vector<8x80xf32>
    %411 = arith.extui %410 : vector<8x80xi1> to vector<8x80xi32>
    %412 = arith.sitofp %411 : vector<8x80xi32> to vector<8x80xf32>
    %413 = vector.extract_strided_slice %283 {offsets = [0, 2], sizes = [8, 1], strides = [1, 1]} : vector<8x16xf32> to vector<8x1xf32>
    %414 = vector.broadcast %413 : vector<8x1xf32> to vector<8x80xf32>
    %415 = arith.mulf %412, %414 : vector<8x80xf32>
    %416 = arith.addf %407, %415 : vector<8x80xf32>
    %417 = vector.extract_strided_slice %281 {offsets = [0, 3], sizes = [8, 1], strides = [1, 1]} : vector<8x16xf32> to vector<8x1xf32>
    %418 = vector.broadcast %417 : vector<8x1xf32> to vector<8x80xf32>
    %419 = arith.cmpf oeq, %418, %316 : vector<8x80xf32>
    %420 = arith.extui %419 : vector<8x80xi1> to vector<8x80xi32>
    %421 = arith.sitofp %420 : vector<8x80xi32> to vector<8x80xf32>
    %422 = vector.extract_strided_slice %283 {offsets = [0, 3], sizes = [8, 1], strides = [1, 1]} : vector<8x16xf32> to vector<8x1xf32>
    %423 = vector.broadcast %422 : vector<8x1xf32> to vector<8x80xf32>
    %424 = arith.mulf %421, %423 : vector<8x80xf32>
    %425 = arith.addf %416, %424 : vector<8x80xf32>
    %426 = vector.extract_strided_slice %313 {offsets = [0, 0], sizes = [8, 1], strides = [1, 1]} : vector<8x16xf32> to vector<8x1xf32>
    %427 = vector.broadcast %426 : vector<8x1xf32> to vector<8x80xf32>
    %428 = arith.cmpf oeq, %427, %316 : vector<8x80xf32>
    %429 = arith.extui %428 : vector<8x80xi1> to vector<8x80xi32>
    %430 = arith.sitofp %429 : vector<8x80xi32> to vector<8x80xf32>
    %431 = vector.extract_strided_slice %315 {offsets = [0, 0], sizes = [8, 1], strides = [1, 1]} : vector<8x16xf32> to vector<8x1xf32>
    %432 = vector.broadcast %431 : vector<8x1xf32> to vector<8x80xf32>
    %433 = arith.mulf %430, %432 : vector<8x80xf32>
    %434 = arith.addf %425, %433 : vector<8x80xf32>
    %435 = vector.extract_strided_slice %313 {offsets = [0, 1], sizes = [8, 1], strides = [1, 1]} : vector<8x16xf32> to vector<8x1xf32>
    %436 = vector.broadcast %435 : vector<8x1xf32> to vector<8x80xf32>
    %437 = arith.cmpf oeq, %436, %316 : vector<8x80xf32>
    %438 = arith.extui %437 : vector<8x80xi1> to vector<8x80xi32>
    %439 = arith.sitofp %438 : vector<8x80xi32> to vector<8x80xf32>
    %440 = vector.extract_strided_slice %315 {offsets = [0, 1], sizes = [8, 1], strides = [1, 1]} : vector<8x16xf32> to vector<8x1xf32>
    %441 = vector.broadcast %440 : vector<8x1xf32> to vector<8x80xf32>
    %442 = arith.mulf %439, %441 : vector<8x80xf32>
    %443 = arith.addf %434, %442 : vector<8x80xf32>
    %444 = vector.extract_strided_slice %313 {offsets = [0, 2], sizes = [8, 1], strides = [1, 1]} : vector<8x16xf32> to vector<8x1xf32>
    %445 = vector.broadcast %444 : vector<8x1xf32> to vector<8x80xf32>
    %446 = arith.cmpf oeq, %445, %316 : vector<8x80xf32>
    %447 = arith.extui %446 : vector<8x80xi1> to vector<8x80xi32>
    %448 = arith.sitofp %447 : vector<8x80xi32> to vector<8x80xf32>
    %449 = vector.extract_strided_slice %315 {offsets = [0, 2], sizes = [8, 1], strides = [1, 1]} : vector<8x16xf32> to vector<8x1xf32>
    %450 = vector.broadcast %449 : vector<8x1xf32> to vector<8x80xf32>
    %451 = arith.mulf %448, %450 : vector<8x80xf32>
    %452 = arith.addf %443, %451 : vector<8x80xf32>
    %453 = vector.extract_strided_slice %313 {offsets = [0, 3], sizes = [8, 1], strides = [1, 1]} : vector<8x16xf32> to vector<8x1xf32>
    %454 = vector.broadcast %453 : vector<8x1xf32> to vector<8x80xf32>
    %455 = arith.cmpf oeq, %454, %316 : vector<8x80xf32>
    %456 = arith.extui %455 : vector<8x80xi1> to vector<8x80xi32>
    %457 = arith.sitofp %456 : vector<8x80xi32> to vector<8x80xf32>
    %458 = vector.extract_strided_slice %315 {offsets = [0, 3], sizes = [8, 1], strides = [1, 1]} : vector<8x16xf32> to vector<8x1xf32>
    %459 = vector.broadcast %458 : vector<8x1xf32> to vector<8x80xf32>
    %460 = arith.mulf %457, %459 : vector<8x80xf32>
    %461 = arith.addf %452, %460 : vector<8x80xf32>
    %462 = vector.extract_strided_slice %126 {offsets = [0, 0], sizes = [80, 8], strides = [1, 1]} : vector<80x32xf32> to vector<80x8xf32>
    %cst_114 = arith.constant dense<0.000000e+00> : vector<8x8xf32>
    %463 = tpu.matmul %461, %462, %cst_114 {dimension_numbers = #tpu.dot_dimension_numbers<[1], [0], [0], [1], [0, 0, 1, 1], [], []>} : vector<8x80xf32>, vector<80x8xf32>, vector<8x8xf32> -> vector<8x8xf32>
    %cst_115 = arith.constant 0.000000e+00 : f32
    %464 = vector.broadcast %cst_115 : f32 to vector<8x80xf32>
    %465 = vector.extract_strided_slice %217 {offsets = [0, 4], sizes = [8, 1], strides = [1, 1]} : vector<8x16xf32> to vector<8x1xf32>
    %466 = vector.broadcast %465 : vector<8x1xf32> to vector<8x80xf32>
    %467 = arith.cmpf oeq, %466, %316 : vector<8x80xf32>
    %468 = arith.extui %467 : vector<8x80xi1> to vector<8x80xi32>
    %469 = arith.sitofp %468 : vector<8x80xi32> to vector<8x80xf32>
    %470 = vector.extract_strided_slice %219 {offsets = [0, 4], sizes = [8, 1], strides = [1, 1]} : vector<8x16xf32> to vector<8x1xf32>
    %471 = vector.broadcast %470 : vector<8x1xf32> to vector<8x80xf32>
    %472 = arith.mulf %469, %471 : vector<8x80xf32>
    %473 = arith.addf %464, %472 : vector<8x80xf32>
    %474 = vector.extract_strided_slice %217 {offsets = [0, 5], sizes = [8, 1], strides = [1, 1]} : vector<8x16xf32> to vector<8x1xf32>
    %475 = vector.broadcast %474 : vector<8x1xf32> to vector<8x80xf32>
    %476 = arith.cmpf oeq, %475, %316 : vector<8x80xf32>
    %477 = arith.extui %476 : vector<8x80xi1> to vector<8x80xi32>
    %478 = arith.sitofp %477 : vector<8x80xi32> to vector<8x80xf32>
    %479 = vector.extract_strided_slice %219 {offsets = [0, 5], sizes = [8, 1], strides = [1, 1]} : vector<8x16xf32> to vector<8x1xf32>
    %480 = vector.broadcast %479 : vector<8x1xf32> to vector<8x80xf32>
    %481 = arith.mulf %478, %480 : vector<8x80xf32>
    %482 = arith.addf %473, %481 : vector<8x80xf32>
    %483 = vector.extract_strided_slice %217 {offsets = [0, 6], sizes = [8, 1], strides = [1, 1]} : vector<8x16xf32> to vector<8x1xf32>
    %484 = vector.broadcast %483 : vector<8x1xf32> to vector<8x80xf32>
    %485 = arith.cmpf oeq, %484, %316 : vector<8x80xf32>
    %486 = arith.extui %485 : vector<8x80xi1> to vector<8x80xi32>
    %487 = arith.sitofp %486 : vector<8x80xi32> to vector<8x80xf32>
    %488 = vector.extract_strided_slice %219 {offsets = [0, 6], sizes = [8, 1], strides = [1, 1]} : vector<8x16xf32> to vector<8x1xf32>
    %489 = vector.broadcast %488 : vector<8x1xf32> to vector<8x80xf32>
    %490 = arith.mulf %487, %489 : vector<8x80xf32>
    %491 = arith.addf %482, %490 : vector<8x80xf32>
    %492 = vector.extract_strided_slice %217 {offsets = [0, 7], sizes = [8, 1], strides = [1, 1]} : vector<8x16xf32> to vector<8x1xf32>
    %493 = vector.broadcast %492 : vector<8x1xf32> to vector<8x80xf32>
    %494 = arith.cmpf oeq, %493, %316 : vector<8x80xf32>
    %495 = arith.extui %494 : vector<8x80xi1> to vector<8x80xi32>
    %496 = arith.sitofp %495 : vector<8x80xi32> to vector<8x80xf32>
    %497 = vector.extract_strided_slice %219 {offsets = [0, 7], sizes = [8, 1], strides = [1, 1]} : vector<8x16xf32> to vector<8x1xf32>
    %498 = vector.broadcast %497 : vector<8x1xf32> to vector<8x80xf32>
    %499 = arith.mulf %496, %498 : vector<8x80xf32>
    %500 = arith.addf %491, %499 : vector<8x80xf32>
    %501 = vector.extract_strided_slice %249 {offsets = [0, 4], sizes = [8, 1], strides = [1, 1]} : vector<8x16xf32> to vector<8x1xf32>
    %502 = vector.broadcast %501 : vector<8x1xf32> to vector<8x80xf32>
    %503 = arith.cmpf oeq, %502, %316 : vector<8x80xf32>
    %504 = arith.extui %503 : vector<8x80xi1> to vector<8x80xi32>
    %505 = arith.sitofp %504 : vector<8x80xi32> to vector<8x80xf32>
    %506 = vector.extract_strided_slice %251 {offsets = [0, 4], sizes = [8, 1], strides = [1, 1]} : vector<8x16xf32> to vector<8x1xf32>
    %507 = vector.broadcast %506 : vector<8x1xf32> to vector<8x80xf32>
    %508 = arith.mulf %505, %507 : vector<8x80xf32>
    %509 = arith.addf %500, %508 : vector<8x80xf32>
    %510 = vector.extract_strided_slice %249 {offsets = [0, 5], sizes = [8, 1], strides = [1, 1]} : vector<8x16xf32> to vector<8x1xf32>
    %511 = vector.broadcast %510 : vector<8x1xf32> to vector<8x80xf32>
    %512 = arith.cmpf oeq, %511, %316 : vector<8x80xf32>
    %513 = arith.extui %512 : vector<8x80xi1> to vector<8x80xi32>
    %514 = arith.sitofp %513 : vector<8x80xi32> to vector<8x80xf32>
    %515 = vector.extract_strided_slice %251 {offsets = [0, 5], sizes = [8, 1], strides = [1, 1]} : vector<8x16xf32> to vector<8x1xf32>
    %516 = vector.broadcast %515 : vector<8x1xf32> to vector<8x80xf32>
    %517 = arith.mulf %514, %516 : vector<8x80xf32>
    %518 = arith.addf %509, %517 : vector<8x80xf32>
    %519 = vector.extract_strided_slice %249 {offsets = [0, 6], sizes = [8, 1], strides = [1, 1]} : vector<8x16xf32> to vector<8x1xf32>
    %520 = vector.broadcast %519 : vector<8x1xf32> to vector<8x80xf32>
    %521 = arith.cmpf oeq, %520, %316 : vector<8x80xf32>
    %522 = arith.extui %521 : vector<8x80xi1> to vector<8x80xi32>
    %523 = arith.sitofp %522 : vector<8x80xi32> to vector<8x80xf32>
    %524 = vector.extract_strided_slice %251 {offsets = [0, 6], sizes = [8, 1], strides = [1, 1]} : vector<8x16xf32> to vector<8x1xf32>
    %525 = vector.broadcast %524 : vector<8x1xf32> to vector<8x80xf32>
    %526 = arith.mulf %523, %525 : vector<8x80xf32>
    %527 = arith.addf %518, %526 : vector<8x80xf32>
    %528 = vector.extract_strided_slice %249 {offsets = [0, 7], sizes = [8, 1], strides = [1, 1]} : vector<8x16xf32> to vector<8x1xf32>
    %529 = vector.broadcast %528 : vector<8x1xf32> to vector<8x80xf32>
    %530 = arith.cmpf oeq, %529, %316 : vector<8x80xf32>
    %531 = arith.extui %530 : vector<8x80xi1> to vector<8x80xi32>
    %532 = arith.sitofp %531 : vector<8x80xi32> to vector<8x80xf32>
    %533 = vector.extract_strided_slice %251 {offsets = [0, 7], sizes = [8, 1], strides = [1, 1]} : vector<8x16xf32> to vector<8x1xf32>
    %534 = vector.broadcast %533 : vector<8x1xf32> to vector<8x80xf32>
    %535 = arith.mulf %532, %534 : vector<8x80xf32>
    %536 = arith.addf %527, %535 : vector<8x80xf32>
    %537 = vector.extract_strided_slice %281 {offsets = [0, 4], sizes = [8, 1], strides = [1, 1]} : vector<8x16xf32> to vector<8x1xf32>
    %538 = vector.broadcast %537 : vector<8x1xf32> to vector<8x80xf32>
    %539 = arith.cmpf oeq, %538, %316 : vector<8x80xf32>
    %540 = arith.extui %539 : vector<8x80xi1> to vector<8x80xi32>
    %541 = arith.sitofp %540 : vector<8x80xi32> to vector<8x80xf32>
    %542 = vector.extract_strided_slice %283 {offsets = [0, 4], sizes = [8, 1], strides = [1, 1]} : vector<8x16xf32> to vector<8x1xf32>
    %543 = vector.broadcast %542 : vector<8x1xf32> to vector<8x80xf32>
    %544 = arith.mulf %541, %543 : vector<8x80xf32>
    %545 = arith.addf %536, %544 : vector<8x80xf32>
    %546 = vector.extract_strided_slice %281 {offsets = [0, 5], sizes = [8, 1], strides = [1, 1]} : vector<8x16xf32> to vector<8x1xf32>
    %547 = vector.broadcast %546 : vector<8x1xf32> to vector<8x80xf32>
    %548 = arith.cmpf oeq, %547, %316 : vector<8x80xf32>
    %549 = arith.extui %548 : vector<8x80xi1> to vector<8x80xi32>
    %550 = arith.sitofp %549 : vector<8x80xi32> to vector<8x80xf32>
    %551 = vector.extract_strided_slice %283 {offsets = [0, 5], sizes = [8, 1], strides = [1, 1]} : vector<8x16xf32> to vector<8x1xf32>
    %552 = vector.broadcast %551 : vector<8x1xf32> to vector<8x80xf32>
    %553 = arith.mulf %550, %552 : vector<8x80xf32>
    %554 = arith.addf %545, %553 : vector<8x80xf32>
    %555 = vector.extract_strided_slice %281 {offsets = [0, 6], sizes = [8, 1], strides = [1, 1]} : vector<8x16xf32> to vector<8x1xf32>
    %556 = vector.broadcast %555 : vector<8x1xf32> to vector<8x80xf32>
    %557 = arith.cmpf oeq, %556, %316 : vector<8x80xf32>
    %558 = arith.extui %557 : vector<8x80xi1> to vector<8x80xi32>
    %559 = arith.sitofp %558 : vector<8x80xi32> to vector<8x80xf32>
    %560 = vector.extract_strided_slice %283 {offsets = [0, 6], sizes = [8, 1], strides = [1, 1]} : vector<8x16xf32> to vector<8x1xf32>
    %561 = vector.broadcast %560 : vector<8x1xf32> to vector<8x80xf32>
    %562 = arith.mulf %559, %561 : vector<8x80xf32>
    %563 = arith.addf %554, %562 : vector<8x80xf32>
    %564 = vector.extract_strided_slice %281 {offsets = [0, 7], sizes = [8, 1], strides = [1, 1]} : vector<8x16xf32> to vector<8x1xf32>
    %565 = vector.broadcast %564 : vector<8x1xf32> to vector<8x80xf32>
    %566 = arith.cmpf oeq, %565, %316 : vector<8x80xf32>
    %567 = arith.extui %566 : vector<8x80xi1> to vector<8x80xi32>
    %568 = arith.sitofp %567 : vector<8x80xi32> to vector<8x80xf32>
    %569 = vector.extract_strided_slice %283 {offsets = [0, 7], sizes = [8, 1], strides = [1, 1]} : vector<8x16xf32> to vector<8x1xf32>
    %570 = vector.broadcast %569 : vector<8x1xf32> to vector<8x80xf32>
    %571 = arith.mulf %568, %570 : vector<8x80xf32>
    %572 = arith.addf %563, %571 : vector<8x80xf32>
    %573 = vector.extract_strided_slice %313 {offsets = [0, 4], sizes = [8, 1], strides = [1, 1]} : vector<8x16xf32> to vector<8x1xf32>
    %574 = vector.broadcast %573 : vector<8x1xf32> to vector<8x80xf32>
    %575 = arith.cmpf oeq, %574, %316 : vector<8x80xf32>
    %576 = arith.extui %575 : vector<8x80xi1> to vector<8x80xi32>
    %577 = arith.sitofp %576 : vector<8x80xi32> to vector<8x80xf32>
    %578 = vector.extract_strided_slice %315 {offsets = [0, 4], sizes = [8, 1], strides = [1, 1]} : vector<8x16xf32> to vector<8x1xf32>
    %579 = vector.broadcast %578 : vector<8x1xf32> to vector<8x80xf32>
    %580 = arith.mulf %577, %579 : vector<8x80xf32>
    %581 = arith.addf %572, %580 : vector<8x80xf32>
    %582 = vector.extract_strided_slice %313 {offsets = [0, 5], sizes = [8, 1], strides = [1, 1]} : vector<8x16xf32> to vector<8x1xf32>
    %583 = vector.broadcast %582 : vector<8x1xf32> to vector<8x80xf32>
    %584 = arith.cmpf oeq, %583, %316 : vector<8x80xf32>
    %585 = arith.extui %584 : vector<8x80xi1> to vector<8x80xi32>
    %586 = arith.sitofp %585 : vector<8x80xi32> to vector<8x80xf32>
    %587 = vector.extract_strided_slice %315 {offsets = [0, 5], sizes = [8, 1], strides = [1, 1]} : vector<8x16xf32> to vector<8x1xf32>
    %588 = vector.broadcast %587 : vector<8x1xf32> to vector<8x80xf32>
    %589 = arith.mulf %586, %588 : vector<8x80xf32>
    %590 = arith.addf %581, %589 : vector<8x80xf32>
    %591 = vector.extract_strided_slice %313 {offsets = [0, 6], sizes = [8, 1], strides = [1, 1]} : vector<8x16xf32> to vector<8x1xf32>
    %592 = vector.broadcast %591 : vector<8x1xf32> to vector<8x80xf32>
    %593 = arith.cmpf oeq, %592, %316 : vector<8x80xf32>
    %594 = arith.extui %593 : vector<8x80xi1> to vector<8x80xi32>
    %595 = arith.sitofp %594 : vector<8x80xi32> to vector<8x80xf32>
    %596 = vector.extract_strided_slice %315 {offsets = [0, 6], sizes = [8, 1], strides = [1, 1]} : vector<8x16xf32> to vector<8x1xf32>
    %597 = vector.broadcast %596 : vector<8x1xf32> to vector<8x80xf32>
    %598 = arith.mulf %595, %597 : vector<8x80xf32>
    %599 = arith.addf %590, %598 : vector<8x80xf32>
    %600 = vector.extract_strided_slice %313 {offsets = [0, 7], sizes = [8, 1], strides = [1, 1]} : vector<8x16xf32> to vector<8x1xf32>
    %601 = vector.broadcast %600 : vector<8x1xf32> to vector<8x80xf32>
    %602 = arith.cmpf oeq, %601, %316 : vector<8x80xf32>
    %603 = arith.extui %602 : vector<8x80xi1> to vector<8x80xi32>
    %604 = arith.sitofp %603 : vector<8x80xi32> to vector<8x80xf32>
    %605 = vector.extract_strided_slice %315 {offsets = [0, 7], sizes = [8, 1], strides = [1, 1]} : vector<8x16xf32> to vector<8x1xf32>
    %606 = vector.broadcast %605 : vector<8x1xf32> to vector<8x80xf32>
    %607 = arith.mulf %604, %606 : vector<8x80xf32>
    %608 = arith.addf %599, %607 : vector<8x80xf32>
    %609 = vector.extract_strided_slice %126 {offsets = [0, 8], sizes = [80, 8], strides = [1, 1]} : vector<80x32xf32> to vector<80x8xf32>
    %cst_116 = arith.constant dense<0.000000e+00> : vector<8x8xf32>
    %610 = tpu.matmul %608, %609, %cst_116 {dimension_numbers = #tpu.dot_dimension_numbers<[1], [0], [0], [1], [0, 0, 1, 1], [], []>} : vector<8x80xf32>, vector<80x8xf32>, vector<8x8xf32> -> vector<8x8xf32>
    %cst_117 = arith.constant 0.000000e+00 : f32
    %611 = vector.broadcast %cst_117 : f32 to vector<8x80xf32>
    %612 = vector.extract_strided_slice %217 {offsets = [0, 8], sizes = [8, 1], strides = [1, 1]} : vector<8x16xf32> to vector<8x1xf32>
    %613 = vector.broadcast %612 : vector<8x1xf32> to vector<8x80xf32>
    %614 = arith.cmpf oeq, %613, %316 : vector<8x80xf32>
    %615 = arith.extui %614 : vector<8x80xi1> to vector<8x80xi32>
    %616 = arith.sitofp %615 : vector<8x80xi32> to vector<8x80xf32>
    %617 = vector.extract_strided_slice %219 {offsets = [0, 8], sizes = [8, 1], strides = [1, 1]} : vector<8x16xf32> to vector<8x1xf32>
    %618 = vector.broadcast %617 : vector<8x1xf32> to vector<8x80xf32>
    %619 = arith.mulf %616, %618 : vector<8x80xf32>
    %620 = arith.addf %611, %619 : vector<8x80xf32>
    %621 = vector.extract_strided_slice %217 {offsets = [0, 9], sizes = [8, 1], strides = [1, 1]} : vector<8x16xf32> to vector<8x1xf32>
    %622 = vector.broadcast %621 : vector<8x1xf32> to vector<8x80xf32>
    %623 = arith.cmpf oeq, %622, %316 : vector<8x80xf32>
    %624 = arith.extui %623 : vector<8x80xi1> to vector<8x80xi32>
    %625 = arith.sitofp %624 : vector<8x80xi32> to vector<8x80xf32>
    %626 = vector.extract_strided_slice %219 {offsets = [0, 9], sizes = [8, 1], strides = [1, 1]} : vector<8x16xf32> to vector<8x1xf32>
    %627 = vector.broadcast %626 : vector<8x1xf32> to vector<8x80xf32>
    %628 = arith.mulf %625, %627 : vector<8x80xf32>
    %629 = arith.addf %620, %628 : vector<8x80xf32>
    %630 = vector.extract_strided_slice %217 {offsets = [0, 10], sizes = [8, 1], strides = [1, 1]} : vector<8x16xf32> to vector<8x1xf32>
    %631 = vector.broadcast %630 : vector<8x1xf32> to vector<8x80xf32>
    %632 = arith.cmpf oeq, %631, %316 : vector<8x80xf32>
    %633 = arith.extui %632 : vector<8x80xi1> to vector<8x80xi32>
    %634 = arith.sitofp %633 : vector<8x80xi32> to vector<8x80xf32>
    %635 = vector.extract_strided_slice %219 {offsets = [0, 10], sizes = [8, 1], strides = [1, 1]} : vector<8x16xf32> to vector<8x1xf32>
    %636 = vector.broadcast %635 : vector<8x1xf32> to vector<8x80xf32>
    %637 = arith.mulf %634, %636 : vector<8x80xf32>
    %638 = arith.addf %629, %637 : vector<8x80xf32>
    %639 = vector.extract_strided_slice %217 {offsets = [0, 11], sizes = [8, 1], strides = [1, 1]} : vector<8x16xf32> to vector<8x1xf32>
    %640 = vector.broadcast %639 : vector<8x1xf32> to vector<8x80xf32>
    %641 = arith.cmpf oeq, %640, %316 : vector<8x80xf32>
    %642 = arith.extui %641 : vector<8x80xi1> to vector<8x80xi32>
    %643 = arith.sitofp %642 : vector<8x80xi32> to vector<8x80xf32>
    %644 = vector.extract_strided_slice %219 {offsets = [0, 11], sizes = [8, 1], strides = [1, 1]} : vector<8x16xf32> to vector<8x1xf32>
    %645 = vector.broadcast %644 : vector<8x1xf32> to vector<8x80xf32>
    %646 = arith.mulf %643, %645 : vector<8x80xf32>
    %647 = arith.addf %638, %646 : vector<8x80xf32>
    %648 = vector.extract_strided_slice %249 {offsets = [0, 8], sizes = [8, 1], strides = [1, 1]} : vector<8x16xf32> to vector<8x1xf32>
    %649 = vector.broadcast %648 : vector<8x1xf32> to vector<8x80xf32>
    %650 = arith.cmpf oeq, %649, %316 : vector<8x80xf32>
    %651 = arith.extui %650 : vector<8x80xi1> to vector<8x80xi32>
    %652 = arith.sitofp %651 : vector<8x80xi32> to vector<8x80xf32>
    %653 = vector.extract_strided_slice %251 {offsets = [0, 8], sizes = [8, 1], strides = [1, 1]} : vector<8x16xf32> to vector<8x1xf32>
    %654 = vector.broadcast %653 : vector<8x1xf32> to vector<8x80xf32>
    %655 = arith.mulf %652, %654 : vector<8x80xf32>
    %656 = arith.addf %647, %655 : vector<8x80xf32>
    %657 = vector.extract_strided_slice %249 {offsets = [0, 9], sizes = [8, 1], strides = [1, 1]} : vector<8x16xf32> to vector<8x1xf32>
    %658 = vector.broadcast %657 : vector<8x1xf32> to vector<8x80xf32>
    %659 = arith.cmpf oeq, %658, %316 : vector<8x80xf32>
    %660 = arith.extui %659 : vector<8x80xi1> to vector<8x80xi32>
    %661 = arith.sitofp %660 : vector<8x80xi32> to vector<8x80xf32>
    %662 = vector.extract_strided_slice %251 {offsets = [0, 9], sizes = [8, 1], strides = [1, 1]} : vector<8x16xf32> to vector<8x1xf32>
    %663 = vector.broadcast %662 : vector<8x1xf32> to vector<8x80xf32>
    %664 = arith.mulf %661, %663 : vector<8x80xf32>
    %665 = arith.addf %656, %664 : vector<8x80xf32>
    %666 = vector.extract_strided_slice %249 {offsets = [0, 10], sizes = [8, 1], strides = [1, 1]} : vector<8x16xf32> to vector<8x1xf32>
    %667 = vector.broadcast %666 : vector<8x1xf32> to vector<8x80xf32>
    %668 = arith.cmpf oeq, %667, %316 : vector<8x80xf32>
    %669 = arith.extui %668 : vector<8x80xi1> to vector<8x80xi32>
    %670 = arith.sitofp %669 : vector<8x80xi32> to vector<8x80xf32>
    %671 = vector.extract_strided_slice %251 {offsets = [0, 10], sizes = [8, 1], strides = [1, 1]} : vector<8x16xf32> to vector<8x1xf32>
    %672 = vector.broadcast %671 : vector<8x1xf32> to vector<8x80xf32>
    %673 = arith.mulf %670, %672 : vector<8x80xf32>
    %674 = arith.addf %665, %673 : vector<8x80xf32>
    %675 = vector.extract_strided_slice %249 {offsets = [0, 11], sizes = [8, 1], strides = [1, 1]} : vector<8x16xf32> to vector<8x1xf32>
    %676 = vector.broadcast %675 : vector<8x1xf32> to vector<8x80xf32>
    %677 = arith.cmpf oeq, %676, %316 : vector<8x80xf32>
    %678 = arith.extui %677 : vector<8x80xi1> to vector<8x80xi32>
    %679 = arith.sitofp %678 : vector<8x80xi32> to vector<8x80xf32>
    %680 = vector.extract_strided_slice %251 {offsets = [0, 11], sizes = [8, 1], strides = [1, 1]} : vector<8x16xf32> to vector<8x1xf32>
    %681 = vector.broadcast %680 : vector<8x1xf32> to vector<8x80xf32>
    %682 = arith.mulf %679, %681 : vector<8x80xf32>
    %683 = arith.addf %674, %682 : vector<8x80xf32>
    %684 = vector.extract_strided_slice %281 {offsets = [0, 8], sizes = [8, 1], strides = [1, 1]} : vector<8x16xf32> to vector<8x1xf32>
    %685 = vector.broadcast %684 : vector<8x1xf32> to vector<8x80xf32>
    %686 = arith.cmpf oeq, %685, %316 : vector<8x80xf32>
    %687 = arith.extui %686 : vector<8x80xi1> to vector<8x80xi32>
    %688 = arith.sitofp %687 : vector<8x80xi32> to vector<8x80xf32>
    %689 = vector.extract_strided_slice %283 {offsets = [0, 8], sizes = [8, 1], strides = [1, 1]} : vector<8x16xf32> to vector<8x1xf32>
    %690 = vector.broadcast %689 : vector<8x1xf32> to vector<8x80xf32>
    %691 = arith.mulf %688, %690 : vector<8x80xf32>
    %692 = arith.addf %683, %691 : vector<8x80xf32>
    %693 = vector.extract_strided_slice %281 {offsets = [0, 9], sizes = [8, 1], strides = [1, 1]} : vector<8x16xf32> to vector<8x1xf32>
    %694 = vector.broadcast %693 : vector<8x1xf32> to vector<8x80xf32>
    %695 = arith.cmpf oeq, %694, %316 : vector<8x80xf32>
    %696 = arith.extui %695 : vector<8x80xi1> to vector<8x80xi32>
    %697 = arith.sitofp %696 : vector<8x80xi32> to vector<8x80xf32>
    %698 = vector.extract_strided_slice %283 {offsets = [0, 9], sizes = [8, 1], strides = [1, 1]} : vector<8x16xf32> to vector<8x1xf32>
    %699 = vector.broadcast %698 : vector<8x1xf32> to vector<8x80xf32>
    %700 = arith.mulf %697, %699 : vector<8x80xf32>
    %701 = arith.addf %692, %700 : vector<8x80xf32>
    %702 = vector.extract_strided_slice %281 {offsets = [0, 10], sizes = [8, 1], strides = [1, 1]} : vector<8x16xf32> to vector<8x1xf32>
    %703 = vector.broadcast %702 : vector<8x1xf32> to vector<8x80xf32>
    %704 = arith.cmpf oeq, %703, %316 : vector<8x80xf32>
    %705 = arith.extui %704 : vector<8x80xi1> to vector<8x80xi32>
    %706 = arith.sitofp %705 : vector<8x80xi32> to vector<8x80xf32>
    %707 = vector.extract_strided_slice %283 {offsets = [0, 10], sizes = [8, 1], strides = [1, 1]} : vector<8x16xf32> to vector<8x1xf32>
    %708 = vector.broadcast %707 : vector<8x1xf32> to vector<8x80xf32>
    %709 = arith.mulf %706, %708 : vector<8x80xf32>
    %710 = arith.addf %701, %709 : vector<8x80xf32>
    %711 = vector.extract_strided_slice %281 {offsets = [0, 11], sizes = [8, 1], strides = [1, 1]} : vector<8x16xf32> to vector<8x1xf32>
    %712 = vector.broadcast %711 : vector<8x1xf32> to vector<8x80xf32>
    %713 = arith.cmpf oeq, %712, %316 : vector<8x80xf32>
    %714 = arith.extui %713 : vector<8x80xi1> to vector<8x80xi32>
    %715 = arith.sitofp %714 : vector<8x80xi32> to vector<8x80xf32>
    %716 = vector.extract_strided_slice %283 {offsets = [0, 11], sizes = [8, 1], strides = [1, 1]} : vector<8x16xf32> to vector<8x1xf32>
    %717 = vector.broadcast %716 : vector<8x1xf32> to vector<8x80xf32>
    %718 = arith.mulf %715, %717 : vector<8x80xf32>
    %719 = arith.addf %710, %718 : vector<8x80xf32>
    %720 = vector.extract_strided_slice %313 {offsets = [0, 8], sizes = [8, 1], strides = [1, 1]} : vector<8x16xf32> to vector<8x1xf32>
    %721 = vector.broadcast %720 : vector<8x1xf32> to vector<8x80xf32>
    %722 = arith.cmpf oeq, %721, %316 : vector<8x80xf32>
    %723 = arith.extui %722 : vector<8x80xi1> to vector<8x80xi32>
    %724 = arith.sitofp %723 : vector<8x80xi32> to vector<8x80xf32>
    %725 = vector.extract_strided_slice %315 {offsets = [0, 8], sizes = [8, 1], strides = [1, 1]} : vector<8x16xf32> to vector<8x1xf32>
    %726 = vector.broadcast %725 : vector<8x1xf32> to vector<8x80xf32>
    %727 = arith.mulf %724, %726 : vector<8x80xf32>
    %728 = arith.addf %719, %727 : vector<8x80xf32>
    %729 = vector.extract_strided_slice %313 {offsets = [0, 9], sizes = [8, 1], strides = [1, 1]} : vector<8x16xf32> to vector<8x1xf32>
    %730 = vector.broadcast %729 : vector<8x1xf32> to vector<8x80xf32>
    %731 = arith.cmpf oeq, %730, %316 : vector<8x80xf32>
    %732 = arith.extui %731 : vector<8x80xi1> to vector<8x80xi32>
    %733 = arith.sitofp %732 : vector<8x80xi32> to vector<8x80xf32>
    %734 = vector.extract_strided_slice %315 {offsets = [0, 9], sizes = [8, 1], strides = [1, 1]} : vector<8x16xf32> to vector<8x1xf32>
    %735 = vector.broadcast %734 : vector<8x1xf32> to vector<8x80xf32>
    %736 = arith.mulf %733, %735 : vector<8x80xf32>
    %737 = arith.addf %728, %736 : vector<8x80xf32>
    %738 = vector.extract_strided_slice %313 {offsets = [0, 10], sizes = [8, 1], strides = [1, 1]} : vector<8x16xf32> to vector<8x1xf32>
    %739 = vector.broadcast %738 : vector<8x1xf32> to vector<8x80xf32>
    %740 = arith.cmpf oeq, %739, %316 : vector<8x80xf32>
    %741 = arith.extui %740 : vector<8x80xi1> to vector<8x80xi32>
    %742 = arith.sitofp %741 : vector<8x80xi32> to vector<8x80xf32>
    %743 = vector.extract_strided_slice %315 {offsets = [0, 10], sizes = [8, 1], strides = [1, 1]} : vector<8x16xf32> to vector<8x1xf32>
    %744 = vector.broadcast %743 : vector<8x1xf32> to vector<8x80xf32>
    %745 = arith.mulf %742, %744 : vector<8x80xf32>
    %746 = arith.addf %737, %745 : vector<8x80xf32>
    %747 = vector.extract_strided_slice %313 {offsets = [0, 11], sizes = [8, 1], strides = [1, 1]} : vector<8x16xf32> to vector<8x1xf32>
    %748 = vector.broadcast %747 : vector<8x1xf32> to vector<8x80xf32>
    %749 = arith.cmpf oeq, %748, %316 : vector<8x80xf32>
    %750 = arith.extui %749 : vector<8x80xi1> to vector<8x80xi32>
    %751 = arith.sitofp %750 : vector<8x80xi32> to vector<8x80xf32>
    %752 = vector.extract_strided_slice %315 {offsets = [0, 11], sizes = [8, 1], strides = [1, 1]} : vector<8x16xf32> to vector<8x1xf32>
    %753 = vector.broadcast %752 : vector<8x1xf32> to vector<8x80xf32>
    %754 = arith.mulf %751, %753 : vector<8x80xf32>
    %755 = arith.addf %746, %754 : vector<8x80xf32>
    %756 = vector.extract_strided_slice %126 {offsets = [0, 16], sizes = [80, 8], strides = [1, 1]} : vector<80x32xf32> to vector<80x8xf32>
    %cst_118 = arith.constant dense<0.000000e+00> : vector<8x8xf32>
    %757 = tpu.matmul %755, %756, %cst_118 {dimension_numbers = #tpu.dot_dimension_numbers<[1], [0], [0], [1], [0, 0, 1, 1], [], []>} : vector<8x80xf32>, vector<80x8xf32>, vector<8x8xf32> -> vector<8x8xf32>
    %cst_119 = arith.constant 0.000000e+00 : f32
    %758 = vector.broadcast %cst_119 : f32 to vector<8x80xf32>
    %759 = vector.extract_strided_slice %217 {offsets = [0, 12], sizes = [8, 1], strides = [1, 1]} : vector<8x16xf32> to vector<8x1xf32>
    %760 = vector.broadcast %759 : vector<8x1xf32> to vector<8x80xf32>
    %761 = arith.cmpf oeq, %760, %316 : vector<8x80xf32>
    %762 = arith.extui %761 : vector<8x80xi1> to vector<8x80xi32>
    %763 = arith.sitofp %762 : vector<8x80xi32> to vector<8x80xf32>
    %764 = vector.extract_strided_slice %219 {offsets = [0, 12], sizes = [8, 1], strides = [1, 1]} : vector<8x16xf32> to vector<8x1xf32>
    %765 = vector.broadcast %764 : vector<8x1xf32> to vector<8x80xf32>
    %766 = arith.mulf %763, %765 : vector<8x80xf32>
    %767 = arith.addf %758, %766 : vector<8x80xf32>
    %768 = vector.extract_strided_slice %217 {offsets = [0, 13], sizes = [8, 1], strides = [1, 1]} : vector<8x16xf32> to vector<8x1xf32>
    %769 = vector.broadcast %768 : vector<8x1xf32> to vector<8x80xf32>
    %770 = arith.cmpf oeq, %769, %316 : vector<8x80xf32>
    %771 = arith.extui %770 : vector<8x80xi1> to vector<8x80xi32>
    %772 = arith.sitofp %771 : vector<8x80xi32> to vector<8x80xf32>
    %773 = vector.extract_strided_slice %219 {offsets = [0, 13], sizes = [8, 1], strides = [1, 1]} : vector<8x16xf32> to vector<8x1xf32>
    %774 = vector.broadcast %773 : vector<8x1xf32> to vector<8x80xf32>
    %775 = arith.mulf %772, %774 : vector<8x80xf32>
    %776 = arith.addf %767, %775 : vector<8x80xf32>
    %777 = vector.extract_strided_slice %217 {offsets = [0, 14], sizes = [8, 1], strides = [1, 1]} : vector<8x16xf32> to vector<8x1xf32>
    %778 = vector.broadcast %777 : vector<8x1xf32> to vector<8x80xf32>
    %779 = arith.cmpf oeq, %778, %316 : vector<8x80xf32>
    %780 = arith.extui %779 : vector<8x80xi1> to vector<8x80xi32>
    %781 = arith.sitofp %780 : vector<8x80xi32> to vector<8x80xf32>
    %782 = vector.extract_strided_slice %219 {offsets = [0, 14], sizes = [8, 1], strides = [1, 1]} : vector<8x16xf32> to vector<8x1xf32>
    %783 = vector.broadcast %782 : vector<8x1xf32> to vector<8x80xf32>
    %784 = arith.mulf %781, %783 : vector<8x80xf32>
    %785 = arith.addf %776, %784 : vector<8x80xf32>
    %786 = vector.extract_strided_slice %217 {offsets = [0, 15], sizes = [8, 1], strides = [1, 1]} : vector<8x16xf32> to vector<8x1xf32>
    %787 = vector.broadcast %786 : vector<8x1xf32> to vector<8x80xf32>
    %788 = arith.cmpf oeq, %787, %316 : vector<8x80xf32>
    %789 = arith.extui %788 : vector<8x80xi1> to vector<8x80xi32>
    %790 = arith.sitofp %789 : vector<8x80xi32> to vector<8x80xf32>
    %791 = vector.extract_strided_slice %219 {offsets = [0, 15], sizes = [8, 1], strides = [1, 1]} : vector<8x16xf32> to vector<8x1xf32>
    %792 = vector.broadcast %791 : vector<8x1xf32> to vector<8x80xf32>
    %793 = arith.mulf %790, %792 : vector<8x80xf32>
    %794 = arith.addf %785, %793 : vector<8x80xf32>
    %795 = vector.extract_strided_slice %249 {offsets = [0, 12], sizes = [8, 1], strides = [1, 1]} : vector<8x16xf32> to vector<8x1xf32>
    %796 = vector.broadcast %795 : vector<8x1xf32> to vector<8x80xf32>
    %797 = arith.cmpf oeq, %796, %316 : vector<8x80xf32>
    %798 = arith.extui %797 : vector<8x80xi1> to vector<8x80xi32>
    %799 = arith.sitofp %798 : vector<8x80xi32> to vector<8x80xf32>
    %800 = vector.extract_strided_slice %251 {offsets = [0, 12], sizes = [8, 1], strides = [1, 1]} : vector<8x16xf32> to vector<8x1xf32>
    %801 = vector.broadcast %800 : vector<8x1xf32> to vector<8x80xf32>
    %802 = arith.mulf %799, %801 : vector<8x80xf32>
    %803 = arith.addf %794, %802 : vector<8x80xf32>
    %804 = vector.extract_strided_slice %249 {offsets = [0, 13], sizes = [8, 1], strides = [1, 1]} : vector<8x16xf32> to vector<8x1xf32>
    %805 = vector.broadcast %804 : vector<8x1xf32> to vector<8x80xf32>
    %806 = arith.cmpf oeq, %805, %316 : vector<8x80xf32>
    %807 = arith.extui %806 : vector<8x80xi1> to vector<8x80xi32>
    %808 = arith.sitofp %807 : vector<8x80xi32> to vector<8x80xf32>
    %809 = vector.extract_strided_slice %251 {offsets = [0, 13], sizes = [8, 1], strides = [1, 1]} : vector<8x16xf32> to vector<8x1xf32>
    %810 = vector.broadcast %809 : vector<8x1xf32> to vector<8x80xf32>
    %811 = arith.mulf %808, %810 : vector<8x80xf32>
    %812 = arith.addf %803, %811 : vector<8x80xf32>
    %813 = vector.extract_strided_slice %249 {offsets = [0, 14], sizes = [8, 1], strides = [1, 1]} : vector<8x16xf32> to vector<8x1xf32>
    %814 = vector.broadcast %813 : vector<8x1xf32> to vector<8x80xf32>
    %815 = arith.cmpf oeq, %814, %316 : vector<8x80xf32>
    %816 = arith.extui %815 : vector<8x80xi1> to vector<8x80xi32>
    %817 = arith.sitofp %816 : vector<8x80xi32> to vector<8x80xf32>
    %818 = vector.extract_strided_slice %251 {offsets = [0, 14], sizes = [8, 1], strides = [1, 1]} : vector<8x16xf32> to vector<8x1xf32>
    %819 = vector.broadcast %818 : vector<8x1xf32> to vector<8x80xf32>
    %820 = arith.mulf %817, %819 : vector<8x80xf32>
    %821 = arith.addf %812, %820 : vector<8x80xf32>
    %822 = vector.extract_strided_slice %249 {offsets = [0, 15], sizes = [8, 1], strides = [1, 1]} : vector<8x16xf32> to vector<8x1xf32>
    %823 = vector.broadcast %822 : vector<8x1xf32> to vector<8x80xf32>
    %824 = arith.cmpf oeq, %823, %316 : vector<8x80xf32>
    %825 = arith.extui %824 : vector<8x80xi1> to vector<8x80xi32>
    %826 = arith.sitofp %825 : vector<8x80xi32> to vector<8x80xf32>
    %827 = vector.extract_strided_slice %251 {offsets = [0, 15], sizes = [8, 1], strides = [1, 1]} : vector<8x16xf32> to vector<8x1xf32>
    %828 = vector.broadcast %827 : vector<8x1xf32> to vector<8x80xf32>
    %829 = arith.mulf %826, %828 : vector<8x80xf32>
    %830 = arith.addf %821, %829 : vector<8x80xf32>
    %831 = vector.extract_strided_slice %281 {offsets = [0, 12], sizes = [8, 1], strides = [1, 1]} : vector<8x16xf32> to vector<8x1xf32>
    %832 = vector.broadcast %831 : vector<8x1xf32> to vector<8x80xf32>
    %833 = arith.cmpf oeq, %832, %316 : vector<8x80xf32>
    %834 = arith.extui %833 : vector<8x80xi1> to vector<8x80xi32>
    %835 = arith.sitofp %834 : vector<8x80xi32> to vector<8x80xf32>
    %836 = vector.extract_strided_slice %283 {offsets = [0, 12], sizes = [8, 1], strides = [1, 1]} : vector<8x16xf32> to vector<8x1xf32>
    %837 = vector.broadcast %836 : vector<8x1xf32> to vector<8x80xf32>
    %838 = arith.mulf %835, %837 : vector<8x80xf32>
    %839 = arith.addf %830, %838 : vector<8x80xf32>
    %840 = vector.extract_strided_slice %281 {offsets = [0, 13], sizes = [8, 1], strides = [1, 1]} : vector<8x16xf32> to vector<8x1xf32>
    %841 = vector.broadcast %840 : vector<8x1xf32> to vector<8x80xf32>
    %842 = arith.cmpf oeq, %841, %316 : vector<8x80xf32>
    %843 = arith.extui %842 : vector<8x80xi1> to vector<8x80xi32>
    %844 = arith.sitofp %843 : vector<8x80xi32> to vector<8x80xf32>
    %845 = vector.extract_strided_slice %283 {offsets = [0, 13], sizes = [8, 1], strides = [1, 1]} : vector<8x16xf32> to vector<8x1xf32>
    %846 = vector.broadcast %845 : vector<8x1xf32> to vector<8x80xf32>
    %847 = arith.mulf %844, %846 : vector<8x80xf32>
    %848 = arith.addf %839, %847 : vector<8x80xf32>
    %849 = vector.extract_strided_slice %281 {offsets = [0, 14], sizes = [8, 1], strides = [1, 1]} : vector<8x16xf32> to vector<8x1xf32>
    %850 = vector.broadcast %849 : vector<8x1xf32> to vector<8x80xf32>
    %851 = arith.cmpf oeq, %850, %316 : vector<8x80xf32>
    %852 = arith.extui %851 : vector<8x80xi1> to vector<8x80xi32>
    %853 = arith.sitofp %852 : vector<8x80xi32> to vector<8x80xf32>
    %854 = vector.extract_strided_slice %283 {offsets = [0, 14], sizes = [8, 1], strides = [1, 1]} : vector<8x16xf32> to vector<8x1xf32>
    %855 = vector.broadcast %854 : vector<8x1xf32> to vector<8x80xf32>
    %856 = arith.mulf %853, %855 : vector<8x80xf32>
    %857 = arith.addf %848, %856 : vector<8x80xf32>
    %858 = vector.extract_strided_slice %281 {offsets = [0, 15], sizes = [8, 1], strides = [1, 1]} : vector<8x16xf32> to vector<8x1xf32>
    %859 = vector.broadcast %858 : vector<8x1xf32> to vector<8x80xf32>
    %860 = arith.cmpf oeq, %859, %316 : vector<8x80xf32>
    %861 = arith.extui %860 : vector<8x80xi1> to vector<8x80xi32>
    %862 = arith.sitofp %861 : vector<8x80xi32> to vector<8x80xf32>
    %863 = vector.extract_strided_slice %283 {offsets = [0, 15], sizes = [8, 1], strides = [1, 1]} : vector<8x16xf32> to vector<8x1xf32>
    %864 = vector.broadcast %863 : vector<8x1xf32> to vector<8x80xf32>
    %865 = arith.mulf %862, %864 : vector<8x80xf32>
    %866 = arith.addf %857, %865 : vector<8x80xf32>
    %867 = vector.extract_strided_slice %313 {offsets = [0, 12], sizes = [8, 1], strides = [1, 1]} : vector<8x16xf32> to vector<8x1xf32>
    %868 = vector.broadcast %867 : vector<8x1xf32> to vector<8x80xf32>
    %869 = arith.cmpf oeq, %868, %316 : vector<8x80xf32>
    %870 = arith.extui %869 : vector<8x80xi1> to vector<8x80xi32>
    %871 = arith.sitofp %870 : vector<8x80xi32> to vector<8x80xf32>
    %872 = vector.extract_strided_slice %315 {offsets = [0, 12], sizes = [8, 1], strides = [1, 1]} : vector<8x16xf32> to vector<8x1xf32>
    %873 = vector.broadcast %872 : vector<8x1xf32> to vector<8x80xf32>
    %874 = arith.mulf %871, %873 : vector<8x80xf32>
    %875 = arith.addf %866, %874 : vector<8x80xf32>
    %876 = vector.extract_strided_slice %313 {offsets = [0, 13], sizes = [8, 1], strides = [1, 1]} : vector<8x16xf32> to vector<8x1xf32>
    %877 = vector.broadcast %876 : vector<8x1xf32> to vector<8x80xf32>
    %878 = arith.cmpf oeq, %877, %316 : vector<8x80xf32>
    %879 = arith.extui %878 : vector<8x80xi1> to vector<8x80xi32>
    %880 = arith.sitofp %879 : vector<8x80xi32> to vector<8x80xf32>
    %881 = vector.extract_strided_slice %315 {offsets = [0, 13], sizes = [8, 1], strides = [1, 1]} : vector<8x16xf32> to vector<8x1xf32>
    %882 = vector.broadcast %881 : vector<8x1xf32> to vector<8x80xf32>
    %883 = arith.mulf %880, %882 : vector<8x80xf32>
    %884 = arith.addf %875, %883 : vector<8x80xf32>
    %885 = vector.extract_strided_slice %313 {offsets = [0, 14], sizes = [8, 1], strides = [1, 1]} : vector<8x16xf32> to vector<8x1xf32>
    %886 = vector.broadcast %885 : vector<8x1xf32> to vector<8x80xf32>
    %887 = arith.cmpf oeq, %886, %316 : vector<8x80xf32>
    %888 = arith.extui %887 : vector<8x80xi1> to vector<8x80xi32>
    %889 = arith.sitofp %888 : vector<8x80xi32> to vector<8x80xf32>
    %890 = vector.extract_strided_slice %315 {offsets = [0, 14], sizes = [8, 1], strides = [1, 1]} : vector<8x16xf32> to vector<8x1xf32>
    %891 = vector.broadcast %890 : vector<8x1xf32> to vector<8x80xf32>
    %892 = arith.mulf %889, %891 : vector<8x80xf32>
    %893 = arith.addf %884, %892 : vector<8x80xf32>
    %894 = vector.extract_strided_slice %313 {offsets = [0, 15], sizes = [8, 1], strides = [1, 1]} : vector<8x16xf32> to vector<8x1xf32>
    %895 = vector.broadcast %894 : vector<8x1xf32> to vector<8x80xf32>
    %896 = arith.cmpf oeq, %895, %316 : vector<8x80xf32>
    %897 = arith.extui %896 : vector<8x80xi1> to vector<8x80xi32>
    %898 = arith.sitofp %897 : vector<8x80xi32> to vector<8x80xf32>
    %899 = vector.extract_strided_slice %315 {offsets = [0, 15], sizes = [8, 1], strides = [1, 1]} : vector<8x16xf32> to vector<8x1xf32>
    %900 = vector.broadcast %899 : vector<8x1xf32> to vector<8x80xf32>
    %901 = arith.mulf %898, %900 : vector<8x80xf32>
    %902 = arith.addf %893, %901 : vector<8x80xf32>
    %903 = vector.extract_strided_slice %126 {offsets = [0, 24], sizes = [80, 8], strides = [1, 1]} : vector<80x32xf32> to vector<80x8xf32>
    %cst_120 = arith.constant dense<0.000000e+00> : vector<8x8xf32>
    %904 = tpu.matmul %902, %903, %cst_120 {dimension_numbers = #tpu.dot_dimension_numbers<[1], [0], [0], [1], [0, 0, 1, 1], [], []>} : vector<8x80xf32>, vector<80x8xf32>, vector<8x8xf32> -> vector<8x8xf32>
    %905 = tpu.concatenate %463, %610, %757, %904 in 1 : vector<8x8xf32>, vector<8x8xf32>, vector<8x8xf32>, vector<8x8xf32> -> vector<8x32xf32>
    %c0_121 = arith.constant 0 : index
    %c0_122 = arith.constant 0 : index
    %906 = vector.load %arg24[%c0_121, %c0_122] : memref<32x32xf32, #tpu.memory_space<vmem>>, vector<32x32xf32>
    %cst_123 = arith.constant dense<0.000000e+00> : vector<8x32xf32>
    %907 = tpu.matmul %905, %906, %cst_123 {dimension_numbers = #tpu.dot_dimension_numbers<[1], [1], [0], [0], [0, 0, 1, 0], [], []>} : vector<8x32xf32>, vector<32x32xf32>, vector<8x32xf32> -> vector<8x32xf32>
    %c0_124 = arith.constant 0 : index
    %c0_125 = arith.constant 0 : index
    %908 = vector.load %arg25[%c0_124, %c0_125] : memref<1x32xf32, #tpu.memory_space<vmem>>, vector<1x32xf32>
    %909 = vector.broadcast %908 : vector<1x32xf32> to vector<8x32xf32>
    %910 = arith.addf %907, %909 : vector<8x32xf32>
    %911 = arith.addf %115, %910 : vector<8x32xf32>
    %c0_126 = arith.constant 0 : index
    %c0_127 = arith.constant 0 : index
    %912 = vector.load %arg26[%c0_126, %c0_127] : memref<1x32xf32, #tpu.memory_space<vmem>>, vector<1x32xf32>
    %c0_128 = arith.constant 0 : index
    %c0_129 = arith.constant 0 : index
    %913 = vector.load %arg27[%c0_128, %c0_129] : memref<1x32xf32, #tpu.memory_space<vmem>>, vector<1x32xf32>
    %cst_130 = arith.constant dense<0.000000e+00> : vector<8xf32>
    %914 = vector.multi_reduction <add>, %911, %cst_130 [1] : vector<8x32xf32> to vector<8xf32>
    %915 = vector.shape_cast %914 : vector<8xf32> to vector<8x1xf32>
    %cst_131 = arith.constant 3.200000e+01 : f32
    %916 = vector.broadcast %cst_131 : f32 to vector<8x1xf32>
    %917 = arith.divf %915, %916 : vector<8x1xf32>
    %918 = vector.broadcast %917 : vector<8x1xf32> to vector<8x32xf32>
    %919 = arith.subf %911, %918 : vector<8x32xf32>
    %920 = arith.mulf %919, %919 : vector<8x32xf32>
    %cst_132 = arith.constant dense<0.000000e+00> : vector<8xf32>
    %921 = vector.multi_reduction <add>, %920, %cst_132 [1] : vector<8x32xf32> to vector<8xf32>
    %922 = vector.shape_cast %921 : vector<8xf32> to vector<8x1xf32>
    %cst_133 = arith.constant 3.200000e+01 : f32
    %923 = vector.broadcast %cst_133 : f32 to vector<8x1xf32>
    %924 = arith.divf %922, %923 : vector<8x1xf32>
    %925 = vector.broadcast %917 : vector<8x1xf32> to vector<8x32xf32>
    %926 = arith.subf %911, %925 : vector<8x32xf32>
    %cst_134 = arith.constant 9.99999974E-6 : f32
    %927 = vector.broadcast %cst_134 : f32 to vector<8x1xf32>
    %928 = arith.addf %924, %927 : vector<8x1xf32>
    %929 = math.rsqrt %928 : vector<8x1xf32>
    %930 = vector.broadcast %929 : vector<8x1xf32> to vector<8x32xf32>
    %931 = arith.mulf %926, %930 : vector<8x32xf32>
    %932 = vector.broadcast %912 : vector<1x32xf32> to vector<8x32xf32>
    %933 = arith.mulf %931, %932 : vector<8x32xf32>
    %934 = vector.broadcast %913 : vector<1x32xf32> to vector<8x32xf32>
    %935 = arith.addf %933, %934 : vector<8x32xf32>
    %c0_135 = arith.constant 0 : index
    %c0_136 = arith.constant 0 : index
    %936 = vector.load %arg28[%c0_135, %c0_136] : memref<64x32xf32, #tpu.memory_space<vmem>>, vector<64x32xf32>
    %cst_137 = arith.constant dense<0.000000e+00> : vector<8x64xf32>
    %937 = tpu.matmul %935, %936, %cst_137 {dimension_numbers = #tpu.dot_dimension_numbers<[1], [1], [0], [0], [0, 0, 1, 0], [], []>} : vector<8x32xf32>, vector<64x32xf32>, vector<8x64xf32> -> vector<8x64xf32>
    %c0_138 = arith.constant 0 : index
    %c0_139 = arith.constant 0 : index
    %938 = vector.load %arg29[%c0_138, %c0_139] : memref<1x64xf32, #tpu.memory_space<vmem>>, vector<1x64xf32>
    %939 = vector.broadcast %938 : vector<1x64xf32> to vector<8x64xf32>
    %940 = arith.addf %937, %939 : vector<8x64xf32>
    %cst_140 = arith.constant 0.000000e+00 : f32
    %941 = vector.broadcast %cst_140 : f32 to vector<8x64xf32>
    %942 = arith.maximumf %940, %941 : vector<8x64xf32>
    %c0_141 = arith.constant 0 : index
    %c0_142 = arith.constant 0 : index
    %943 = vector.load %arg30[%c0_141, %c0_142] : memref<32x64xf32, #tpu.memory_space<vmem>>, vector<32x64xf32>
    %cst_143 = arith.constant dense<0.000000e+00> : vector<8x32xf32>
    %944 = tpu.matmul %942, %943, %cst_143 {dimension_numbers = #tpu.dot_dimension_numbers<[1], [1], [0], [0], [0, 0, 1, 0], [], []>} : vector<8x64xf32>, vector<32x64xf32>, vector<8x32xf32> -> vector<8x32xf32>
    %c0_144 = arith.constant 0 : index
    %c0_145 = arith.constant 0 : index
    %945 = vector.load %arg31[%c0_144, %c0_145] : memref<1x32xf32, #tpu.memory_space<vmem>>, vector<1x32xf32>
    %946 = vector.broadcast %945 : vector<1x32xf32> to vector<8x32xf32>
    %947 = arith.addf %944, %946 : vector<8x32xf32>
    %948 = arith.addf %935, %947 : vector<8x32xf32>
    %c0_146 = arith.constant 0 : index
    %c0_147 = arith.constant 0 : index
    %949 = vector.load %arg32[%c0_146, %c0_147] : memref<1x32xf32, #tpu.memory_space<vmem>>, vector<1x32xf32>
    %c0_148 = arith.constant 0 : index
    %c0_149 = arith.constant 0 : index
    %950 = vector.load %arg33[%c0_148, %c0_149] : memref<1x32xf32, #tpu.memory_space<vmem>>, vector<1x32xf32>
    %cst_150 = arith.constant dense<0.000000e+00> : vector<8xf32>
    %951 = vector.multi_reduction <add>, %948, %cst_150 [1] : vector<8x32xf32> to vector<8xf32>
    %952 = vector.shape_cast %951 : vector<8xf32> to vector<8x1xf32>
    %cst_151 = arith.constant 3.200000e+01 : f32
    %953 = vector.broadcast %cst_151 : f32 to vector<8x1xf32>
    %954 = arith.divf %952, %953 : vector<8x1xf32>
    %955 = vector.broadcast %954 : vector<8x1xf32> to vector<8x32xf32>
    %956 = arith.subf %948, %955 : vector<8x32xf32>
    %957 = arith.mulf %956, %956 : vector<8x32xf32>
    %cst_152 = arith.constant dense<0.000000e+00> : vector<8xf32>
    %958 = vector.multi_reduction <add>, %957, %cst_152 [1] : vector<8x32xf32> to vector<8xf32>
    %959 = vector.shape_cast %958 : vector<8xf32> to vector<8x1xf32>
    %cst_153 = arith.constant 3.200000e+01 : f32
    %960 = vector.broadcast %cst_153 : f32 to vector<8x1xf32>
    %961 = arith.divf %959, %960 : vector<8x1xf32>
    %962 = vector.broadcast %954 : vector<8x1xf32> to vector<8x32xf32>
    %963 = arith.subf %948, %962 : vector<8x32xf32>
    %cst_154 = arith.constant 9.99999974E-6 : f32
    %964 = vector.broadcast %cst_154 : f32 to vector<8x1xf32>
    %965 = arith.addf %961, %964 : vector<8x1xf32>
    %966 = math.rsqrt %965 : vector<8x1xf32>
    %967 = vector.broadcast %966 : vector<8x1xf32> to vector<8x32xf32>
    %968 = arith.mulf %963, %967 : vector<8x32xf32>
    %969 = vector.broadcast %949 : vector<1x32xf32> to vector<8x32xf32>
    %970 = arith.mulf %968, %969 : vector<8x32xf32>
    %971 = vector.broadcast %950 : vector<1x32xf32> to vector<8x32xf32>
    %972 = arith.addf %970, %971 : vector<8x32xf32>
    %c0_155 = arith.constant 0 : index
    %c0_156 = arith.constant 0 : index
    %c0_157 = arith.constant 0 : index
    %973 = vector.load %arg34[%c0_155, %c0_156, %c0_157] : memref<1x8x32xf32, #tpu.memory_space<vmem>>, vector<1x8x32xf32>
    %974 = vector.shape_cast %973 : vector<1x8x32xf32> to vector<8x32xf32>
    %975 = vector.shape_cast %972 : vector<8x32xf32> to vector<1x8x32xf32>
    tpu.vector_store %arg34[%c0_155, %c0_156, %c0_157], %975 {strides = array<i32>} : memref<1x8x32xf32, #tpu.memory_space<vmem>>, vector<1x8x32xf32>,
    return
  }
  func.func @transform_0(%arg0: i32) -> (i32, i32, i32) {
    %c0_i32 = arith.constant 0 : i32
    %c0_i32_0 = arith.constant 0 : i32
    %c0_i32_1 = arith.constant 0 : i32
    return %arg0, %c0_i32, %c0_i32_0 : i32, i32, i32
  }
  func.func @transform_1(%arg0: i32) -> (i32, i32, i32) {
    %c0_i32 = arith.constant 0 : i32
    %c0_i32_0 = arith.constant 0 : i32
    %c0_i32_1 = arith.constant 0 : i32
    return %arg0, %c0_i32, %c0_i32_0 : i32, i32, i32
  }
  func.func @transform_2(%arg0: i32) -> (i32, i32, i32) {
    %c0_i32 = arith.constant 0 : i32
    %c0_i32_0 = arith.constant 0 : i32
    %c0_i32_1 = arith.constant 0 : i32
    return %arg0, %c0_i32, %c0_i32_0 : i32, i32, i32
  }
  func.func @transform_3(%arg0: i32) -> (i32, i32, i32) {
    %c0_i32 = arith.constant 0 : i32
    %c0_i32_0 = arith.constant 0 : i32
    %c0_i32_1 = arith.constant 0 : i32
    return %arg0, %c0_i32, %c0_i32_0 : i32, i32, i32
  }
  func.func @transform_4(%arg0: i32) -> (i32, i32, i32) {
    %c0_i32 = arith.constant 0 : i32
    %c0_i32_0 = arith.constant 0 : i32
    %c0_i32_1 = arith.constant 0 : i32
    return %arg0, %c0_i32, %c0_i32_0 : i32, i32, i32
  }
  func.func @transform_5(%arg0: i32) -> (i32, i32, i32) {
    %c0_i32 = arith.constant 0 : i32
    %c0_i32_0 = arith.constant 0 : i32
    %c0_i32_1 = arith.constant 0 : i32
    return %arg0, %c0_i32, %c0_i32_0 : i32, i32, i32
  }
  func.func @transform_6(%arg0: i32) -> (i32, i32) {
    %c0_i32 = arith.constant 0 : i32
    %c0_i32_0 = arith.constant 0 : i32
    %c0_i32_1 = arith.constant 0 : i32
    return %c0_i32, %c0_i32_0 : i32, i32
  }
  func.func @transform_7(%arg0: i32) -> (i32, i32) {
    %c0_i32 = arith.constant 0 : i32
    %c0_i32_0 = arith.constant 0 : i32
    %c0_i32_1 = arith.constant 0 : i32
    return %c0_i32, %c0_i32_0 : i32, i32
  }
  func.func @transform_8(%arg0: i32) -> (i32, i32) {
    %c0_i32 = arith.constant 0 : i32
    %c0_i32_0 = arith.constant 0 : i32
    %c0_i32_1 = arith.constant 0 : i32
    return %c0_i32, %c0_i32_0 : i32, i32
  }
  func.func @transform_9(%arg0: i32) -> (i32, i32) {
    %c0_i32 = arith.constant 0 : i32
    %c0_i32_0 = arith.constant 0 : i32
    %c0_i32_1 = arith.constant 0 : i32
    return %c0_i32, %c0_i32_0 : i32, i32
  }
  func.func @transform_10(%arg0: i32) -> (i32, i32) {
    %c0_i32 = arith.constant 0 : i32
    %c0_i32_0 = arith.constant 0 : i32
    %c0_i32_1 = arith.constant 0 : i32
    return %c0_i32, %c0_i32_0 : i32, i32
  }
  func.func @transform_11(%arg0: i32) -> (i32, i32) {
    %c0_i32 = arith.constant 0 : i32
    %c0_i32_0 = arith.constant 0 : i32
    %c0_i32_1 = arith.constant 0 : i32
    return %c0_i32, %c0_i32_0 : i32, i32
  }
  func.func @transform_12(%arg0: i32) -> (i32, i32) {
    %c0_i32 = arith.constant 0 : i32
    %c0_i32_0 = arith.constant 0 : i32
    %c0_i32_1 = arith.constant 0 : i32
    return %c0_i32, %c0_i32_0 : i32, i32
  }
  func.func @transform_13(%arg0: i32) -> (i32, i32) {
    %c0_i32 = arith.constant 0 : i32
    %c0_i32_0 = arith.constant 0 : i32
    %c0_i32_1 = arith.constant 0 : i32
    return %c0_i32, %c0_i32_0 : i32, i32
  }
  func.func @transform_14(%arg0: i32) -> (i32, i32) {
    %c0_i32 = arith.constant 0 : i32
    %c0_i32_0 = arith.constant 0 : i32
    %c0_i32_1 = arith.constant 0 : i32
    return %c0_i32, %c0_i32_0 : i32, i32
  }
  func.func @transform_15(%arg0: i32) -> (i32, i32) {
    %c0_i32 = arith.constant 0 : i32
    %c0_i32_0 = arith.constant 0 : i32
    %c0_i32_1 = arith.constant 0 : i32
    return %c0_i32, %c0_i32_0 : i32, i32
  }
  func.func @transform_16(%arg0: i32) -> (i32, i32) {
    %c0_i32 = arith.constant 0 : i32
    %c0_i32_0 = arith.constant 0 : i32
    %c0_i32_1 = arith.constant 0 : i32
    return %c0_i32, %c0_i32_0 : i32, i32
  }
  func.func @transform_17(%arg0: i32) -> (i32, i32) {
    %c0_i32 = arith.constant 0 : i32
    %c0_i32_0 = arith.constant 0 : i32
    %c0_i32_1 = arith.constant 0 : i32
    return %c0_i32, %c0_i32_0 : i32, i32
  }
  func.func @transform_18(%arg0: i32) -> (i32, i32) {
    %c0_i32 = arith.constant 0 : i32
    %c0_i32_0 = arith.constant 0 : i32
    %c0_i32_1 = arith.constant 0 : i32
    return %c0_i32, %c0_i32_0 : i32, i32
  }
  func.func @transform_19(%arg0: i32) -> (i32, i32) {
    %c0_i32 = arith.constant 0 : i32
    %c0_i32_0 = arith.constant 0 : i32
    %c0_i32_1 = arith.constant 0 : i32
    return %c0_i32, %c0_i32_0 : i32, i32
  }
  func.func @transform_20(%arg0: i32) -> (i32, i32) {
    %c0_i32 = arith.constant 0 : i32
    %c0_i32_0 = arith.constant 0 : i32
    %c0_i32_1 = arith.constant 0 : i32
    return %c0_i32, %c0_i32_0 : i32, i32
  }
  func.func @transform_21(%arg0: i32) -> (i32, i32) {
    %c0_i32 = arith.constant 0 : i32
    %c0_i32_0 = arith.constant 0 : i32
    %c0_i32_1 = arith.constant 0 : i32
    return %c0_i32, %c0_i32_0 : i32, i32
  }
  func.func @transform_22(%arg0: i32) -> (i32, i32) {
    %c0_i32 = arith.constant 0 : i32
    %c0_i32_0 = arith.constant 0 : i32
    %c0_i32_1 = arith.constant 0 : i32
    return %c0_i32, %c0_i32_0 : i32, i32
  }
  func.func @transform_23(%arg0: i32) -> (i32, i32) {
    %c0_i32 = arith.constant 0 : i32
    %c0_i32_0 = arith.constant 0 : i32
    %c0_i32_1 = arith.constant 0 : i32
    return %c0_i32, %c0_i32_0 : i32, i32
  }
  func.func @transform_24(%arg0: i32) -> (i32, i32) {
    %c0_i32 = arith.constant 0 : i32
    %c0_i32_0 = arith.constant 0 : i32
    %c0_i32_1 = arith.constant 0 : i32
    return %c0_i32, %c0_i32_0 : i32, i32
  }
  func.func @transform_25(%arg0: i32) -> (i32, i32) {
    %c0_i32 = arith.constant 0 : i32
    %c0_i32_0 = arith.constant 0 : i32
    %c0_i32_1 = arith.constant 0 : i32
    return %c0_i32, %c0_i32_0 : i32, i32
  }
  func.func @transform_26(%arg0: i32) -> (i32, i32) {
    %c0_i32 = arith.constant 0 : i32
    %c0_i32_0 = arith.constant 0 : i32
    %c0_i32_1 = arith.constant 0 : i32
    return %c0_i32, %c0_i32_0 : i32, i32
  }
  func.func @transform_27(%arg0: i32) -> (i32, i32) {
    %c0_i32 = arith.constant 0 : i32
    %c0_i32_0 = arith.constant 0 : i32
    %c0_i32_1 = arith.constant 0 : i32
    return %c0_i32, %c0_i32_0 : i32, i32
  }
  func.func @transform_28(%arg0: i32) -> (i32, i32) {
    %c0_i32 = arith.constant 0 : i32
    %c0_i32_0 = arith.constant 0 : i32
    %c0_i32_1 = arith.constant 0 : i32
    return %c0_i32, %c0_i32_0 : i32, i32
  }
  func.func @transform_29(%arg0: i32) -> (i32, i32) {
    %c0_i32 = arith.constant 0 : i32
    %c0_i32_0 = arith.constant 0 : i32
    %c0_i32_1 = arith.constant 0 : i32
    return %c0_i32, %c0_i32_0 : i32, i32
  }
  func.func @transform_30(%arg0: i32) -> (i32, i32) {
    %c0_i32 = arith.constant 0 : i32
    %c0_i32_0 = arith.constant 0 : i32
    %c0_i32_1 = arith.constant 0 : i32
    return %c0_i32, %c0_i32_0 : i32, i32
  }
  func.func @transform_31(%arg0: i32) -> (i32, i32) {
    %c0_i32 = arith.constant 0 : i32
    %c0_i32_0 = arith.constant 0 : i32
    %c0_i32_1 = arith.constant 0 : i32
    return %c0_i32, %c0_i32_0 : i32, i32
  }
  func.func @transform_32(%arg0: i32) -> (i32, i32) {
    %c0_i32 = arith.constant 0 : i32
    %c0_i32_0 = arith.constant 0 : i32
    %c0_i32_1 = arith.constant 0 : i32
    return %c0_i32, %c0_i32_0 : i32, i32
  }
  func.func @transform_33(%arg0: i32) -> (i32, i32, i32) {
    %c0_i32 = arith.constant 0 : i32
    %c0_i32_0 = arith.constant 0 : i32
    %c0_i32_1 = arith.constant 0 : i32
    return %arg0, %c0_i32, %c0_i32_0 : i32, i32, i32
  }
}

</mosaic_0001>

<bundles_post_ra>
// kernel: _layer_impl.1
= control target key start
LH: loop header
LB: loop body
LE: loop exit
PB: predicated region body
PF: predicated region fallthrough
CT: control target
= control target key end

     0   :  { %s5352_s6 = smov 1   ;;  %s5353_s10 = smov 2   ;;  %s6861_s0 = inlined_call_operand.smem [shape: u32[34], index: -1, kind: input, shape index: {}] }
   0x1   :  { %s5422_s5 = sld [smem:[%s6861_s0]]   ;;  %s5354_s14 = smov 3  }
   0x2   :  { %s5427_s9 = sld [smem:[%s6861_s0 + %s5352_s6]]   ;;  %s5355_s18 = smov 4  }
   0x3   :  { %s5432_s13 = sld [smem:[%s6861_s0 + %s5353_s10]]   ;;  %s5356_s22 = smov 5  }
   0x4   :  { %s5437_s17 = sld [smem:[%s6861_s0 + %s5354_s14]]   ;;  %s5357_s26 = smov 6  }
   0x5   :  { %s5442_s21 = sld [smem:[%s6861_s0 + %s5355_s18]]   ;;  %s5358_s30 = smov 7  }
   0x6   :  { %s5447_s25 = sld [smem:[%s6861_s0 + %s5356_s22]]   ;;  %s5359_s4 = smov 8  }
   0x7   :  { %6917 = sst [smem:[#allocation5_spill]] %s5422_s5  ;;  %s5360_s10 = smov 9  }
   0x8   :  { %6918 = sst [smem:[#allocation6_spill]] %s5427_s9  ;;  %s5361_s15 = smov 10  }
   0x9   :  { %6919 = sst [smem:[#allocation7_spill]] %s5432_s13  ;;  %s5362_s20 = smov 11  }
   0xa   :  { %s5452_s29 = sld [smem:[%s6861_s0 + %s5357_s26]]   ;;  %s5363_s26 = smov 12  }
   0xb   :  { %6920 = sst [smem:[#allocation8_spill]] %s5442_s21  ;;  %s5364_s1 = smov 13  }
   0xc   :  { %6921 = sst [smem:[#allocation9_spill]] %s5447_s25  ;;  %s5365_s7 = smov 14  }
   0xd   :  { %s5457_s3 = sld [smem:[%s6861_s0 + %s5358_s30]]   ;;  %s5367_s22 = smov 16  }
   0xe   :  { %s5462_s8 = sld [smem:[%s6861_s0 + %s5359_s4]]   ;;  %s5368_s28 = smov 17  }
   0xf   :  { %s5467_s14 = sld [smem:[%s6861_s0 + %s5360_s10]]  }
  0x10   :  { %s5472_s19 = sld [smem:[%s6861_s0 + %s5361_s15]]   ;;  %s5366_s15 = smov 15  }
  0x11   :  { %s5477_s24 = sld [smem:[%s6861_s0 + %s5362_s20]]  }
  0x12   :  { %s5482_s30 = sld [smem:[%s6861_s0 + %s5363_s26]]  }
  0x13   :  { %6922 = sst [smem:[#allocation10_spill]] %s5457_s3 }
  0x14   :  { %6923 = sst [smem:[#allocation11_spill]] %s5462_s8 }
  0x15   :  { %6924 = sst [smem:[#allocation12_spill]] %s5467_s14 }
  0x16   :  { %s5487_s6 = sld [smem:[%s6861_s0 + %s5364_s1]]  }
  0x17   :  { %s5492_s12 = sld [smem:[%s6861_s0 + %s5365_s7]]   ;;  %s5369_s7 = smov 18  }
  0x18   :  { %s5497_s20 = sld [smem:[%s6861_s0 + %s5366_s15]]   ;;  %s5370_s15 = smov 19  }
  0x19   :  { %s5502_s27 = sld [smem:[%s6861_s0 + %s5367_s22]]   ;;  %s5371_s22 = smov 20  }
  0x1a   :  { %s5507_s4 = sld [smem:[%s6861_s0 + %s5368_s28]]   ;;  %s5372_s28 = smov 21  }
  0x1b   :  { %s5512_s8 = sld [smem:[%s6861_s0 + %s5369_s7]]   ;;  %s5373_s7 = smov 22  }
  0x1c   :  { %6925 = sst [smem:[#allocation13_spill]] %s5487_s6 }
  0x1d   :  { %6926 = sst [smem:[#allocation14_spill]] %s5492_s12 }
  0x1e   :  { %6927 = sst [smem:[#allocation15_spill]] %s5497_s20 }
  0x1f   :  { %6928 = sst [smem:[#allocation16_spill]] %s5502_s27 }
  0x20   :  { %6929 = sst [smem:[#allocation17_spill]] %s5507_s4 }
  0x21   :  { %6930 = sst [smem:[#allocation18_spill]] %s5512_s8 }
  0x22   :  { %s5517_s25 = sld [smem:[%s6861_s0 + %s5370_s15]]   ;;  %s5374_s15 = smov 23  }
  0x23   :  { %s5522_s3 = sld [smem:[%s6861_s0 + %s5371_s22]]   ;;  %s5375_s22 = smov 24  }
  0x24   :  { %s5527_s21 = sld [smem:[%s6861_s0 + %s5372_s28]]   ;;  %s5376_s28 = smov 25  }
  0x25   :  { %s5532_s27 = sld [smem:[%s6861_s0 + %s5373_s7]]   ;;  %s5377_s7 = smov 26  }
  0x26   :  { %s5537_s20 = sld [smem:[%s6861_s0 + %s5374_s15]]   ;;  %s5378_s15 = smov 27  }
  0x27   :  { %s5547_s8 = sld [smem:[%s6861_s0 + %s5376_s28]]   ;;  %s5380_s28 = smov 29  }
  0x29   :  { %6931 = sst [smem:[#allocation19_spill]] %s5522_s3 }
  0x2a   :  { %s5542_s3 = sld [smem:[%s6861_s0 + %s5375_s22]]   ;;  %s5379_s22 = smov 28  }
  0x2b   :  { %6932 = sst [smem:[#allocation20_spill]] %s5532_s27 }
  0x2c   :  { %6933 = sst [smem:[#allocation21_spill]] %s5537_s20 }
  0x2d   :  { %6935 = sst [smem:[#allocation23_spill]] %s5547_s8 }
  0x2e   :  { %s5552_s27 = sld [smem:[%s6861_s0 + %s5377_s7]]   ;;  %s5381_s7 = smov 30  }
  0x2f   :  { %s5557_s20 = sld [smem:[%s6861_s0 + %s5378_s15]]   ;;  %s5382_s15 = smov 31  }
  0x30   :  { %6934 = sst [smem:[#allocation22_spill]] %s5542_s3 }
  0x31   :  { %s5562_s3 = sld [smem:[%s6861_s0 + %s5379_s22]]   ;;  %s5383_s22 = smov 32  }
  0x32   :  { %s5567_s8 = sld [smem:[%s6861_s0 + %s5380_s28]]   ;;  %s5384_s28 = smov 33  }
  0x34   :  { %6936 = sst [smem:[#allocation24_spill]] %s5552_s27 }
  0x35   :  { %6937 = sst [smem:[#allocation25_spill]] %s5557_s20 }
  0x36   :  { %s5572_s27 = sld [smem:[%s6861_s0 + %s5381_s7]]  }
  0x37   :  { %6938 = sst [smem:[#allocation26_spill]] %s5562_s3 }
  0x38   :  { %6939 = sst [smem:[#allocation27_spill]] %s5567_s8 }
  0x39   :  { %s5577_s20 = sld [smem:[%s6861_s0 + %s5382_s15]]  }
  0x3a   :  { %s5582_s3 = sld [smem:[%s6861_s0 + %s5383_s22]]  }
  0x3b   :  { %s5587_s8 = sld [smem:[%s6861_s0 + %s5384_s28]]  }
  0x3c   :  { %72 = vsyncpa [#allocation3], 0 }
  0x3d   :  { %74 = vsyncpa [#allocation3 + $0x1], 0  ;;  %s5589_s7 = smov 0   ;;  %s5591_s10 = smov 0  }
  0x3e   :  { %s5593_s11 = smov 0   ;;  %s5595_s15 = smov 0  }
  0x3f LB: > { %s6940_s14 = sld [smem:[#allocation12_spill]]  ;;  %s5610_s0 = sadd.s32 4294967295, %s5350_s15   ;;  %s5346_s11 = sphi %s5593_s11, %s7084_s11   ;;  %s5342_s10 = sphi %s5591_s10, %s7083_s10   ;;  %s5338_s7 = sphi %s5589_s7, %s7082_s7   ;;  %s5350_s15 = sphi %s5595_s15, %s7085_s15  }
  0x40   : > { %s6941_s6 = sld [smem:[#allocation13_spill]]  ;;  %s4472_s16 = sadd.s32 4294967294, %s5350_s15  }
  0x41   : > { %s6942_s4 = sld [smem:[#allocation17_spill]]  ;;  %s5614_s18 = sadd.s32 1, %s5350_s15  }
  0x42   : > { %s810_s22 = sadd.s32 1, %s5346_s11  ;;  %s807_s23 = ssub.s32 %s5350_s15, %s5614_s18 }
  0x43   : > { %p820_p0 = scmp.ne.s32.totalorder %s5346_s11, %s5342_s10  ;;  %p808_p1 = scmp.eq.s32.totalorder %s807_s23, 0 }
  0x44   : > { %p821_p2 = scmp.eq.s32.totalorder %s5610_s0, 1  ;;  %p826_p3 = scmp.ne.s32.totalorder %s5342_s10, %s5338_s7 }
  0x45   : > { %p827_p4 = scmp.eq.s32.totalorder %s4472_s16, 1  ;;  %p4475_p7 = scmp.ge.s32.totalorder %s5350_s15, 1 }
  0x46   : > { %s5625_s26 = scalar_select %p808_p1, %s5346_s11, %s810_s22  }
  0x47   : > { %p5627_p5 = por %p821_p2, %p820_p0  ;;  %p5631_p6 = por %p827_p4, %p826_p3 }
  0x48   : > { %p970_p8 = scmp.lt.s32.totalorder %s5350_s15, 3 }
  0x4a   : > { %p971_p9 = pnand %p4475_p7, %p970_p8 }
  0x4c   : > { %974 = sbr.rel (%p971_p9) target bundleno = 4791 (0x12b7), region = 152 }
  0x51   : > { %v1111_v0 = vld [vmem:[%s6940_s14 + $0x38] sm:$0xff]  ;;  %vm1119_vm0 = vcmask 261120   ;;  %v6901_v1 = vmov 0.0   ;;  %vm5386_vm1 = vmmov 0   ;;  %v1110_v2 = vld [vmem:[%s6940_s14 + $0x30] sm:$0xff]  ;;  %v1109_v3 = vld [vmem:[%s6940_s14 + $0x28] sm:$0xff] }
  0x52   : > { %4773 = vmatprep.subr.mxu0 %v6901_v1  ;;  %4789 = vmatprep.mubr.msk.f32.mxu0 %vm5386_vm1, %v6901_v1  ;;  %s6945_s5 = sld [smem:[#allocation5_spill]]  ;;  %v1108_v4 = vld [vmem:[%s6940_s14 + $0x20] sm:$0xff]  ;;  %p1075_p10 = scmp.lt.s32.totalorder %s5610_s0, 1  ;;  %v1107_v5 = vld [vmem:[%s6940_s14 + $0x18] sm:$0xff]  ;;  %v1106_v6 = vld [vmem:[%s6940_s14 + $0x10] sm:$0xff]  ;;  %vm1317_vm2 = vcmask 64512  }
  0x53   : > { %4774 = vmatpush3.xpose.msk.msra.mxu0 %vm1119_vm0, %v1111_v0  ;;  %4792 = vmatprep.subr.mxu1 %v6901_v1  ;;  %s6946_s9 = sld [smem:[#allocation6_spill]]  ;;  %v1105_v7 = vld [vmem:[%s6940_s14 + $0x8] sm:$0xff]  ;;  %v1104_v10 = vld [vmem:[%s6940_s14] sm:$0xff]  ;;  %v1220_v12 = vld [vmem:[%s5477_s24 + $0x18] sm:$0xff]  ;;  %vm1986_vm3 = vcmask 130048   ;;  %vm1988_vm4 = vcmask 195584  }
  0x54   : > { %4775 = vmatprep.subr.mxu0 %v6901_v1  ;;  %4800 = vmatprep.mubr.msk.f32.mxu1 %vm5386_vm1, %v6901_v1  ;;  %s5658_s2 = scalar_select %p1075_p10, %s5610_s0, 1  ;;  %v1219_v13 = vld [vmem:[%s5477_s24 + $0x10] sm:$0xff]  ;;  %v1218_v14 = vld [vmem:[%s5477_s24 + $0x8] sm:$0xff]  ;;  %v1217_v15 = vld [vmem:[%s5477_s24] sm:$0xff] }
  0x55   : > { %4793 = vmatpush3.xpose.msk.msra.mxu1 %vm1119_vm0, %v1220_v12  ;;  %v4483_v16 = vld [vmem:[%s5472_s19] ss:$0 sm:$0xff]  ;;  %s6947_s12 = sld [smem:[#allocation14_spill]] }
  0x56   : > { %s5664_s16 = sshll.u32 %s5658_s2, 3  ;;  %4794 = vmatprep.subr.mxu1 %v6901_v1  ;;  %v4493_v23 = vld [vmem:[%s5482_s30] ss:$0 sm:$0xff]  ;;  %s6948_s13 = sld [smem:[#allocation7_spill]] }
  0x57   : > { %4776 = vmatpush3.xpose.msk.msra.mxu0 %vm1119_vm0, %v1110_v2 }
  0x58   : > { %4777 = vmatprep.subr.mxu0 %v6901_v1  ;;  %s1078_s22 = scalar_lea.vmem %s6945_s5, %s5664_s16  ;;  %s6872_s5 = smov 120  }
  0x59   : > { %s1082_s23 = scalar_lea.vmem %s6946_s9, %s5664_s16  ;;  %v5674_v8 = vld [vmem:[%s1078_s22] sm:$0xff]  ;;  %4795 = vmatpush3.xpose.msk.msra.mxu1 %vm1119_vm0, %v1219_v13  ;;  %s5387_s22 = smov 88  }
  0x5a   : > { %v5676_v9 = vld [vmem:[%s1082_s23] sm:$0xff]  ;;  %4796 = vmatprep.subr.mxu1 %v6901_v1  ;;  %s5388_s23 = smov 96   ;;  %s5390_s9 = smov 80  }
  0x5b   : > { %4778 = vmatpush3.xpose.msk.msra.mxu0 %vm1119_vm0, %v1109_v3  ;;  %v1103_v11 = vadd.f32 %v5676_v9, %v5674_v8 }
  0x5c   : > { %4779 = vmatprep.subr.mxu0 %v6901_v1 }
  0x5d   : > { %4797 = vmatpush3.xpose.msk.msra.mxu1 %vm1119_vm0, %v1218_v14 }
  0x5e   : > { %4798 = vmatprep.subr.mxu1 %v6901_v1 }
  0x5f   : > { %4780 = vmatpush3.xpose.msk.msra.mxu0 %vm1119_vm0, %v1108_v4 }
  0x60   : > { %4781 = vmatprep.subr.mxu0 %v6901_v1 }
  0x61   : > { %4799 = vmatpush3.xpose.msk.msra.mxu1 %vm1119_vm0, %v1217_v15 }
  0x62   : > { %4803 = vmatprep.subr.mxu1 %v6901_v1 }
  0x63   : > { %4782 = vmatpush3.xpose.msk.msra.mxu0 %vm1119_vm0, %v1107_v5 }
  0x64   : > { %4783 = vmatprep.subr.mxu0 %v6901_v1  ;;  %4801 = vmatmul.mubr.msk.f32.vlgmr.msra.gmra.mxu1 %vm1119_vm0, %v5674_v8 }
  0x65   : > { %4805 = vmatprep.mubr.msk.f32.mxu1 %vm5386_vm1, %v6901_v1 }
  0x67   : > { %4784 = vmatpush3.xpose.msk.msra.mxu0 %vm1119_vm0, %v1106_v6 }
  0x68   : > { %4785 = vmatprep.subr.mxu0 %v6901_v1 }
  0x6b   : > { %4786 = vmatpush3.xpose.msk.msra.mxu0 %vm1119_vm0, %v1105_v7 }
  0x6c   : > { %4787 = vmatprep.subr.mxu0 %v6901_v1 }
  0x6f   : > { %4788 = vmatpush3.xpose.msk.msra.mxu0 %vm1119_vm0, %v1104_v10 }
  0x70   : > { %4823 = vmatprep.subr.mxu0 %v6901_v1 }
  0x72   : > { %4790 = vmatmul.mubr.msk.f32.vlgmr.msra.gmra.mxu0 %vm1119_vm0, %v1103_v11 }
  0x73   : > { %4825 = vmatprep.mubr.msk.f32.mxu0 %vm5386_vm1, %v6901_v1 }
 0x124   : > { %v1309_v21 = vpop.f32.mrf.mxu1 }
 0x125   : > { %v5707_v26 = vadd.f32 %v4493_v23, %v1309_v21  ;;  %v1992_v21 = vld [vmem:[%s6941_s6 + $0x10] sm:$0xff]  ;;  %v1990_v23 = vld [vmem:[%s6941_s6] sm:$0xff] }
 0x126   : > { %v4802_v22 = vpop.f32.mrf.mxu1 }
 0x127   : > { %v1991_v22 = vld [vmem:[%s6941_s6 + $0x8] sm:$0xff] }
 0x132   : > { %v1213_v17 = vpop.f32.mrf.mxu0 }
 0x133   : > { %v1214_v18 = vadd.f32 %v4483_v16, %v1213_v17 }
 0x134   : > { %v4791_v19 = vpop.f32.mrf.mxu0 }
 0x135   : > { %1479 = vrot.lane.b32.xlu1 %v1214_v18, %s5387_s22  ;;  %1315 = vrot.lane.b32.xlu0 %v1214_v18, %s5388_s23  ;;  %v1313_v20 = vmul.f32 0.35355338, %v1214_v18  ;;  %s6866_s22 = smov 112   ;;  %s5393_s23 = smov 72  }
 0x139   : > { %1477 = vrot.lane.b32.xlu1 %v1313_v20, %s6872_s5 }
 0x13d   : > { %1645 = vrot.lane.b32.xlu1 %v1214_v18, %s5390_s9  ;;  %s6868_s9 = smov 104  }
 0x1a7   : > { %v1480_v24 = vpop.permute.xlu1 %1479  ;;  %v1316_v25 = vpop.permute.xlu0 %1315 }
 0x1a8   : > { %4804 = vmatpush3.xpose.msk.msra.mxu1 %vm1317_vm2, %v1316_v25 }
 0x1a9   : > { %4808 = vmatprep.subr.mxu1 %v6901_v1 }
 0x1ab   : > { %v1478_v27 = vpop.permute.xlu1 %1477  ;;  %4806 = vmatmul.mubr.msk.f32.vlgmr.msra.gmra.mxu1 %vm1317_vm2, %v1313_v20 }
 0x1ac   : > { %4809 = vmatpush3.msra.mxu1 %v5707_v26  ;;  %4810 = vmatprep.mubr.msk.f32.mxu1 %vm5386_vm1, %v6901_v1 }
 0x1ad   : > { %4813 = vmatprep.subr.mxu1 %v6901_v1 }
 0x1af   : > { %v1646_v28 = vpop.permute.xlu1 %1645 }
 0x1b0   : > { %4824 = vmatpush3.xpose.msk.msra.mxu0 %vm1317_vm2, %v1646_v28 }
 0x1b1   : > { %4833 = vmatprep.subr.mxu0 %v6901_v1 }
 0x26b   : > { %v1389_v29 = vpop.f32.mrf.mxu1 }
 0x26c   : > { %v1393_v30 = vsel %vm1317_vm2, %v1389_v29, -inf }
 0x26d   : > { %1394 = vmax.xlane.f32.xlu0 %v1393_v30  ;;  %v4807_v31 = vpop.f32.mrf.mxu1 }
 0x283   : > { %1808 = vrot.lane.b32.xlu0 %v1313_v20, %s6868_s9 }
 0x2f6   : > { %v1395_v32 = vpop.xlane.xlu0 %1394 }
 0x2f7   : > { %v1396_v33 = vsub.f32 %v1389_v29, %v1395_v32 }
 0x2f9   : > { %v1397_v34 = vmul.f32 1.442695, %v1396_v33 }
 0x2fa   : > { %v1809_v40 = vpop.permute.xlu0 %1808 }
 0x2fb   : > { %5264 = vpow2.f32 %v1397_v34 }
 0x308   : > { %v5265_v35 = vpop.eup %5264 }
 0x309   : > { %v1399_v36 = vsel %vm1317_vm2, %v5265_v35, 0.0 }
 0x30a   : > { %1400 = vadd.xlane.f32.xlu1 %v1399_v36  ;;  %v4511_v36 = vld [vmem:[%s6947_s12] ss:$0 sm:$0xff] }
 0x31b   : > { %1643 = vrot.lane.b32.xlu1 %v1313_v20, %s6866_s22  ;;  %v1993_v20 = vld [vmem:[%s6941_s6 + $0x18] sm:$0xff]  ;;  %s6961_s6 = sld [smem:[#allocation10_spill]] }
 0x31f   : > { %1810 = vrot.lane.b32.xlu1 %v1214_v18, %s5393_s23  ;;  %s6871_s23 = smov 8  }
 0x393   : > { %v1401_v37 = vpop.xlane.xlu1 %1400 }
 0x394   : > { %5266 = vrcp.f32 %v1401_v37 }
 0x397   : > { %v1644_v38 = vpop.permute.xlu1 %1643 }
 0x398   : > { %4826 = vmatmul.mubr.msk.f32.vlgmr.msra.gmra.mxu0 %vm1317_vm2, %v1644_v38 }
 0x399   : > { %4835 = vmatprep.mubr.msk.f32.mxu0 %vm5386_vm1, %v6901_v1 }
 0x39b   : > { %v1811_v39 = vpop.permute.xlu1 %1810 }
 0x39c   : > { %4834 = vmatpush3.xpose.msk.msra.mxu0 %vm1317_vm2, %v1811_v39 }
 0x39d   : > { %4843 = vmatprep.subr.mxu0 %v6901_v1 }
 0x39f   : > { %4836 = vmatmul.mubr.msk.f32.vlgmr.msra.gmra.mxu0 %vm1317_vm2, %v1809_v40 }
 0x3a0   : > { %4851 = vmatprep.mubr.msk.f32.mxu0 %vm5386_vm1, %v6901_v1  ;;  %4844 = vmatpush3.xpose.msk.msra.mxu0 %vm1119_vm0, %v1993_v20  ;;  %v2318_v20 = vld [vmem:[%s5517_s25 + $0x10] sm:$0xff] }
 0x3a1   : > { %v5267_v41 = vpop.eup %5266  ;;  %4845 = vmatprep.subr.mxu0 %v6901_v1 }
 0x3a2   : > { %v1403_v42 = vmul.f32 %v5267_v41, %v5265_v35 }
 0x3a4   : > { %4811 = vmatmul.mubr.msk.f32.vlgmr.msra.gmra.mxu1 %vm1317_vm2, %v1403_v42  ;;  %4846 = vmatpush3.xpose.msk.msra.mxu0 %vm1119_vm0, %v1992_v21  ;;  %v2151_v42 = vld [vmem:[%s6942_s4 + $0x18] sm:$0xff]  ;;  %v2413_v21 = vld [vmem:[%s5527_s21 + $0x8] sm:$0xff] }
 0x3a5   : > { %4814 = vmatpush3.xpose.msk.msra.mxu1 %vm1317_vm2, %v1480_v24  ;;  %4815 = vmatprep.mubr.msk.f32.mxu1 %vm5386_vm1, %v6901_v1 }
 0x3a6   : > { %4818 = vmatprep.subr.mxu1 %v6901_v1  ;;  %4847 = vmatprep.subr.mxu0 %v6901_v1 }
 0x3a8   : > { %4816 = vmatmul.mubr.msk.f32.vlgmr.msra.gmra.mxu1 %vm1317_vm2, %v1478_v27  ;;  %4848 = vmatpush3.xpose.msk.msra.mxu0 %vm1119_vm0, %v1991_v22  ;;  %v2317_v22 = vld [vmem:[%s5517_s25 + $0x8] sm:$0xff] }
 0x3a9   : > { %4820 = vmatprep.mubr.msk.f32.mxu1 %vm5386_vm1, %v6901_v1  ;;  %4849 = vmatprep.subr.mxu0 %v6901_v1 }
 0x3ac   : > { %4850 = vmatpush3.xpose.msk.msra.mxu0 %vm1119_vm0, %v1990_v23  ;;  %v2412_v23 = vld [vmem:[%s5527_s21] sm:$0xff] }
 0x3ad   : > { %4877 = vmatprep.subr.mxu0 %v6901_v1 }
 0x458   : > { %v1717_v43 = vpop.f32.mrf.mxu0 }
 0x459   : > { %v1721_v44 = vsel %vm1317_vm2, %v1717_v43, -inf }
 0x45a   : > { %1722 = vmax.xlane.f32.xlu0 %v1721_v44  ;;  %v4827_v45 = vpop.f32.mrf.mxu0 }
 0x45f   : > { %v1882_v46 = vpop.f32.mrf.mxu0 }
 0x460   : > { %v1886_v53 = vsel %vm1317_vm2, %v1882_v46, -inf }
 0x461   : > { %v4837_v47 = vpop.f32.mrf.mxu0 }
 0x462   : > { %v2148_v47 = vld [vmem:[%s6942_s4] sm:$0xff] }
 0x464   : > { %v5738_v48 = vpop.f32.mrf.mxu1 }
 0x466   : > { %v4812_v49 = vpop.f32.mrf.mxu1 }
 0x468   : > { %v1551_v50 = vpop.f32.mrf.mxu1 }
 0x469   : > { %v1555_v51 = vsel %vm1317_vm2, %v1551_v50, -inf }
 0x46a   : > { %1556 = vmax.xlane.f32.xlu1 %v1555_v51  ;;  %v4817_v52 = vpop.f32.mrf.mxu1 }
 0x46e   : > { %1887 = vmax.xlane.f32.xlu1 %v1886_v53 }
 0x470   : > { %1567 = vrot.lane.b32.xlu0 %v5707_v26, %s6872_s5 }
 0x4e3   : > { %v1723_v54 = vpop.xlane.xlu0 %1722 }
 0x4e4   : > { %v1724_v55 = vsub.f32 %v1717_v43, %v1723_v54  ;;  %v2150_v43 = vld [vmem:[%s6942_s4 + $0x10] sm:$0xff] }
 0x4e6   : > { %v1725_v56 = vmul.f32 1.442695, %v1724_v55 }
 0x4e7   : > { %v1568_v57 = vpop.permute.xlu0 %1567 }
 0x4e8   : > { %5268 = vpow2.f32 %v1725_v56  ;;  %4819 = vmatpush3.msra.mxu1 %v1568_v57 }
 0x4e9   : > { %4828 = vmatprep.subr.mxu1 %v6901_v1 }
 0x4f3   : > { %v1557_v58 = vpop.xlane.xlu1 %1556 }
 0x4f4   : > { %v1558_v3 = vsub.f32 %v1551_v50, %v1557_v58 }
 0x4f5   : > { %v5269_v59 = vpop.eup %5268 }
 0x4f6   : > { %v1727_v60 = vsel %vm1317_vm2, %v5269_v59, 0.0  ;;  %v1559_v4 = vmul.f32 1.442695, %v1558_v3 }
 0x4f7   : > { %1728 = vadd.xlane.f32.xlu1 %v1727_v60  ;;  %v1888_v61 = vpop.xlane.xlu1 %1887 }
 0x4f8   : > { %v1889_v62 = vsub.f32 %v1882_v46, %v1888_v61  ;;  %v2149_v46 = vld [vmem:[%s6942_s4 + $0x8] sm:$0xff] }
 0x4fa   : > { %v1890_v63 = vmul.f32 1.442695, %v1889_v62 }
 0x4fc   : > { %5270 = vpow2.f32 %v1890_v63 }
 0x4fd   : > { %5272 = vpow2.f32 %v1559_v4 }
 0x509   : > { %v5271_v0 = vpop.eup %5270 }
 0x50a   : > { %v1892_v2 = vsel %vm1317_vm2, %v5271_v0, 0.0  ;;  %v5273_v5 = vpop.eup %5272 }
 0x50b   : > { %1893 = vadd.xlane.f32.xlu1 %v1892_v2  ;;  %v1561_v6 = vsel %vm1317_vm2, %v5273_v5, 0.0 }
 0x51c   : > { %1732 = vrot.lane.b32.xlu1 %v5707_v26, %s6866_s22  ;;  %s6874_s22 = smov 16  }
 0x540   : > { %1562 = vadd.xlane.f32.xlu1 %v1561_v6 }
 0x551   : > { %1897 = vrot.lane.b32.xlu1 %v5707_v26, %s6868_s9  ;;  %s6870_s9 = smov 24  }
 0x580   : > { %v1729_v7 = vpop.xlane.xlu1 %1728 }
 0x594   : > { %v1894_v10 = vpop.xlane.xlu1 %1893 }
 0x598   : > { %v1733_v11 = vpop.permute.xlu1 %1732 }
 0x5c9   : > { %v1563_v12 = vpop.xlane.xlu1 %1562 }
 0x5ca   : > { %5274 = vrcp.f32 %v1563_v12 }
 0x5cb   : > { %5276 = vrcp.f32 %v1729_v7 }
 0x5cc   : > { %5278 = vrcp.f32 %v1894_v10 }
 0x5cd   : > { %v1898_v18 = vpop.permute.xlu1 %1897 }
 0x5d7   : > { %v5275_v13 = vpop.eup %5274 }
 0x5d8   : > { %v1565_v14 = vmul.f32 %v5275_v13, %v5273_v5  ;;  %v5277_v15 = vpop.eup %5276 }
 0x5d9   : > { %v1731_v16 = vmul.f32 %v5277_v15, %v5269_v59  ;;  %v5279_v17 = vpop.eup %5278 }
 0x5da   : > { %4821 = vmatmul.mubr.msk.f32.vlgmr.msra.gmra.mxu1 %vm1317_vm2, %v1565_v14  ;;  %v1896_v19 = vmul.f32 %v5279_v17, %v5271_v0 }
 0x5db   : > { %4829 = vmatpush3.msra.mxu1 %v1733_v11  ;;  %4830 = vmatprep.mubr.msk.f32.mxu1 %vm5386_vm1, %v6901_v1 }
 0x5dc   : > { %4838 = vmatprep.subr.mxu1 %v6901_v1 }
 0x5de   : > { %4831 = vmatmul.mubr.msk.f32.vlgmr.msra.gmra.mxu1 %vm1317_vm2, %v1731_v16 }
 0x5df   : > { %4839 = vmatpush3.msra.mxu1 %v1898_v18  ;;  %4840 = vmatprep.mubr.msk.f32.mxu1 %vm5386_vm1, %v6901_v1 }
 0x5e0   : > { %4854 = vmatprep.subr.msk.mxu1 %vm1119_vm0, %v2151_v42 }
 0x5e2   : > { %4841 = vmatmul.mubr.msk.f32.vlgmr.msra.gmra.mxu1 %vm1317_vm2, %v1896_v19  ;;  %v2319_v19 = vld [vmem:[%s5517_s25 + $0x18] sm:$0xff] }
 0x5e3   : > { %4855 = vmatpush3.xpose.msk.msra.mxu1 %vm1119_vm0, %v2151_v42 }
 0x5e4   : > { %4856 = vmatprep.subr.msk.mxu1 %vm1119_vm0, %v2150_v43 }
 0x5e7   : > { %4857 = vmatpush3.xpose.msk.msra.mxu1 %vm1119_vm0, %v2150_v43 }
 0x5e8   : > { %4858 = vmatprep.subr.msk.mxu1 %vm1119_vm0, %v2149_v46 }
 0x5eb   : > { %4859 = vmatpush3.xpose.msk.msra.mxu1 %vm1119_vm0, %v2149_v46 }
 0x5ec   : > { %4860 = vmatprep.subr.msk.mxu1 %vm1119_vm0, %v2148_v47 }
 0x5ef   : > { %4861 = vmatpush3.xpose.msk.msra.mxu1 %vm1119_vm0, %v2148_v47 }
 0x5f0   : > { %4888 = vmatprep.subr.mxu1 %v6901_v1 }
 0x69a   : > { %v1639_v24 = vpop.f32.mrf.mxu1 }
 0x69b   : > { %1974 = vrot.lane.b32.xlu0 %v1639_v24, %s6871_s23  ;;  %v2316_v24 = vld [vmem:[%s5517_s25] sm:$0xff] }
 0x69c   : > { %v4822_v25 = vpop.f32.mrf.mxu1 }
 0x69d   : > { %v2582_v25 = vlaneseq }
 0x69e   : > { %v1804_v26 = vpop.f32.mrf.mxu1 }
 0x69f   : > { %1978 = vrot.lane.b32.xlu1 %v1804_v26, %s6874_s22  ;;  %v5860_v26 = vshrl.u32 %v2582_v25, 7 }
 0x6a0   : > { %v4832_v27 = vpop.f32.mrf.mxu1 }
 0x6a1   : > { %v5863_v27 = vld [vmem:[%s5452_s29] sm:$0xff] }
 0x6a2   : > { %v1969_v28 = vpop.f32.mrf.mxu1 }
 0x6a3   : > { %1982 = vrot.lane.b32.xlu0 %v1969_v28, %s6870_s9  ;;  %s5035_s9 = smul.u32 80, %s5658_s2  ;;  %v2597_v28 = vsub.s32 3, %v5860_v26  ;;  %s6950_s2 = smov 120  }
 0x6a4   : > { %v4842_v29 = vpop.f32.mrf.mxu1 }
 0x6a5   : > { %s5787_s23 = scalar_lea.vmem %s6948_s13, %s5035_s9  ;;  %s5790_s5 = scalar_lea.vmem %s5437_s17, %s5035_s9  ;;  %v2598_v29 = vrot.slane %v5863_v27, %v2597_v28 }
 0x6a6   : > { %v2128_v44 = vld [vmem:[%s5790_s5] sm:$0xff]  ;;  %v2129_v49 = vld [vmem:[%s5790_s5 + $0x8] sm:$0xff]  ;;  %v2120_v50 = vld [vmem:[%s5787_s23 + $0x10] sm:$0xff]  ;;  %s6953_s9 = smov 104   ;;  %s5413_s13 = smov [#allocation2]  }
 0x6a7   : > { %v2130_v51 = vld [vmem:[%s5790_s5 + $0x10] sm:$0xff]  ;;  %v2121_v54 = vld [vmem:[%s5787_s23 + $0x18] sm:$0xff]  ;;  %v2122_v56 = vld [vmem:[%s5787_s23 + $0x20] sm:$0xff]  ;;  %s5294_s14 = sshll.u32 %s5413_s13, 4  ;;  %s5295_s14 = int_to_ptr.vmem [resolvable:$false] %s5294_s14 }
 0x6a8   : > { %v2140_v53 = vadd.f32 %v2130_v51, %v2120_v50  ;;  %v2131_v55 = vld [vmem:[%s5790_s5 + $0x18] sm:$0xff]  ;;  %v2132_v57 = vld [vmem:[%s5790_s5 + $0x20] sm:$0xff]  ;;  %v2123_v60 = vld [vmem:[%s5787_s23 + $0x28] sm:$0xff] }
 0x6a9   : > { %v2141_v58 = vadd.f32 %v2131_v55, %v2121_v54  ;;  %v2142_v59 = vadd.f32 %v2132_v57, %v2122_v56  ;;  %v2133_v61 = vld [vmem:[%s5790_s5 + $0x28] sm:$0xff]  ;;  %v2124_v62 = vld [vmem:[%s5787_s23 + $0x30] sm:$0xff]  ;;  %v2125_v3 = vld [vmem:[%s5787_s23 + $0x38] sm:$0xff] }
 0x6aa   : > { %v2134_v63 = vld [vmem:[%s5790_s5 + $0x30] sm:$0xff]  ;;  %v2143_v0 = vadd.f32 %v2133_v61, %v2123_v60  ;;  %v2135_v4 = vld [vmem:[%s5790_s5 + $0x38] sm:$0xff]  ;;  %v2126_v5 = vld [vmem:[%s5787_s23 + $0x40] sm:$0xff] }
 0x6ab   : > { %v2144_v2 = vadd.f32 %v2134_v63, %v2124_v62  ;;  %v2136_v6 = vld [vmem:[%s5790_s5 + $0x40] sm:$0xff]  ;;  %v2145_v7 = vadd.f32 %v2135_v4, %v2125_v3  ;;  %v2127_v11 = vld [vmem:[%s5787_s23 + $0x48] sm:$0xff] }
 0x6ac   : > { %v2146_v10 = vadd.f32 %v2136_v6, %v2126_v5  ;;  %v2137_v12 = vld [vmem:[%s5790_s5 + $0x48] sm:$0xff]  ;;  %s6949_s5 = sld [smem:[#allocation18_spill]] }
 0x6ad   : > { %v2147_v13 = vadd.f32 %v2137_v12, %v2127_v11 }
 0x70d   : > { %v1975_v30 = vpop.permute.xlu0 %1974 }
 0x70e   : > { %v1985_v32 = vsel %vm1317_vm2, %v5738_v48, %v1975_v30  ;;  %v2119_v48 = vld [vmem:[%s5787_s23 + $0x8] sm:$0xff] }
 0x70f   : > { %v2139_v52 = vadd.f32 %v2129_v49, %v2119_v48 }
 0x711   : > { %v1979_v31 = vpop.permute.xlu1 %1978 }
 0x712   : > { %v1987_v33 = vsel %vm1986_vm3, %v1985_v32, %v1979_v31 }
 0x715   : > { %v1983_v34 = vpop.permute.xlu0 %1982 }
 0x716   : > { %v1989_v35 = vsel %vm1988_vm4, %v1987_v33, %v1983_v34 }
 0x717   : > { %4852 = vmatmul.mubr.msk.f32.vlgmr.msra.gmra.mxu0 %vm1119_vm0, %v1989_v35 }
 0x718   : > { %4885 = vmatprep.mubr.msk.f32.mxu0 %vm5386_vm1, %v6901_v1  ;;  %4878 = vmatpush3.xpose.msk.msra.mxu0 %vm1119_vm0, %v2319_v19 }
 0x719   : > { %4879 = vmatprep.subr.mxu0 %v6901_v1 }
 0x71c   : > { %4880 = vmatpush3.xpose.msk.msra.mxu0 %vm1119_vm0, %v2318_v20 }
 0x71d   : > { %4881 = vmatprep.subr.mxu0 %v6901_v1 }
 0x720   : > { %4882 = vmatpush3.xpose.msk.msra.mxu0 %vm1119_vm0, %v2317_v22 }
 0x721   : > { %4883 = vmatprep.subr.mxu0 %v6901_v1 }
 0x724   : > { %4884 = vmatpush3.xpose.msk.msra.mxu0 %vm1119_vm0, %v2316_v24 }
 0x725   : > { %4895 = vmatprep.subr.mxu0 %v6901_v1 }
 0x7d7   : > { %v2082_v37 = vpop.f32.mrf.mxu0 }
 0x7d8   : > { %v2083_v38 = vadd.f32 %v4511_v36, %v2082_v37 }
 0x7d9   : > { %v4853_v39 = vpop.f32.mrf.mxu0 }
 0x7da   : > { %v2086_v40 = vadd.f32 %v2083_v38, %v5674_v8  ;;  %v2118_v8 = vld [vmem:[%s5787_s23] sm:$0xff]  ;;  %s6954_s23 = sld [smem:[#allocation15_spill]] }
 0x7db   : > { %v2138_v45 = vadd.f32 %v2128_v44, %v2118_v8  ;;  %v4519_v38 = vld [vmem:[%s6949_s5] ss:$0 sm:$0xff]  ;;  %s6955_s5 = smov 112  }
 0x7dc   : > { %v2089_v41 = vsel %vm1119_vm0, %v2086_v40, 0.0 }
 0x7dd   : > { %2090 = vadd.xlane.f32.xlu1 %v2089_v41  ;;  %4862 = vmatprep.mubr.msk.f32.mxu1 %vm1119_vm0, %v2138_v45 }
 0x7de   : > { %4863 = vmatmul.mubr.msk.f32.vlgmr.msra.gmra.mxu1 %vm1119_vm0, %v2139_v52 }
 0x7df   : > { %4865 = vmatprep.mubr.msk.f32.mxu1 %vm1119_vm0, %v2140_v53  ;;  %4889 = vmatpush3.xpose.msk.msra.mxu1 %vm1119_vm0, %v2413_v21 }
 0x7e0   : > { %4890 = vmatprep.subr.mxu1 %v6901_v1  ;;  %v4517_v54 = vld [vmem:[%s6954_s23] ss:$0 sm:$0xff]  ;;  %s6960_s23 = sld [smem:[#allocation8_spill]] }
 0x7e2   : > { %4866 = vmatmul.mubr.msk.f32.gmra.mxu1 %vm1119_vm0, %v2141_v58 }
 0x7e3   : > { %4868 = vmatprep.mubr.msk.f32.mxu1 %vm1119_vm0, %v2142_v59  ;;  %4891 = vmatpush3.xpose.msk.msra.mxu1 %vm1119_vm0, %v2412_v23 }
 0x7e4   : > { %4925 = vmatprep.subr.mxu1 %v6901_v1 }
 0x7e6   : > { %4869 = vmatmul.mubr.msk.f32.gmra.mxu1 %vm1119_vm0, %v2143_v0  ;;  %s1096_s4 = scalar_lea.vmem %s6960_s23, %s5664_s16  ;;  %s7074_s23 = smov 24  }
 0x7e7   : > { %4871 = vmatprep.mubr.msk.f32.mxu1 %vm1119_vm0, %v2144_v2 }
 0x7ea   : > { %4872 = vmatmul.mubr.msk.f32.gmra.mxu1 %vm1119_vm0, %v2145_v7  ;;  %v2584_v7 = vsub.s32 2, %v5860_v26 }
 0x7eb   : > { %4874 = vmatprep.mubr.msk.f32.mxu1 %vm1119_vm0, %v2146_v10 }
 0x7ec   : > { %v2585_v12 = vrot.slane %v5863_v27, %v2584_v7 }
 0x7ee   : > { %4875 = vmatmul.mubr.msk.f32.gmra.mxu1 %vm1119_vm0, %v2147_v13  ;;  %2600 = vrot.lane.b32.xlu1 %v2598_v29, %s6874_s22  ;;  %s6956_s22 = sld [smem:[#allocation16_spill]]  ;;  %v2590_v13 = vsub.s32 0, %v5860_v26 }
 0x7ef   : > { %4892 = vmatprep.mubr.msk.f32.mxu1 %vm5386_vm1, %v6901_v1 }
 0x7f0   : > { %v5958_v22 = vrot.slane %v5863_v27, %v2590_v13 }
 0x7f4   : > { %v4518_v56 = vld [vmem:[%s6956_s22] ss:$0 sm:$0xff]  ;;  %s6958_s22 = sld [smem:[#allocation19_spill]] }
 0x7fa   : > { %v4534_v10 = vld [vmem:[%s6958_s22] ss:$0 sm:$0xff]  ;;  %s6962_s22 = sld [smem:[#allocation9_spill]] }
 0x866   : > { %v2091_v14 = vpop.xlane.xlu1 %2090 }
 0x867   : > { %v2093_v15 = vmul.f32 0.03125, %v2091_v14 }
 0x869   : > { %v5837_v16 = vsub.f32 %v2086_v40, %v2093_v15 }
 0x86a   : > { %v2601_v60 = vpop.permute.xlu1 %2600 }
 0x86b   : > { %v2095_v17 = vmul.f32 %v5837_v16, %v5837_v16 }
 0x86d   : > { %v2096_v18 = vsel %vm1119_vm0, %v2095_v17, 0.0 }
 0x86e   : > { %2097 = vadd.xlane.f32.xlu0 %v2096_v18  ;;  %v2581_v18 = vld [vmem:[%s1096_s4] sm:$0xff]  ;;  %s1100_s4 = scalar_lea.vmem %s6962_s22, %s5664_s16  ;;  %s7027_s16 = sld [smem:[#allocation11_spill]] }
 0x86f   : > { %s7075_s22 = smov 16  }
 0x89e   : > { %v4864_v30 = vpop.f32.mrf.mxu1 }
 0x89f   : > { %v5897_v48 = vadd.f32 %v4864_v30, %v4519_v38 }
 0x8a0   : > { %v2267_v31 = vpop.f32.mrf.mxu1 }
 0x8a1   : > { %6951 = vst [vmem:[#allocation28_spill] sm:$0xff] %v5897_v48  ;;  %v5903_v49 = vadd.f32 %v4519_v38, %v2267_v31 }
 0x8a2   : > { %v4867_v32 = vpop.f32.mrf.mxu1 }
 0x8a3   : > { %v5893_v47 = vadd.f32 %v4867_v32, %v4519_v38  ;;  %6952 = vst [vmem:[#allocation29_spill] sm:$0xff] %v5903_v49  ;;  %v2504_v32 = vld [vmem:[%s6961_s6 + $0x8] sm:$0xff] }
 0x8a4   : > { %v2277_v33 = vpop.f32.mrf.mxu1 }
 0x8a5   : > { %v5889_v46 = vadd.f32 %v4519_v38, %v2277_v33  ;;  %v2503_v33 = vld [vmem:[%s6961_s6] sm:$0xff] }
 0x8a6   : > { %v4870_v34 = vpop.f32.mrf.mxu1 }
 0x8a7   : > { %v5885_v45 = vadd.f32 %v4870_v34, %v4519_v38  ;;  %v6909_v34 = vmov 4  }
 0x8a8   : > { %v2287_v35 = vpop.f32.mrf.mxu1  ;;  %5138 = vset.pattern.permute.xlu0 %v6909_v34 }
 0x8a9   : > { %v5881_v44 = vadd.f32 %v4519_v38, %v2287_v35  ;;  %v6893_v35 = vmov 0  }
 0x8aa   : > { %v4873_v36 = vpop.f32.mrf.mxu1  ;;  %5136 = vset.pattern.permute.xlu1 %v6893_v35 }
 0x8ab   : > { %v5871_v42 = vadd.f32 %v4873_v36, %v4519_v38 }
 0x8ac   : > { %v2297_v37 = vpop.f32.mrf.mxu1 }
 0x8ad   : > { %v5877_v8 = vadd.f32 %v4519_v38, %v2297_v37  ;;  %v2611_v37 = vsub.s32 1, %v5860_v26 }
 0x8ae   : > { %v4876_v39 = vpop.f32.mrf.mxu1 }
 0x8af   : > { %v5869_v40 = vadd.f32 %v4876_v39, %v4519_v38 }
 0x8b0   : > { %v2307_v41 = vpop.f32.mrf.mxu1 }
 0x8b1   : > { %v5873_v43 = vadd.f32 %v4519_v38, %v2307_v41  ;;  %3217 = vrot.lane.b32.xlu0 %v5869_v40, %s6950_s2  ;;  %v2594_v41 = vld [vmem:[%s1100_s4] sm:$0xff]  ;;  %s7076_s4 = sld [smem:[#allocation25_spill]] }
 0x8b3   : > { %3215 = vrot.lane.b32.xlu1 %v5873_v43, %s6950_s2 }
 0x8b5   : > { %3213 = vrot.lane.b32.xlu0 %v5871_v42, %s6950_s2 }
 0x8b7   : > { %3211 = vrot.lane.b32.xlu1 %v5877_v8, %s6950_s2 }
 0x8b9   : > { %3207 = vrot.lane.b32.xlu0 %v5881_v44, %s6950_s2 }
 0x8bb   : > { %3209 = vrot.lane.b32.xlu1 %v5885_v45, %s6950_s2 }
 0x8bd   : > { %3203 = vrot.lane.b32.xlu0 %v5889_v46, %s6950_s2 }
 0x8bf   : > { %3205 = vrot.lane.b32.xlu1 %v5893_v47, %s6950_s2 }
 0x8c1   : > { %3201 = vrot.lane.b32.xlu0 %v5897_v48, %s6950_s2 }
 0x8c3   : > { %3839 = vrot.lane.b32.xlu1 %v5869_v40, %s6953_s9 }
 0x8c5   : > { %3199 = vrot.lane.b32.xlu0 %v5903_v49, %s6950_s2  ;;  %s6959_s2 = sld [smem:[#allocation20_spill]] }
 0x8c7   : > { %3526 = vrot.lane.b32.xlu1 %v5873_v43, %s6955_s5 }
 0x8c9   : > { %3528 = vrot.lane.b32.xlu0 %v5869_v40, %s6955_s5 }
 0x8cb   : > { %3837 = vrot.lane.b32.xlu1 %v5873_v43, %s6953_s9  ;;  %v4540_v11 = vld [vmem:[%s6959_s2] ss:$0 sm:$0xff]  ;;  %s7073_s2 = sld [smem:[#allocation22_spill]] }
 0x8cf   : > { %3524 = vrot.lane.b32.xlu1 %v5871_v42, %s6955_s5 }
 0x8d3   : > { %3835 = vrot.lane.b32.xlu1 %v5871_v42, %s6953_s9 }
 0x8d7   : > { %3522 = vrot.lane.b32.xlu1 %v5877_v8, %s6955_s5 }
 0x8db   : > { %3833 = vrot.lane.b32.xlu1 %v5877_v8, %s6953_s9 }
 0x8df   : > { %3520 = vrot.lane.b32.xlu1 %v5885_v45, %s6955_s5 }
 0x8f7   : > { %v2098_v50 = vpop.xlane.xlu0 %2097 }
 0x8f8   : > { %v2099_v51 = vmul.f32 0.03125, %v2098_v50 }
 0x8fa   : > { %v2100_v52 = vadd.f32 1e-05, %v2099_v51  ;;  %v2612_v51 = vrot.slane %v5863_v27, %v2611_v37 }
 0x8fc   : > { %5280 = vrsqrt.f32 %v2100_v52 }
 0x909   : > { %v5281_v53 = vpop.eup %5280 }
 0x90a   : > { %v2102_v55 = vmul.f32 %v5281_v53, %v5837_v16 }
 0x90c   : > { %v2109_v57 = vmul.f32 %v4517_v54, %v2102_v55 }
 0x90e   : > { %v5930_v58 = vadd.f32 %v4518_v56, %v2109_v57  ;;  %v4548_v57 = vadd.f32 -1.0, %v5863_v27 }
 0x910   : > { %6957 = vst [vmem:[#allocation30_spill] sm:$0xff] %v5930_v58  ;;  %v2117_v59 = vadd.f32 %v5930_v58, %v5676_v9 }
 0x912   : > { %4886 = vmatmul.mubr.msk.f32.vlgmr.msra.gmra.mxu0 %vm1119_vm0, %v2117_v59  ;;  %4893 = vmatmul.mubr.msk.f32.vlgmr.msra.gmra.mxu1 %vm1119_vm0, %v2117_v59 }
 0x913   : > { %4899 = vmatprep.mubr.msk.f32.mxu0 %vm5386_vm1, %v6901_v1  ;;  %4945 = vmatprep.mubr.msk.f32.mxu1 %vm5386_vm1, %v6901_v1 }
 0x914   : > { %4896 = vmatpush3.msra.mxu0 %v2504_v32  ;;  %v6883_v32 = vmov 11  }
 0x915   : > { %4897 = vmatprep.subr.mxu0 %v6901_v1 }
 0x916   : > { %4898 = vmatpush3.msra.mxu0 %v2503_v33  ;;  %v6877_v33 = vmov 15  }
 0x917   : > { %4902 = vmatprep.subr.mxu0 %v6901_v1 }
 0x923   : > { %v3218_v63 = vpop.permute.xlu0 %3217 }
 0x924   : > { %4926 = vmatpush3.msra.mxu1 %v3218_v63 }
 0x925   : > { %v3216_v61 = vpop.permute.xlu1 %3215  ;;  %4927 = vmatprep.subr.mxu1 %v6901_v1 }
 0x926   : > { %4928 = vmatpush3.msra.mxu1 %v3216_v61  ;;  %v2652_v61 = vsub.s32 4, %v5860_v26 }
 0x927   : > { %v3214_v0 = vpop.permute.xlu0 %3213  ;;  %4929 = vmatprep.subr.mxu1 %v6901_v1 }
 0x928   : > { %4930 = vmatpush3.msra.mxu1 %v3214_v0 }
 0x929   : > { %v3212_v62 = vpop.permute.xlu1 %3211  ;;  %4931 = vmatprep.subr.mxu1 %v6901_v1 }
 0x92a   : > { %4932 = vmatpush3.msra.mxu1 %v3212_v62 }
 0x92b   : > { %v3208_v2 = vpop.permute.xlu0 %3207  ;;  %4933 = vmatprep.subr.mxu1 %v6901_v1 }
 0x92d   : > { %v3210_v9 = vpop.permute.xlu1 %3209 }
 0x92e   : > { %4934 = vmatpush3.msra.mxu1 %v3210_v9 }
 0x92f   : > { %4935 = vmatprep.subr.mxu1 %v6901_v1  ;;  %v3204_v4 = vpop.permute.xlu0 %3203 }
 0x930   : > { %4936 = vmatpush3.msra.mxu1 %v3208_v2 }
 0x931   : > { %v3206_v3 = vpop.permute.xlu1 %3205  ;;  %4937 = vmatprep.subr.mxu1 %v6901_v1 }
 0x932   : > { %4938 = vmatpush3.msra.mxu1 %v3206_v3  ;;  %v2641_v3 = vrot.slane %v4548_v57, %v2590_v13 }
 0x933   : > { %4939 = vmatprep.subr.mxu1 %v6901_v1  ;;  %v3202_v5 = vpop.permute.xlu0 %3201 }
 0x934   : > { %4940 = vmatpush3.msra.mxu1 %v3204_v4 }
 0x935   : > { %4941 = vmatprep.subr.mxu1 %v6901_v1 }
 0x936   : > { %4942 = vmatpush3.msra.mxu1 %v3202_v5  ;;  %v2653_v5 = vrot.slane %v5863_v27, %v2652_v61 }
 0x937   : > { %4943 = vmatprep.subr.mxu1 %v6901_v1  ;;  %v3200_v6 = vpop.permute.xlu0 %3199 }
 0x938   : > { %4944 = vmatpush3.msra.mxu1 %v3200_v6 }
 0x939   : > { %4971 = vmatprep.subr.mxu1 %v6901_v1 }
 0x93b   : > { %v5971_v36 = vpop.permute.xlu0 %3528 }
 0x93c   : > { %6963 = vst [vmem:[#allocation31_spill] sm:$0xff] %v5971_v36 }
 0x9d2   : > { %v2408_v14 = vpop.f32.mrf.mxu0  ;;  %v2493_v15 = vpop.f32.mrf.mxu1 }
 0x9d3   : > { %v2409_v16 = vadd.f32 %v4534_v10, %v2408_v14  ;;  %v2494_v17 = vadd.f32 %v4540_v11, %v2493_v15 }
 0x9d4   : > { %v4894_v19 = vpop.f32.mrf.mxu1  ;;  %v4887_v20 = vpop.f32.mrf.mxu0 }
 0x9d5   : > { %v2586_v21 = vmul.f32 %v2585_v12, %v2409_v16  ;;  %v2497_v23 = vsel %vm1986_vm3, %v2494_v17, -inf  ;;  %v2603_v31 = vmul.f32 %v2601_v60, %v2409_v16  ;;  %v2647_v60 = vrot.slane %v4548_v57, %v2611_v37 }
 0x9d6   : > { %2498 = vmax.xlane.f32.xlu0 %v2497_v23  ;;  %v6895_v23 = vmov 1   ;;  %v6889_v37 = vmov 12  }
 0x9d7   : > { %v2587_v24 = vadd.f32 %v2586_v21, %v2581_v18 }
 0x9d9   : > { %v2592_v25 = vmul.f32 %v5958_v22, %v2587_v24  ;;  %v6905_v24 = vmov 2  }
 0x9db   : > { %v4545_v28 = vadd.f32 -0.5, %v2592_v25  ;;  %v6897_v25 = vmov 6  }
 0x9dd   : > { %v2615_v29 = vfloor.f32 %v4545_v28 }
 0x9df   : > { %v5962_v30 = vsub.f32 %v4545_v28, %v2615_v29  ;;  %v2617_v54 = vadd.f32 1.0, %v2615_v29  ;;  %vm2627_vm5 = vcmp.ge.f32.partialorder %v2615_v29, 0.0  ;;  %vm2628_vm6 = vcmp.lt.f32.partialorder %v2615_v29, %v5958_v22 }
 0x9e0   : > { %vm5981_vm9 = vmand %vm2627_vm5, %vm2628_vm6  ;;  %v2637_v4 = vmax.f32 %v2615_v29, 0.0  ;;  %v6887_v28 = vmov 9   ;;  %v6899_v29 = vmov 7  }
 0x9e1   : > { %vm2658_vm7 = vcmp.ge.f32.partialorder %v2617_v54, 0.0  ;;  %vm2659_vm8 = vcmp.lt.f32.partialorder %v2617_v54, %v5958_v22  ;;  %v2665_v13 = vmax.f32 %v2617_v54, 0.0 }
 0x9e2   : > { %vm5987_vm12 = vmand %vm2658_vm7, %vm2659_vm8  ;;  %v2642_v15 = vmin.f32 %v2641_v3, %v2637_v4 }
 0x9e3   : > { %v2666_v20 = vmin.f32 %v2641_v3, %v2665_v13 }
 0x9ec   : > { %2605 = vrot.lane.b32.xlu0 %v2603_v31, %s6955_s5  ;;  %v6885_v31 = vmov 13  }
 0xa5f   : > { %v2499_v38 = vpop.xlane.xlu0 %2498 }
 0xa60   : > { %v2500_v39 = vsub.f32 %v2494_v17, %v2499_v38  ;;  %v6879_v38 = vmov 14  }
 0xa62   : > { %v2501_v50 = vmul.f32 1.442695, %v2500_v39  ;;  %v6891_v39 = vmov 8  }
 0xa63   : > { %v2606_v52 = vpop.permute.xlu0 %2605 }
 0xa64   : > { %5282 = vpow2.f32 %v2501_v50  ;;  %v2608_v53 = vadd.f32 %v2606_v52, %v2594_v41  ;;  %v6881_v41 = vmov 10   ;;  %v6117_v50 = vpop.permute.xlu1 %3839 }
 0xa65   : > { %6976 = vst [vmem:[#allocation32_spill] sm:$0xff] %v6117_v50  ;;  %v7002_v50 = vmov 9  }
 0xa66   : > { %v2613_v55 = vmul.f32 %v2612_v51, %v2608_v53 }
 0xa68   : > { %v4546_v56 = vadd.f32 -0.5, %v2613_v55 }
 0xa6a   : > { %v2616_v59 = vfloor.f32 %v4546_v56 }
 0xa6c   : > { %v2618_v63 = vadd.f32 1.0, %v2616_v59  ;;  %v5985_v0 = vsub.f32 %v4546_v56, %v2616_v59  ;;  %vm2630_vm10 = vcmp.ge.f32.partialorder %v2616_v59, 0.0  ;;  %vm2632_vm11 = vcmp.lt.f32.partialorder %v2616_v59, %v2612_v51 }
 0xa6d   : > { %vm2631_vm13 = vmand %vm5981_vm9, %vm2630_vm10  ;;  %v2643_v2 = vmax.f32 %v2616_v59, 0.0 }
 0xa6e   : > { %vm5993_vm14 = vmand %vm2631_vm13, %vm2632_vm11  ;;  %vm2670_vm15 = vcmp.ge.f32.partialorder %v2618_v63, 0.0  ;;  %vm2672_vm6 = vcmp.lt.f32.partialorder %v2618_v63, %v2612_v51  ;;  %v2676_v7 = vmax.f32 %v2618_v63, 0.0  ;;  %v6124_v51 = vpop.permute.xlu1 %3526 }
 0xa6f   : > { %v2648_v6 = vmin.f32 %v2647_v60, %v2643_v2  ;;  %vm2661_vm5 = vmand %vm5987_vm12, %vm2630_vm10  ;;  %6977 = vst [vmem:[#allocation33_spill] sm:$0xff] %v6124_v51  ;;  %v7006_v51 = vmov 10  }
 0xa70   : > { %vm6000_vm7 = vmand %vm2661_vm5, %vm2632_vm11  ;;  %v2677_v27 = vmin.f32 %v2647_v60, %v2676_v7 }
 0xa71   : > { %v6004_v11 = vpop.eup %5282  ;;  %v2649_v12 = vmul.f32 %v2648_v6, %v5958_v22  ;;  %vm2671_vm8 = vmand %vm5981_vm9, %vm2670_vm15 }
 0xa72   : > { %vm6011_vm13 = vmand %vm2671_vm8, %vm2672_vm6  ;;  %4900 = vmatmul.mubr.msk.f32.vlgmr.msra.gmra.mxu0 %vm1986_vm3, %v6004_v11  ;;  %v2678_v17 = vmul.f32 %v2677_v27, %v5958_v22  ;;  %v6130_v52 = vpop.permute.xlu1 %3837 }
 0xa73   : > { %v2654_v16 = vadd.f32 %v2653_v5, %v2649_v12  ;;  %vm2683_vm10 = vmand %vm5987_vm12, %vm2670_vm15  ;;  %4903 = vmatpush3.msra.mxu0 %v5869_v40  ;;  %4922 = vmatprep.mubr.msk.f32.mxu0 %vm5386_vm1, %v6901_v1  ;;  %6978 = vst [vmem:[#allocation34_spill] sm:$0xff] %v6130_v52 }
 0xa74   : > { %vm6025_vm9 = vmand %vm2683_vm10, %vm2672_vm6  ;;  %4904 = vmatprep.subr.mxu0 %v6901_v1  ;;  %v2679_v21 = vadd.f32 %v2678_v17, %v2653_v5 }
 0xa75   : > { %v6030_v19 = vadd.f32 %v2654_v16, %v2642_v15  ;;  %4905 = vmatpush3.msra.mxu0 %v5873_v43  ;;  %v6903_v43 = vmov 3  }
 0xa76   : > { %4906 = vmatprep.subr.mxu0 %v6901_v1  ;;  %v6034_v22 = vadd.f32 %v2679_v21, %v2642_v15  ;;  %v6036_v40 = vadd.f32 %v2679_v21, %v2666_v20  ;;  %v6136_v53 = vpop.permute.xlu1 %3524 }
 0xa77   : > { %4907 = vmatpush3.msra.mxu0 %v5871_v42  ;;  %2982 = vperm.xlu0 %5138, %v6030_v19   ;;  %v6053_v42 = vadd.f32 %v2666_v20, %v2654_v16  ;;  %6979 = vst [vmem:[#allocation35_spill] sm:$0xff] %v6136_v53 }
 0xa78   : > { %2693 = vperm.xlu1 %5136, %v6030_v19   ;;  %4908 = vmatprep.subr.mxu0 %v6901_v1 }
 0xa79   : > { %4909 = vmatpush3.msra.mxu0 %v5877_v8  ;;  %v6908_v8 = vmov 5  }
 0xa7a   : > { %4910 = vmatprep.subr.mxu0 %v6901_v1  ;;  %v6143_v54 = vpop.permute.xlu1 %3835 }
 0xa7b   : > { %4911 = vmatpush3.msra.mxu0 %v5885_v45  ;;  %5142 = vset.pattern.permute.xlu0 %v6903_v43  ;;  %6980 = vst [vmem:[#allocation36_spill] sm:$0xff] %v6143_v54 }
 0xa7c   : > { %5137 = vset.pattern.permute.xlu1 %v6895_v23  ;;  %4912 = vmatprep.subr.mxu0 %v6901_v1 }
 0xa7d   : > { %2733 = vperm.xlu0 %5142, %v6030_v19   ;;  %2707 = vperm.xlu1 %5137, %v6030_v19  }
 0xa7e   : > { %4913 = vmatpush3.msra.mxu0 %v5881_v44  ;;  %v6151_v55 = vpop.permute.xlu1 %3522 }
 0xa7f   : > { %4914 = vmatprep.subr.mxu0 %v6901_v1  ;;  %6981 = vst [vmem:[#allocation37_spill] sm:$0xff] %v6151_v55 }
 0xa80   : > { %4915 = vmatpush3.msra.mxu0 %v5893_v47 }
 0xa81   : > { %4916 = vmatprep.subr.mxu0 %v6901_v1  ;;  %5146 = vset.pattern.permute.xlu0 %v6895_v23 }
 0xa82   : > { %5139 = vset.pattern.permute.xlu1 %v6908_v8  ;;  %4917 = vmatpush3.msra.mxu0 %v5889_v46  ;;  %v6158_v56 = vpop.permute.xlu1 %3833 }
 0xa83   : > { %2995 = vperm.xlu1 %5139, %v6030_v19   ;;  %2761 = vperm.xlu0 %5146, %v6053_v42   ;;  %6982 = vst [vmem:[#allocation38_spill] sm:$0xff] %v6158_v56  ;;  %v6995_v56 = vmov 8  }
 0xa84   : > { %4918 = vmatprep.subr.mxu0 %v6901_v1 }
 0xa85   : > { %4919 = vmatpush3.msra.mxu0 %v5897_v48 }
 0xa86   : > { %4920 = vmatprep.subr.mxu0 %v6901_v1  ;;  %v6164_v57 = vpop.permute.xlu1 %3520 }
 0xa87   : > { %4921 = vmatpush3.msra.mxu0 %v5903_v49  ;;  %5140 = vset.pattern.permute.xlu1 %v6905_v24  ;;  %6983 = vst [vmem:[#allocation39_spill] sm:$0xff] %v6164_v57  ;;  %v7003_v57 = vmov 13  }
 0xa88   : > { %5150 = vset.pattern.permute.xlu0 %v6903_v43  ;;  %2720 = vperm.xlu1 %5140, %v6030_v19  }
 0xa89   : > { %2787 = vperm.xlu0 %5150, %v6053_v42   ;;  %4948 = vmatprep.subr.mxu0 %v6901_v1 }
 0xa8c   : > { %5141 = vset.pattern.permute.xlu1 %v6897_v25 }
 0xa8d   : > { %5153 = vset.pattern.permute.xlu0 %v6887_v28  ;;  %3008 = vperm.xlu1 %5141, %v6030_v19  }
 0xa8e   : > { %3316 = vperm.xlu0 %5153, %v6030_v19  }
 0xa91   : > { %5143 = vset.pattern.permute.xlu1 %v6899_v29 }
 0xa92   : > { %5155 = vset.pattern.permute.xlu0 %v6885_v31  ;;  %3021 = vperm.xlu1 %5143, %v6030_v19  }
 0xa93   : > { %3627 = vperm.xlu0 %5155, %v6030_v19  }
 0xa96   : > { %5144 = vset.pattern.permute.xlu1 %v6893_v35 }
 0xa97   : > { %5158 = vset.pattern.permute.xlu0 %v6883_v32  ;;  %2747 = vperm.xlu1 %5144, %v6053_v42  }
 0xa98   : > { %3342 = vperm.xlu0 %5158, %v6030_v19  }
 0xa9b   : > { %5145 = vset.pattern.permute.xlu1 %v6909_v34 }
 0xa9c   : > { %5159 = vset.pattern.permute.xlu0 %v6877_v33  ;;  %3034 = vperm.xlu1 %5145, %v6053_v42  }
 0xa9d   : > { %3653 = vperm.xlu0 %5159, %v6030_v19  }
 0xaa0   : > { %5147 = vset.pattern.permute.xlu1 %v6908_v8 }
 0xaa1   : > { %5161 = vset.pattern.permute.xlu0 %v6889_v37  ;;  %3047 = vperm.xlu1 %5147, %v6053_v42  }
 0xaa2   : > { %3666 = vperm.xlu0 %5161, %v6053_v42  }
 0xaa5   : > { %5148 = vset.pattern.permute.xlu1 %v6905_v24 }
 0xaa6   : > { %5163 = vset.pattern.permute.xlu0 %v6885_v31  ;;  %2774 = vperm.xlu1 %5148, %v6053_v42  }
 0xaa7   : > { %3679 = vperm.xlu0 %5163, %v6053_v42  }
 0xaaa   : > { %5149 = vset.pattern.permute.xlu1 %v6897_v25 }
 0xaab   : > { %5165 = vset.pattern.permute.xlu0 %v6879_v38  ;;  %3060 = vperm.xlu1 %5149, %v6053_v42  }
 0xaac   : > { %3692 = vperm.xlu0 %5165, %v6053_v42  }
 0xaaf   : > { %5151 = vset.pattern.permute.xlu1 %v6899_v29 }
 0xab0   : > { %5166 = vset.pattern.permute.xlu0 %v6883_v32  ;;  %3073 = vperm.xlu1 %5151, %v6053_v42  }
 0xab1   : > { %3394 = vperm.xlu0 %5166, %v6053_v42  }
 0xab4   : > { %5152 = vset.pattern.permute.xlu1 %v6891_v39 }
 0xab5   : > { %5167 = vset.pattern.permute.xlu0 %v6877_v33  ;;  %3303 = vperm.xlu1 %5152, %v6030_v19  }
 0xab6   : > { %3705 = vperm.xlu0 %5167, %v6053_v42  }
 0xab9   : > { %5154 = vset.pattern.permute.xlu1 %v6889_v37 }
 0xaba   : > { %5170 = vset.pattern.permute.xlu0 %v6895_v23  ;;  %3614 = vperm.xlu1 %5154, %v6030_v19  }
 0xabb   : > { %2815 = vperm.xlu0 %5170, %v6034_v22  }
 0xabe   : > { %5156 = vset.pattern.permute.xlu1 %v6881_v41 }
 0xabf   : > { %5180 = vset.pattern.permute.xlu0 %v6905_v24  ;;  %3329 = vperm.xlu1 %5156, %v6030_v19  }
 0xac0   : > { %2882 = vperm.xlu0 %5180, %v6036_v40  }
 0xac3   : > { %5157 = vset.pattern.permute.xlu1 %v6879_v38 }
 0xac4   : > { %5182 = vset.pattern.permute.xlu0 %v6903_v43  ;;  %3640 = vperm.xlu1 %5157, %v6030_v19  }
 0xac5   : > { %2895 = vperm.xlu0 %5182, %v6036_v40  }
 0xac8   : > { %5160 = vset.pattern.permute.xlu1 %v6891_v39 }
 0xac9   : > { %5185 = vset.pattern.permute.xlu0 %v6889_v37  ;;  %3355 = vperm.xlu1 %5160, %v6053_v42  }
 0xaca   : > { %3718 = vperm.xlu0 %5185, %v6034_v22  }
 0xacd   : > { %5162 = vset.pattern.permute.xlu1 %v6887_v28 }
 0xace   : > { %5187 = vset.pattern.permute.xlu0 %v6885_v31  ;;  %3368 = vperm.xlu1 %5162, %v6053_v42  }
 0xacf   : > { %3731 = vperm.xlu0 %5187, %v6034_v22  }
 0xad2   : > { %5164 = vset.pattern.permute.xlu1 %v6881_v41 }
 0xad3   : > { %5189 = vset.pattern.permute.xlu0 %v6879_v38  ;;  %3381 = vperm.xlu1 %5164, %v6053_v42   ;;  %v2622_v42 = vsub.f32 1.0, %v5985_v0 }
 0xad4   : > { %3744 = vperm.xlu0 %5189, %v6034_v22  }
 0xad7   : > { %5168 = vset.pattern.permute.xlu1 %v6893_v35 }
 0xad8   : > { %5191 = vset.pattern.permute.xlu0 %v6877_v33  ;;  %2801 = vperm.xlu1 %5168, %v6034_v22  }
 0xad9   : > { %3757 = vperm.xlu0 %5191, %v6034_v22  }
 0xadc   : > { %5169 = vset.pattern.permute.xlu1 %v6909_v34 }
 0xadd   : > { %5192 = vset.pattern.permute.xlu0 %v6891_v39  ;;  %3086 = vperm.xlu1 %5169, %v6034_v22  }
 0xade   : > { %3459 = vperm.xlu0 %5192, %v6036_v40  }
 0xae1   : > { %5171 = vset.pattern.permute.xlu1 %v6908_v8 }
 0xae2   : > { %5193 = vset.pattern.permute.xlu0 %v6889_v37  ;;  %3099 = vperm.xlu1 %5171, %v6034_v22  }
 0xae3   : > { %3770 = vperm.xlu0 %5193, %v6036_v40  }
 0xae6   : > { %5172 = vset.pattern.permute.xlu1 %v6905_v24 }
 0xae7   : > { %5194 = vset.pattern.permute.xlu0 %v6887_v28  ;;  %2828 = vperm.xlu1 %5172, %v6034_v22  }
 0xae8   : > { %3472 = vperm.xlu0 %5194, %v6036_v40  }
 0xaeb   : > { %5173 = vset.pattern.permute.xlu1 %v6897_v25 }
 0xaec   : > { %5195 = vset.pattern.permute.xlu0 %v6885_v31  ;;  %3112 = vperm.xlu1 %5173, %v6034_v22  }
 0xaed   : > { %3783 = vperm.xlu0 %5195, %v6036_v40  }
 0xaf0   : > { %5174 = vset.pattern.permute.xlu1 %v6903_v43 }
 0xaf1   : > { %5196 = vset.pattern.permute.xlu0 %v6881_v41  ;;  %2841 = vperm.xlu1 %5174, %v6034_v22  }
 0xaf2   : > { %3485 = vperm.xlu0 %5196, %v6036_v40   ;;  %v6211_v5 = vpop.permute.xlu0 %2982 }
 0xaf3   : > { %v6170_v59 = vpop.permute.xlu1 %2693 }
 0xaf5   : > { %5175 = vset.pattern.permute.xlu1 %v6899_v29 }
 0xaf6   : > { %5197 = vset.pattern.permute.xlu0 %v6879_v38  ;;  %3125 = vperm.xlu1 %5175, %v6034_v22  }
 0xaf7   : > { %3796 = vperm.xlu0 %5197, %v6036_v40  }
 0xaf8   : > { %v6176_v60 = vpop.permute.xlu1 %2707  ;;  %v6217_v7 = vpop.permute.xlu0 %2733 }
 0xafa   : > { %5176 = vset.pattern.permute.xlu1 %v6893_v35 }
 0xafb   : > { %5198 = vset.pattern.permute.xlu0 %v6883_v32  ;;  %2855 = vperm.xlu1 %5176, %v6036_v40  }
 0xafc   : > { %3498 = vperm.xlu0 %5198, %v6036_v40  }
 0xafe   : > { %v6182_v61 = vpop.permute.xlu1 %2995  ;;  %v6224_v13 = vpop.permute.xlu0 %2761 }
 0xaff   : > { %5177 = vset.pattern.permute.xlu1 %v6909_v34 }
 0xb00   : > { %3138 = vperm.xlu1 %5177, %v6036_v40   ;;  %5200 = vset.pattern.permute.xlu0 %v6895_v23 }
 0xb03   : > { %v6187_v62 = vpop.permute.xlu1 %2720 }
 0xb04   : > { %5178 = vset.pattern.permute.xlu1 %v6895_v23  ;;  %v6228_v16 = vpop.permute.xlu0 %2787 }
 0xb05   : > { %2869 = vperm.xlu1 %5178, %v6036_v40  }
 0xb08   : > { %v6191_v63 = vpop.permute.xlu1 %3008 }
 0xb09   : > { %5179 = vset.pattern.permute.xlu1 %v6908_v8  ;;  %v6232_v20 = vpop.permute.xlu0 %3316 }
 0xb0a   : > { %3151 = vperm.xlu1 %5179, %v6036_v40  }
 0xb0d   : > { %v6195_v9 = vpop.permute.xlu1 %3021 }
 0xb0e   : > { %5181 = vset.pattern.permute.xlu1 %v6897_v25  ;;  %v4547_v25 = vsel %vm5993_vm14, 1.0, %v6901_v1 }
 0xb0f   : > { %3164 = vperm.xlu1 %5181, %v6036_v40  }
 0xb12   : > { %v6199_v2 = vpop.permute.xlu1 %2747 }
 0xb13   : > { %5183 = vset.pattern.permute.xlu1 %v6899_v29  ;;  %v4549_v29 = vsel %vm6000_vm7, 1.0, %v6901_v1 }
 0xb14   : > { %3177 = vperm.xlu1 %5183, %v6036_v40  }
 0xb17   : > { %v6203_v3 = vpop.permute.xlu1 %3034 }
 0xb18   : > { %5184 = vset.pattern.permute.xlu1 %v6891_v39 }
 0xb19   : > { %3407 = vperm.xlu1 %5184, %v6034_v22  }
 0xb1c   : > { %v6207_v4 = vpop.permute.xlu1 %3047 }
 0xb1d   : > { %5186 = vset.pattern.permute.xlu1 %v6887_v28 }
 0xb1e   : > { %3420 = vperm.xlu1 %5186, %v6034_v22  }
 0xb21   : > { %v6213_v6 = vpop.permute.xlu1 %2774 }
 0xb22   : > { %5188 = vset.pattern.permute.xlu1 %v6881_v41  ;;  %v6239_v41 = vpop.permute.xlu0 %3627 }
 0xb23   : > { %3433 = vperm.xlu1 %5188, %v6034_v22  }
 0xb26   : > { %v6220_v12 = vpop.permute.xlu1 %3060 }
 0xb27   : > { %5190 = vset.pattern.permute.xlu1 %v6883_v32 }
 0xb28   : > { %3446 = vperm.xlu1 %5190, %v6034_v22   ;;  %v2620_v22 = vsub.f32 1.0, %v5962_v30 }
 0xb2a   : > { %v2625_v38 = vmul.f32 %v5985_v0, %v2620_v22  ;;  %v2623_v31 = vmul.f32 %v2622_v42, %v2620_v22 }
 0xb2b   : > { %v6226_v27 = vpop.permute.xlu1 %3073 }
 0xb2c   : > { %5199 = vset.pattern.permute.xlu1 %v6893_v35 }
 0xb30   : > { %v6230_v17 = vpop.permute.xlu1 %3303 }
 0xb32   : > { %v2574_v15 = vpop.f32.mrf.mxu0 }
 0xb33   : > { %5284 = vrcp.f32 %v2574_v15  ;;  %v2624_v15 = vmul.f32 %v2622_v42, %v5962_v30  ;;  %v4550_v42 = vsel %vm6011_vm13, 1.0, %v6901_v1 }
 0xb34   : > { %v4901_v19 = vpop.f32.mrf.mxu0 }
 0xb35   : > { %v6234_v21 = vpop.permute.xlu1 %3614  ;;  %v2626_v19 = vmul.f32 %v5985_v0, %v5962_v30  ;;  %v4551_v30 = vsel %vm6025_vm9, 1.0, %v6901_v1 }
 0xb3a   : > { %v6241_v32 = vpop.permute.xlu1 %3329 }
 0xb3f   : > { %v6269_v10 = vpop.permute.xlu1 %3640 }
 0xb40   : > { %v5285_v33 = vpop.eup %5284 }
 0xb41   : > { %v2579_v28 = vmul.f32 %v5285_v33, %v6004_v11 }
 0xb43   : > { %v2656_v37 = vmul.f32 %v2623_v31, %v2579_v28  ;;  %v2668_v39 = vmul.f32 %v2624_v15, %v2579_v28  ;;  %v2681_v35 = vmul.f32 %v2625_v38, %v2579_v28  ;;  %v2688_v23 = vmul.f32 %v2626_v19, %v2579_v28  ;;  %v6267_v31 = vpop.permute.xlu0 %3342 }
 0xb44   : > { %v6277_v18 = vpop.permute.xlu1 %3355  ;;  %v6989_v38 = vmov 1  }
 0xb45   : > { %v6259_v0 = vmul.f32 %v4547_v25, %v2656_v37  ;;  %v6261_v11 = vmul.f32 %v4549_v29, %v2668_v39  ;;  %v6263_v28 = vmul.f32 %v4550_v42, %v2681_v35  ;;  %v6265_v26 = vmul.f32 %v4551_v30, %v2688_v23 }
 0xb46   : > { %v6985_v25 = vmov 7   ;;  %v6986_v29 = vmov 6   ;;  %v6990_v39 = vmov 0  }
 0xb47   : > { %2714 = vperm.xlu0 %5200, %v6259_v0   ;;  %2701 = vperm.xlu1 %5199, %v6259_v0   ;;  %v6275_v14 = vpop.permute.xlu0 %3653 }
 0xb49   : > { %v6287_v23 = vpop.permute.xlu1 %3368 }
 0xb4b   : > { %5202 = vset.pattern.permute.xlu0 %v6908_v8  ;;  %5201 = vset.pattern.permute.xlu1 %v6909_v34  ;;  %v6285_v35 = vpop.permute.xlu0 %3666 }
 0xb4c   : > { %3002 = vperm.xlu0 %5202, %v6259_v0   ;;  %2989 = vperm.xlu1 %5201, %v6259_v0   ;;  %6984 = vst [vmem:[#allocation40_spill] sm:$0xff] %v6285_v35  ;;  %v7015_v35 = vmov 4  }
 0xb4e   : > { %v6295_v37 = vpop.permute.xlu1 %3381 }
 0xb4f   : > { %v6293_v33 = vpop.permute.xlu0 %3679  ;;  %6988 = vst [vmem:[#allocation42_spill] sm:$0xff] %v6295_v37 }
 0xb50   : > { %5205 = vset.pattern.permute.xlu0 %v6903_v43  ;;  %5203 = vset.pattern.permute.xlu1 %v6905_v24  ;;  %6987 = vst [vmem:[#allocation41_spill] sm:$0xff] %v6293_v33 }
 0xb51   : > { %2740 = vperm.xlu0 %5205, %v6259_v0   ;;  %2727 = vperm.xlu1 %5203, %v6259_v0  }
 0xb53   : > { %v6301_v22 = vpop.permute.xlu0 %3692  ;;  %v6303_v15 = vpop.permute.xlu1 %2801 }
 0xb54   : > { %6991 = vst [vmem:[#allocation43_spill] sm:$0xff] %v6301_v22  ;;  %v7001_v22 = vmov 12  }
 0xb55   : > { %5206 = vset.pattern.permute.xlu0 %v6985_v25  ;;  %5204 = vset.pattern.permute.xlu1 %v6986_v29 }
 0xb56   : > { %3028 = vperm.xlu0 %5206, %v6259_v0   ;;  %3015 = vperm.xlu1 %5204, %v6259_v0  }
 0xb57   : > { %v6309_v19 = vpop.permute.xlu0 %3394 }
 0xb58   : > { %6992 = vst [vmem:[#allocation44_spill] sm:$0xff] %v6309_v19  ;;  %v6311_v42 = vpop.permute.xlu1 %3086  ;;  %v6996_v19 = vmov 2  }
 0xb5a   : > { %5209 = vset.pattern.permute.xlu0 %v6989_v38  ;;  %5207 = vset.pattern.permute.xlu1 %v6990_v39 }
 0xb5b   : > { %2768 = vperm.xlu0 %5209, %v6261_v11   ;;  %2755 = vperm.xlu1 %5207, %v6261_v11   ;;  %v6319_v30 = vpop.permute.xlu0 %3705 }
 0xb5c   : > { %6993 = vst [vmem:[#allocation45_spill] sm:$0xff] %v6319_v30 }
 0xb5d   : > { %v6321_v1 = vpop.permute.xlu1 %3099 }
 0xb5f   : > { %5210 = vset.pattern.permute.xlu0 %v6908_v8  ;;  %5208 = vset.pattern.permute.xlu1 %v6909_v34 }
 0xb60   : > { %3054 = vperm.xlu0 %5210, %v6261_v11   ;;  %3041 = vperm.xlu1 %5208, %v6261_v11  }
 0xb64   : > { %5213 = vset.pattern.permute.xlu0 %v6903_v43  ;;  %5211 = vset.pattern.permute.xlu1 %v6905_v24  ;;  %v6329_v43 = vpop.permute.xlu0 %2815  ;;  %v6331_v24 = vpop.permute.xlu1 %2828 }
 0xb65   : > { %2794 = vperm.xlu0 %5213, %v6261_v11   ;;  %2781 = vperm.xlu1 %5211, %v6261_v11  }
 0xb68   : > { %v6337_v58 = vpop.permute.xlu0 %2882  ;;  %v6339_v30 = vpop.permute.xlu1 %3112 }
 0xb69   : > { %5214 = vset.pattern.permute.xlu0 %v6985_v25  ;;  %5212 = vset.pattern.permute.xlu1 %v6986_v29  ;;  %6994 = vst [vmem:[#allocation46_spill] sm:$0xff] %v6337_v58 }
 0xb6a   : > { %3080 = vperm.xlu0 %5214, %v6261_v11   ;;  %3067 = vperm.xlu1 %5212, %v6261_v11  }
 0xb6c   : > { %v6345_v54 = vpop.permute.xlu0 %2895 }
 0xb6d   : > { %6997 = vst [vmem:[#allocation47_spill] sm:$0xff] %v6345_v54  ;;  %v7011_v54 = vmov 14  }
 0xb6e   : > { %5217 = vset.pattern.permute.xlu0 %v6989_v38  ;;  %5215 = vset.pattern.permute.xlu1 %v6990_v39 }
 0xb6f   : > { %2822 = vperm.xlu0 %5217, %v6263_v28   ;;  %2809 = vperm.xlu1 %5215, %v6263_v28  }
 0xb70   : > { %v6353_v52 = vpop.permute.xlu0 %3718 }
 0xb71   : > { %6999 = vst [vmem:[#allocation48_spill] sm:$0xff] %v6353_v52  ;;  %v7005_v52 = vmov 11  }
 0xb73   : > { %5218 = vset.pattern.permute.xlu0 %v6908_v8  ;;  %5216 = vset.pattern.permute.xlu1 %v6909_v34  ;;  %v6347_v8 = vpop.permute.xlu1 %2841  ;;  %v6998_v34 = vmov 3  }
 0xb74   : > { %3106 = vperm.xlu0 %5218, %v6263_v28   ;;  %3093 = vperm.xlu1 %5216, %v6263_v28   ;;  %v6363_v55 = vpop.permute.xlu0 %3731 }
 0xb75   : > { %7004 = vst [vmem:[#allocation50_spill] sm:$0xff] %v6363_v55 }
 0xb77   : > { %v6355_v37 = vpop.permute.xlu1 %3125 }
 0xb78   : > { %5221 = vset.pattern.permute.xlu0 %v6995_v56  ;;  %5219 = vset.pattern.permute.xlu1 %v6996_v19  ;;  %7000 = vst [vmem:[#allocation49_spill] sm:$0xff] %v6355_v37  ;;  %v6373_v36 = vpop.permute.xlu0 %3744 }
 0xb79   : > { %3310 = vperm.xlu0 %5221, %v6259_v0   ;;  %2835 = vperm.xlu1 %5219, %v6263_v28   ;;  %7007 = vst [vmem:[#allocation51_spill] sm:$0xff] %v6373_v36 }
 0xb7b   : > { %v6365_v53 = vpop.permute.xlu1 %2855 }
 0xb7c   : > { %v6381_v55 = vpop.permute.xlu0 %3757 }
 0xb7d   : > { %5223 = vset.pattern.permute.xlu0 %v6998_v34  ;;  %5220 = vset.pattern.permute.xlu1 %v6986_v29  ;;  %7009 = vst [vmem:[#allocation53_spill] sm:$0xff] %v6381_v55 }
 0xb7e   : > { %2848 = vperm.xlu0 %5223, %v6263_v28   ;;  %3119 = vperm.xlu1 %5220, %v6263_v28  }
 0xb7f   : > { %v6375_v33 = vpop.permute.xlu1 %3138 }
 0xb80   : > { %7008 = vst [vmem:[#allocation52_spill] sm:$0xff] %v6375_v33  ;;  %v6389_v36 = vpop.permute.xlu0 %3459 }
 0xb81   : > { %7012 = vst [vmem:[#allocation55_spill] sm:$0xff] %v6389_v36 }
 0xb82   : > { %5224 = vset.pattern.permute.xlu0 %v7001_v22  ;;  %5222 = vset.pattern.permute.xlu1 %v7002_v50 }
 0xb83   : > { %3621 = vperm.xlu0 %5224, %v6259_v0   ;;  %3323 = vperm.xlu1 %5222, %v6259_v0   ;;  %v6383_v37 = vpop.permute.xlu1 %2869 }
 0xb84   : > { %7010 = vst [vmem:[#allocation54_spill] sm:$0xff] %v6383_v37  ;;  %v6397_v55 = vpop.permute.xlu0 %3770 }
 0xb85   : > { %7016 = vst [vmem:[#allocation57_spill] sm:$0xff] %v6397_v55  ;;  %v7020_v55 = vmov 5  }
 0xb87   : > { %5226 = vset.pattern.permute.xlu0 %v6985_v25  ;;  %5225 = vset.pattern.permute.xlu1 %v7003_v57  ;;  %v6391_v33 = vpop.permute.xlu1 %3151 }
 0xb88   : > { %3132 = vperm.xlu0 %5226, %v6263_v28   ;;  %3634 = vperm.xlu1 %5225, %v6259_v0   ;;  %7013 = vst [vmem:[#allocation56_spill] sm:$0xff] %v6391_v33 }
 0xb8b   : > { %v6399_v58 = vpop.permute.xlu1 %3164 }
 0xb8c   : > { %5231 = vset.pattern.permute.xlu0 %v7005_v52  ;;  %5227 = vset.pattern.permute.xlu1 %v7006_v51  ;;  %7017 = vst [vmem:[#allocation58_spill] sm:$0xff] %v6399_v58 }
 0xb8d   : > { %3349 = vperm.xlu0 %5231, %v6259_v0   ;;  %3336 = vperm.xlu1 %5227, %v6259_v0  }
 0xb91   : > { %5235 = vset.pattern.permute.xlu0 %v6995_v56  ;;  %5228 = vset.pattern.permute.xlu1 %v6990_v39  ;;  %v7014_v39 = vmov 15  }
 0xb92   : > { %3362 = vperm.xlu0 %5235, %v6261_v11   ;;  %2863 = vperm.xlu1 %5228, %v6265_v26  }
 0xb96   : > { %5239 = vset.pattern.permute.xlu0 %v7002_v50  ;;  %5229 = vset.pattern.permute.xlu1 %v7011_v54 }
 0xb97   : > { %3375 = vperm.xlu0 %5239, %v6261_v11   ;;  %3647 = vperm.xlu1 %5229, %v6259_v0  }
 0xb9b   : > { %5240 = vset.pattern.permute.xlu0 %v7014_v39  ;;  %5230 = vset.pattern.permute.xlu1 %v7015_v35  ;;  %v6408_v35 = vpop.permute.xlu0 %3472 }
 0xb9c   : > { %3809 = vperm.xlu0 %5240, %v6036_v40   ;;  %3145 = vperm.xlu1 %5230, %v6265_v26   ;;  %7018 = vst [vmem:[#allocation59_spill] sm:$0xff] %v6408_v35  ;;  %v6410_v40 = vpop.permute.xlu1 %3177 }
 0xb9d   : > { %7019 = vst [vmem:[#allocation60_spill] sm:$0xff] %v6410_v40 }
 0xba0   : > { %3518 = vrot.lane.b32.xlu0 %v5881_v44, %s6955_s5  ;;  %5232 = vset.pattern.permute.xlu1 %v6989_v38  ;;  %v6417_v38 = vpop.permute.xlu0 %3783  ;;  %v6419_v36 = vpop.permute.xlu1 %3407 }
 0xba1   : > { %2876 = vperm.xlu1 %5232, %v6265_v26   ;;  %7021 = vst [vmem:[#allocation61_spill] sm:$0xff] %v6417_v38  ;;  %7022 = vst [vmem:[#allocation62_spill] sm:$0xff] %v6419_v36 }
 0xba4   : > { %3829 = vrot.lane.b32.xlu0 %v5881_v44, %s6953_s9  ;;  %v6427_v44 = vpop.permute.xlu0 %3485 }
 0xba5   : > { %5233 = vset.pattern.permute.xlu1 %v7014_v39  ;;  %7023 = vst [vmem:[#allocation63_spill] sm:$0xff] %v6427_v44 }
 0xba6   : > { %3660 = vperm.xlu1 %5233, %v6259_v0   ;;  %v6429_v0 = vpop.permute.xlu1 %3420 }
 0xba7   : > { %7024 = vst [vmem:[#allocation64_spill] sm:$0xff] %v6429_v0 }
 0xba8   : > { %3827 = vrot.lane.b32.xlu0 %v5893_v47, %s6953_s9 }
 0xbaa   : > { %5234 = vset.pattern.permute.xlu1 %v7020_v55  ;;  %v6435_v55 = vpop.permute.xlu0 %3796  ;;  %v6437_v38 = vpop.permute.xlu1 %3433 }
 0xbab   : > { %3158 = vperm.xlu1 %5234, %v6265_v26   ;;  %7025 = vst [vmem:[#allocation65_spill] sm:$0xff] %v6435_v55  ;;  %7026 = vst [vmem:[#allocation66_spill] sm:$0xff] %v6437_v38 }
 0xbac   : > { %3825 = vrot.lane.b32.xlu0 %v5889_v46, %s6953_s9 }
 0xbae   : > { %v6443_v44 = vpop.permute.xlu1 %3446 }
 0xbaf   : > { %5236 = vset.pattern.permute.xlu1 %v6996_v19  ;;  %v6441_v19 = vpop.permute.xlu0 %3498  ;;  %7029 = vst [vmem:[#allocation68_spill] sm:$0xff] %v6443_v44  ;;  %v6454_v44 = vld [vmem:[%s7027_s16] sm:$0xff]  ;;  %s7078_s16 = sld [smem:[#allocation27_spill]] }
 0xbb0   : > { %3823 = vrot.lane.b32.xlu0 %v5897_v48, %s6953_s9  ;;  %2889 = vperm.xlu1 %5236, %v6265_v26   ;;  %7028 = vst [vmem:[#allocation67_spill] sm:$0xff] %v6441_v19  ;;  %vm2696_vm11 = vcmp.eq.f32.partialorder %v6170_v59, %v6454_v44  ;;  %vm2710_vm12 = vcmp.eq.f32.partialorder %v6176_v60, %v6454_v44 }
 0xbb1   : > { %vm2723_vm14 = vcmp.eq.f32.partialorder %v6187_v62, %v6454_v44  ;;  %vm2985_vm15 = vcmp.eq.f32.partialorder %v6211_v5, %v6454_v44  ;;  %vm2998_vm5 = vcmp.eq.f32.partialorder %v6182_v61, %v6454_v44  ;;  %vm3011_vm6 = vcmp.eq.f32.partialorder %v6191_v63, %v6454_v44 }
 0xbb2   : > { %vm2736_vm7 = vcmp.eq.f32.partialorder %v6217_v7, %v6454_v44  ;;  %vm2750_vm8 = vcmp.eq.f32.partialorder %v6199_v2, %v6454_v44  ;;  %vm3024_vm13 = vcmp.eq.f32.partialorder %v6195_v9, %v6454_v44  ;;  %vm3037_vm10 = vcmp.eq.f32.partialorder %v6203_v3, %v6454_v44 }
 0xbb3   : > { %vm2764_vm9 = vcmp.eq.f32.partialorder %v6224_v13, %v6454_v44 }
 0xbb4   : > { %3821 = vrot.lane.b32.xlu0 %v5903_v49, %s6953_s9  ;;  %5237 = vset.pattern.permute.xlu1 %v7001_v22 }
 0xbb5   : > { %3673 = vperm.xlu1 %5237, %v6261_v11  }
 0xbb9   : > { %5238 = vset.pattern.permute.xlu1 %v6986_v29 }
 0xbba   : > { %3171 = vperm.xlu1 %5238, %v6265_v26  }
 0xbbe   : > { %3831 = vrot.lane.b32.xlu1 %v5885_v45, %s6953_s9  ;;  %s7071_s9 = sld [smem:[#allocation21_spill]] }
 0xbbf   : > { %5241 = vset.pattern.permute.xlu1 %v6998_v34 }
 0xbc2   : > { %v2715_v35 = vpop.permute.xlu0 %2714  ;;  %3516 = vrot.lane.b32.xlu1 %v5893_v47, %s6955_s5  ;;  %v2702_v55 = vpop.permute.xlu1 %2701  ;;  %v7030_v47 = vmov 0.0  }
 0xbc3   : > { %v4553_v34 = vsel %vm2710_vm12, 1.0, %v7030_v47  ;;  %v4552_v36 = vsel %vm2696_vm11, 1.0, %v7030_v47  ;;  %v4554_v60 = vsel %vm2723_vm14, 1.0, %v7030_v47  ;;  %v4570_v61 = vsel %vm2998_vm5, 1.0, %v7030_v47 }
 0xbc4   : > { %v2717_v59 = vmul.f32 %v4553_v34, %v2715_v35  ;;  %v2704_v40 = vmul.f32 %v4552_v36, %v2702_v55  ;;  %v4571_v63 = vsel %vm3011_vm6, 1.0, %v7030_v47  ;;  %v4556_v7 = vsel %vm2750_vm8, 1.0, %v7030_v47 }
 0xbc5   : > { %vm2777_vm11 = vcmp.eq.f32.partialorder %v6213_v6, %v6454_v44  ;;  %v4573_v9 = vsel %vm3037_vm10, 1.0, %v7030_v47  ;;  %v4557_v3 = vsel %vm2764_vm9, 1.0, %v7030_v47  ;;  %vm3050_vm12 = vcmp.eq.f32.partialorder %v6207_v4, %v6454_v44 }
 0xbc6   : > { %3514 = vrot.lane.b32.xlu1 %v5889_v46, %s6955_s5  ;;  %v2718_v36 = vadd.f32 %v2717_v59, %v2704_v40  ;;  %vm3063_vm14 = vcmp.eq.f32.partialorder %v6220_v12, %v6454_v44  ;;  %vm2804_vm5 = vcmp.eq.f32.partialorder %v6303_v15, %v6454_v44  ;;  %vm2818_vm6 = vcmp.eq.f32.partialorder %v6329_v43, %v6454_v44 }
 0xbc7   : > { %v3003_v29 = vpop.permute.xlu0 %3002  ;;  %v2990_v38 = vpop.permute.xlu1 %2989  ;;  %vm3089_vm8 = vcmp.eq.f32.partialorder %v6311_v42, %v6454_v44  ;;  %vm3115_vm10 = vcmp.eq.f32.partialorder %v6339_v30, %v6454_v44  ;;  %vm3319_vm9 = vcmp.eq.f32.partialorder %v6232_v20, %v6454_v44 }
 0xbc8   : > { %v3005_v5 = vmul.f32 %v4570_v61, %v3003_v29  ;;  %v4572_v29 = vsel %vm3024_vm13, 1.0, %v7030_v47  ;;  %vm3102_vm13 = vcmp.eq.f32.partialorder %v6321_v1, %v6454_v44 }
 0xbca   : > { %2902 = vperm.xlu1 %5241, %v6265_v26  }
 0xbcc   : > { %v2741_v19 = vpop.permute.xlu0 %2740  ;;  %v2728_v0 = vpop.permute.xlu1 %2727 }
 0xbcd   : > { %v2730_v33 = vmul.f32 %v4554_v60, %v2728_v0  ;;  %v4555_v60 = vsel %vm2736_vm7, 1.0, %v7030_v47  ;;  %vm3076_vm7 = vcmp.eq.f32.partialorder %v6226_v27, %v6454_v44 }
 0xbce   : > { %5242 = vset.pattern.permute.xlu1 %v7003_v57  ;;  %v2743_v48 = vmul.f32 %v4555_v60, %v2741_v19  ;;  %v4576_v43 = vsel %vm3076_vm7, 1.0, %v7030_v47  ;;  %vm3643_vm7 = vcmp.eq.f32.partialorder %v6269_v10, %v6454_v44 }
 0xbcf   : > { %3686 = vperm.xlu1 %5242, %v6261_v11   ;;  %v2731_v0 = vadd.f32 %v2730_v33, %v2718_v36 }
 0xbd1   : > { %v3029_v45 = vpop.permute.xlu0 %3028  ;;  %v3016_v46 = vpop.permute.xlu1 %3015  ;;  %v2744_v33 = vadd.f32 %v2743_v48, %v2731_v0 }
 0xbd2   : > { %v3018_v49 = vmul.f32 %v4571_v63, %v3016_v46  ;;  %v3031_v59 = vmul.f32 %v4572_v29, %v3029_v45  ;;  %v4560_v63 = vsel %vm2804_vm5, 1.0, %v7030_v47  ;;  %vm3332_vm5 = vcmp.eq.f32.partialorder %v6241_v32, %v6454_v44 }
 0xbd3   : > { %5243 = vset.pattern.permute.xlu1 %v6985_v25  ;;  %v4569_v25 = vsel %vm2985_vm15, 1.0, %v7030_v47  ;;  %vm2790_vm15 = vcmp.eq.f32.partialorder %v6228_v16, %v6454_v44 }
 0xbd4   : > { %3184 = vperm.xlu1 %5243, %v6265_v26   ;;  %v2992_v35 = vmul.f32 %v4569_v25, %v2990_v38  ;;  %v4558_v25 = vsel %vm2777_vm11, 1.0, %v7030_v47  ;;  %v4559_v12 = vsel %vm2790_vm15, 1.0, %v7030_v47  ;;  %vm3306_vm11 = vcmp.eq.f32.partialorder %v6230_v17, %v6454_v44 }
 0xbd5   : > { %vm3345_vm15 = vcmp.eq.f32.partialorder %v6267_v31, %v6454_v44 }
 0xbd6   : > { %v2769_v58 = vpop.permute.xlu0 %2768  ;;  %v2756_v62 = vpop.permute.xlu1 %2755  ;;  %v3006_v2 = vadd.f32 %v3005_v5, %v2992_v35  ;;  %v4575_v5 = vsel %vm3063_vm14, 1.0, %v7030_v47  ;;  %vm3617_vm14 = vcmp.eq.f32.partialorder %v6234_v21, %v6454_v44  ;;  %v4589_v21 = vsel %vm3345_vm15, 1.0, %v7030_v47 }
 0xbd7   : > { %v2758_v37 = vmul.f32 %v4556_v7, %v2756_v62  ;;  %v2771_v13 = vmul.f32 %v4557_v3, %v2769_v58  ;;  %v4574_v58 = vsel %vm3050_vm12, 1.0, %v7030_v47  ;;  %vm3630_vm12 = vcmp.eq.f32.partialorder %v6239_v41, %v6454_v44 }
 0xbd8   : > { %5244 = vset.pattern.permute.xlu1 %v7006_v51  ;;  %v3019_v40 = vadd.f32 %v3018_v49, %v3006_v2  ;;  %v4603_v20 = vsel %vm3617_vm14, 1.0, %v7030_v47 }
 0xbd9   : > { %3388 = vperm.xlu1 %5244, %v6261_v11   ;;  %v2759_v46 = vadd.f32 %v2758_v37, %v2744_v33 }
 0xbda   : > { %v3032_v48 = vadd.f32 %v3031_v59, %v3019_v40 }
 0xbdb   : > { %v3055_v55 = vpop.permute.xlu0 %3054  ;;  %v3042_v34 = vpop.permute.xlu1 %3041  ;;  %v2772_v49 = vadd.f32 %v2771_v13, %v2759_v46 }
 0xbdc   : > { %v3044_v62 = vmul.f32 %v4573_v9, %v3042_v34  ;;  %v3057_v4 = vmul.f32 %v4574_v58, %v3055_v55 }
 0xbdd   : > { %5245 = vset.pattern.permute.xlu1 %v7011_v54 }
 0xbde   : > { %3699 = vperm.xlu1 %5245, %v6261_v11   ;;  %v3045_v45 = vadd.f32 %v3044_v62, %v3032_v48  ;;  %v4578_v62 = vsel %vm3102_vm13, 1.0, %v7030_v47  ;;  %vm3656_vm13 = vcmp.eq.f32.partialorder %v6275_v14, %v6454_v44 }
 0xbe0   : > { %v2795_v38 = vpop.permute.xlu0 %2794  ;;  %v2782_v19 = vpop.permute.xlu1 %2781  ;;  %v3058_v15 = vadd.f32 %v3057_v4, %v3045_v45  ;;  %v4587_v45 = vsel %vm3319_vm9, 1.0, %v7030_v47  ;;  %vm2844_vm9 = vcmp.eq.f32.partialorder %v6347_v8, %v6454_v44 }
 0xbe1   : > { %v2784_v36 = vmul.f32 %v4558_v25, %v2782_v19  ;;  %v2797_v16 = vmul.f32 %v4559_v12, %v2795_v38  ;;  %v4577_v38 = vsel %vm3089_vm8, 1.0, %v7030_v47  ;;  %v4604_v12 = vsel %vm3630_vm12, 1.0, %v7030_v47 }
 0xbe2   : > { %5246 = vset.pattern.permute.xlu1 %v7005_v52  ;;  %vm3371_vm8 = vcmp.eq.f32.partialorder %v6287_v23, %v6454_v44 }
 0xbe3   : > { %3401 = vperm.xlu1 %5246, %v6261_v11   ;;  %v2785_v61 = vadd.f32 %v2784_v36, %v2772_v49  ;;  %v4579_v36 = vsel %vm3115_vm10, 1.0, %v7030_v47  ;;  %vm2831_vm10 = vcmp.eq.f32.partialorder %v6331_v24, %v6454_v44  ;;  %v4563_v24 = vsel %vm2844_vm9, 1.0, %v7030_v47 }
 0xbe5   : > { %v3081_v6 = vpop.permute.xlu0 %3080  ;;  %v3068_v37 = vpop.permute.xlu1 %3067  ;;  %v2798_v60 = vadd.f32 %v2797_v16, %v2785_v61 }
 0xbe6   : > { %v3070_v35 = vmul.f32 %v4575_v5, %v3068_v37  ;;  %v3083_v27 = vmul.f32 %v4576_v43, %v3081_v6  ;;  %v4586_v6 = vsel %vm3306_vm11, 1.0, %v7030_v47  ;;  %vm2858_vm11 = vcmp.eq.f32.partialorder %v6365_v53, %v6454_v44 }
 0xbe7   : > { %5247 = vset.pattern.permute.xlu1 %v7014_v39 }
 0xbe8   : > { %3712 = vperm.xlu1 %5247, %v6261_v11   ;;  %v3071_v55 = vadd.f32 %v3070_v35, %v3058_v15  ;;  %v4561_v11 = vsel %vm2818_vm6, 1.0, %v7030_v47  ;;  %vm3358_vm6 = vcmp.eq.f32.partialorder %v6277_v18, %v6454_v44 }
 0xbe9   : > { %v4590_v32 = vsel %vm3358_vm6, 1.0, %v7030_v47 }
 0xbea   : > { %v2823_v0 = vpop.permute.xlu0 %2822  ;;  %v2810_v34 = vpop.permute.xlu1 %2809  ;;  %v3084_v46 = vadd.f32 %v3083_v27, %v3071_v55 }
 0xbeb   : > { %v2812_v7 = vmul.f32 %v4560_v63, %v2810_v34  ;;  %v2825_v2 = vmul.f32 %v4561_v11, %v2823_v0  ;;  %v4588_v63 = vsel %vm3332_vm5, 1.0, %v7030_v47 }
 0xbec   : > { %5248 = vset.pattern.permute.xlu1 %v6995_v56 }
 0xbed   : > { %v2813_v33 = vadd.f32 %v2812_v7, %v2798_v60  ;;  %3414 = vperm.xlu1 %5248, %v6263_v28  }
 0xbef   : > { %v3107_v40 = vpop.permute.xlu0 %3106  ;;  %v3094_v19 = vpop.permute.xlu1 %3093  ;;  %v6527_v29 = vadd.f32 %v2825_v2, %v2813_v33  ;;  %v4591_v33 = vsel %vm3371_vm8, 1.0, %v7030_v47 }
 0xbf0   : > { %v3096_v42 = vmul.f32 %v4577_v38, %v3094_v19  ;;  %v3109_v25 = vmul.f32 %v4578_v62, %v3107_v40  ;;  %v4605_v40 = vsel %vm3643_vm7, 1.0, %v7030_v47 }
 0xbf1   : > { %5249 = vset.pattern.permute.xlu1 %v7001_v22 }
 0xbf2   : > { %v3097_v9 = vadd.f32 %v3096_v42, %v3084_v46  ;;  %3725 = vperm.xlu1 %5249, %v6263_v28  }
 0xbf4   : > { %v3311_v59 = vpop.permute.xlu0 %3310  ;;  %v6533_v3 = vpop.permute.xlu1 %2835  ;;  %v3110_v49 = vadd.f32 %v3109_v25, %v3097_v9  ;;  %v4564_v25 = vsel %vm2858_vm11, 1.0, %v7030_v47 }
 0xbf5   : > { %v3313_v61 = vmul.f32 %v4586_v6, %v3311_v59 }
 0xbf6   : > { %5250 = vset.pattern.permute.xlu1 %v7002_v50 }
 0xbf7   : > { %3427 = vperm.xlu1 %5250, %v6263_v28  }
 0xbf9   : > { %v6540_v13 = vpop.permute.xlu0 %2848  ;;  %v3120_v48 = vpop.permute.xlu1 %3119 }
 0xbfa   : > { %v3122_v1 = vmul.f32 %v4579_v36, %v3120_v48  ;;  %v2851_v8 = vmul.f32 %v4563_v24, %v6540_v13 }
 0xbfb   : > { %5251 = vset.pattern.permute.xlu1 %v7003_v57 }
 0xbfc   : > { %v6548_v30 = vadd.f32 %v3122_v1, %v3110_v49  ;;  %3738 = vperm.xlu1 %5251, %v6263_v28   ;;  %v7032_v49 = vld [vmem:[#allocation46_spill] sm:$0xff] }
 0xbfd   : > { %vm2885_vm14 = vcmp.eq.f32.partialorder %v7032_v49, %v6454_v44  ;;  %v7048_v49 = vld [vmem:[#allocation32_spill] sm:$0xff] }
 0xbfe   : > { %v3622_v37 = vpop.permute.xlu0 %3621  ;;  %v3324_v58 = vpop.permute.xlu1 %3323  ;;  %v4566_v6 = vsel %vm2885_vm14, 1.0, %v7030_v47 }
 0xbff   : > { %v3326_v5 = vmul.f32 %v4587_v45, %v3324_v58  ;;  %v3624_v16 = vmul.f32 %v4603_v20, %v3622_v37 }
 0xc00   : > { %5252 = vset.pattern.permute.xlu1 %v7006_v51 }
 0xc01   : > { %v3327_v17 = vadd.f32 %v3326_v5, %v3313_v61  ;;  %3440 = vperm.xlu1 %5252, %v6263_v28  }
 0xc03   : > { %v6560_v4 = vpop.permute.xlu0 %3132  ;;  %v3635_v35 = vpop.permute.xlu1 %3634 }
 0xc04   : > { %v3637_v15 = vmul.f32 %v4604_v12, %v3635_v35 }
 0xc05   : > { %5253 = vset.pattern.permute.xlu1 %v7011_v54 }
 0xc06   : > { %v3638_v41 = vadd.f32 %v3637_v15, %v3624_v16  ;;  %3751 = vperm.xlu1 %5253, %v6263_v28   ;;  %v7035_v15 = vld [vmem:[#allocation29_spill] sm:$0xff] }
 0xc08   : > { %v3350_v0 = vpop.permute.xlu0 %3349  ;;  %v3337_v34 = vpop.permute.xlu1 %3336 }
 0xc09   : > { %v3352_v60 = vmul.f32 %v4589_v21, %v3350_v0  ;;  %v3339_v7 = vmul.f32 %v4588_v63, %v3337_v34  ;;  %v7037_v21 = vld [vmem:[#allocation49_spill] sm:$0xff] }
 0xc0a   : > { %5254 = vset.pattern.permute.xlu1 %v7005_v52  ;;  %vm3128_vm6 = vcmp.eq.f32.partialorder %v7037_v21, %v6454_v44 }
 0xc0b   : > { %v3340_v31 = vadd.f32 %v3339_v7, %v3327_v17  ;;  %3453 = vperm.xlu1 %5254, %v6263_v28  }
 0xc0d   : > { %v3363_v55 = vpop.permute.xlu0 %3362  ;;  %v3353_v11 = vadd.f32 %v3352_v60, %v3340_v31  ;;  %v2864_v43 = vpop.permute.xlu1 %2863  ;;  %v7039_v60 = vld [vmem:[#allocation56_spill] sm:$0xff] }
 0xc0e   : > { %v3365_v2 = vmul.f32 %v4590_v32, %v3363_v55  ;;  %v2866_v53 = vmul.f32 %v4564_v25, %v2864_v43  ;;  %vm3154_vm8 = vcmp.eq.f32.partialorder %v7039_v60, %v6454_v44  ;;  %v7040_v32 = vld [vmem:[#allocation41_spill] sm:$0xff]  ;;  %v7056_v60 = vld [vmem:[#allocation48_spill] sm:$0xff] }
 0xc0f   : > { %5255 = vset.pattern.permute.xlu1 %v7014_v39  ;;  %v7046_v25 = vld [vmem:[#allocation37_spill] sm:$0xff] }
 0xc10   : > { %v3366_v18 = vadd.f32 %v3365_v2, %v3353_v11  ;;  %3764 = vperm.xlu1 %5255, %v6263_v28   ;;  %v7041_v11 = vld [vmem:[#allocation58_spill] sm:$0xff] }
 0xc11   : > { %vm3167_vm9 = vcmp.eq.f32.partialorder %v7041_v11, %v6454_v44 }
 0xc12   : > { %v3376_v27 = vpop.permute.xlu0 %3375  ;;  %v3648_v38 = vpop.permute.xlu1 %3647 }
 0xc13   : > { %v3378_v19 = vmul.f32 %v4591_v33, %v3376_v27  ;;  %v3650_v46 = vmul.f32 %v4605_v40, %v3648_v38  ;;  %v4582_v33 = vsel %vm3154_vm8, 1.0, %v7030_v47 }
 0xc14   : > { %5256 = vset.pattern.permute.xlu1 %v6995_v56  ;;  %v4562_v56 = vsel %vm2831_vm10, 1.0, %v7030_v47  ;;  %vm2907_vm10 = vcmask 654336  }
 0xc15   : > { %v6585_v42 = vadd.f32 %v3378_v19, %v3366_v18  ;;  %v3651_v10 = vadd.f32 %v3650_v46, %v3638_v41  ;;  %3466 = vperm.xlu1 %5256, %v6265_v26   ;;  %v2838_v14 = vmul.f32 %v4562_v56, %v6533_v3  ;;  %v4583_v19 = vsel %vm3167_vm9, 1.0, %v7030_v47  ;;  %v7042_v46 = vld [vmem:[#allocation31_spill] sm:$0xff] }
 0xc17   : > { %v6588_v23 = vpop.permute.xlu1 %3145  ;;  %v2839_v36 = vadd.f32 %v2838_v14, %v6527_v29  ;;  %v7033_v29 = vld [vmem:[#allocation40_spill] sm:$0xff]  ;;  %v6638_v0 = vpop.permute.xlu0 %3809 }
 0xc18   : > { %vm3669_vm15 = vcmp.eq.f32.partialorder %v7033_v29, %v6454_v44 }
 0xc19   : > { %5257 = vset.pattern.permute.xlu1 %v7001_v22  ;;  %v4606_v22 = vsel %vm3656_vm13, 1.0, %v7030_v47  ;;  %v4607_v5 = vsel %vm3669_vm15, 1.0, %v7030_v47  ;;  %vm3682_vm13 = vcmp.eq.f32.partialorder %v7040_v32, %v6454_v44 }
 0xc1a   : > { %3777 = vperm.xlu1 %5257, %v6265_v26  }
 0xc1b   : > { %v3519_v2 = vpop.permute.xlu0 %3518 }
 0xc1c   : > { %v2877_v28 = vpop.permute.xlu1 %2876 }
 0xc1e   : > { %5258 = vset.pattern.permute.xlu1 %v7002_v50  ;;  %v7031_v50 = vld [vmem:[#allocation54_spill] sm:$0xff] }
 0xc1f   : > { %3479 = vperm.xlu1 %5258, %v6265_v26   ;;  %vm2872_vm12 = vcmp.eq.f32.partialorder %v7031_v50, %v6454_v44 }
 0xc20   : > { %v4565_v3 = vsel %vm2872_vm12, 1.0, %v7030_v47 }
 0xc21   : > { %v3661_v9 = vpop.permute.xlu1 %3660  ;;  %v2879_v1 = vmul.f32 %v4565_v3, %v2877_v28 }
 0xc22   : > { %v3663_v59 = vmul.f32 %v4606_v22, %v3661_v9  ;;  %v7044_v22 = vld [vmem:[#allocation33_spill] sm:$0xff]  ;;  %v3830_v9 = vpop.permute.xlu0 %3829 }
 0xc23   : > { %5259 = vset.pattern.permute.xlu1 %v7003_v57  ;;  %v2852_v57 = vadd.f32 %v2851_v8, %v2839_v36 }
 0xc24   : > { %v3664_v62 = vadd.f32 %v3663_v59, %v3651_v10  ;;  %3790 = vperm.xlu1 %5259, %v6265_v26   ;;  %v7045_v59 = vld [vmem:[#allocation35_spill] sm:$0xff] }
 0xc25   : > { %v2867_v13 = vadd.f32 %v2866_v53, %v2852_v57  ;;  %v7047_v53 = vld [vmem:[#allocation39_spill] sm:$0xff] }
 0xc26   : > { %v3159_v48 = vpop.permute.xlu1 %3158  ;;  %v7049_v57 = vld [vmem:[#allocation43_spill] sm:$0xff] }
 0xc27   : > { %v2880_v45 = vadd.f32 %v2879_v1, %v2867_v13  ;;  %v3161_v40 = vmul.f32 %v4582_v33, %v3159_v48  ;;  %v3828_v48 = vpop.permute.xlu0 %3827  ;;  %vm3695_vm12 = vcmp.eq.f32.partialorder %v7049_v57, %v6454_v44  ;;  %v7050_v1 = vld [vmem:[#allocation42_spill] sm:$0xff] }
 0xc28   : > { %5260 = vset.pattern.permute.xlu1 %v7006_v51  ;;  %vm3384_vm14 = vcmp.eq.f32.partialorder %v7050_v1, %v6454_v44  ;;  %v7051_v13 = vld [vmem:[#allocation34_spill] sm:$0xff] }
 0xc29   : > { %3492 = vperm.xlu1 %5260, %v6265_v26   ;;  %v4592_v29 = vsel %vm3384_vm14, 1.0, %v7030_v47 }
 0xc2b   : > { %v2890_v37 = vpop.permute.xlu1 %2889 }
 0xc2c   : > { %v2892_v58 = vmul.f32 %v4566_v6, %v2890_v37  ;;  %v7052_v6 = vld [vmem:[#allocation36_spill] sm:$0xff]  ;;  %v4609_v37 = vsel %vm3695_vm12, 1.0, %v7030_v47 }
 0xc2d   : > { %5261 = vset.pattern.permute.xlu1 %v7011_v54  ;;  %v7034_v54 = vld [vmem:[#allocation28_spill] sm:$0xff] }
 0xc2e   : > { %v2893_v61 = vadd.f32 %v2892_v58, %v2880_v45  ;;  %3803 = vperm.xlu1 %5261, %v6265_v26   ;;  %v3826_v58 = vpop.permute.xlu0 %3825 }
 0xc30   : > { %v3674_v17 = vpop.permute.xlu1 %3673 }
 0xc31   : > { %v3676_v51 = vmul.f32 %v4607_v5, %v3674_v17  ;;  %v7053_v5 = vld [vmem:[#allocation44_spill] sm:$0xff] }
 0xc32   : > { %5262 = vset.pattern.permute.xlu1 %v7005_v52  ;;  %v7036_v52 = vld [vmem:[#allocation47_spill] sm:$0xff]  ;;  %vm3397_vm15 = vcmp.eq.f32.partialorder %v7053_v5, %v6454_v44 }
 0xc33   : > { %v3677_v20 = vadd.f32 %v3676_v51, %v3664_v62  ;;  %3505 = vperm.xlu1 %5262, %v6265_v26   ;;  %vm2898_vm5 = vcmp.eq.f32.partialorder %v7036_v52, %v6454_v44  ;;  %v7054_v51 = vld [vmem:[#allocation38_spill] sm:$0xff]  ;;  %v3824_v52 = vpop.permute.xlu0 %3823 }
 0xc34   : > { %v4567_v63 = vsel %vm2898_vm5, 1.0, %v7030_v47 }
 0xc35   : > { %v3172_v12 = vpop.permute.xlu1 %3171 }
 0xc36   : > { %v3174_v56 = vmul.f32 %v4583_v19, %v3172_v12  ;;  %v4593_v12 = vsel %vm3397_vm15, 1.0, %v7030_v47 }
 0xc37   : > { %5263 = vset.pattern.permute.xlu1 %v7014_v39  ;;  %v4580_v39 = vsel %vm3128_vm6, 1.0, %v7030_v47  ;;  %vm3721_vm6 = vcmp.eq.f32.partialorder %v7056_v60, %v6454_v44 }
 0xc38   : > { %3816 = vperm.xlu1 %5263, %v6265_v26   ;;  %v7038_v26 = vld [vmem:[#allocation52_spill] sm:$0xff]  ;;  %v3135_v7 = vmul.f32 %v4580_v39, %v6560_v4  ;;  %v4608_v4 = vsel %vm3682_vm13, 1.0, %v7030_v47 }
 0xc39   : > { %v6628_v35 = vpop.permute.xlu1 %3831  ;;  %vm3141_vm7 = vcmp.eq.f32.partialorder %v7038_v26, %v6454_v44 }
 0xc3a   : > { %v4581_v55 = vsel %vm3141_vm7, 1.0, %v7030_v47  ;;  %v3136_v27 = vadd.f32 %v3135_v7, %v6548_v30  ;;  %v4611_v7 = vsel %vm3721_vm6, 1.0, %v7030_v47 }
 0xc3b   : > { %v3148_v43 = vmul.f32 %v4581_v55, %v6588_v23  ;;  %v7043_v23 = vld [vmem:[#allocation60_spill] sm:$0xff] }
 0xc3c   : > { %3512 = vrot.lane.b32.xlu1 %v7034_v54, %s6955_s5  ;;  %vm3180_vm11 = vcmp.eq.f32.partialorder %v7043_v23, %v6454_v44 }
 0xc3d   : > { %v3517_v16 = vpop.permute.xlu1 %3516  ;;  %v3149_v28 = vadd.f32 %v3148_v43, %v3136_v27  ;;  %v4584_v24 = vsel %vm3180_vm11, 1.0, %v7030_v47  ;;  %v7057_v43 = vld [vmem:[#allocation50_spill] sm:$0xff] }
 0xc3e   : > { %vm3734_vm7 = vcmp.eq.f32.partialorder %v7057_v43, %v6454_v44 }
 0xc3f   : > { %v3162_v14 = vadd.f32 %v3161_v40, %v3149_v28  ;;  %v7060_v28 = vld [vmem:[#allocation64_spill] sm:$0xff] }
 0xc40   : > { %3510 = vrot.lane.b32.xlu1 %v7035_v15, %s6955_s5  ;;  %vm3423_vm9 = vcmp.eq.f32.partialorder %v7060_v28, %v6454_v44  ;;  %s7072_s5 = smov 8  }
 0xc41   : > { %v3515_v41 = vpop.permute.xlu1 %3514  ;;  %v3175_v8 = vadd.f32 %v3174_v56, %v3162_v14  ;;  %v7062_v14 = vld [vmem:[#allocation53_spill] sm:$0xff] }
 0xc42   : > { %vm3760_vm12 = vcmp.eq.f32.partialorder %v7062_v14, %v6454_v44  ;;  %v3940_v14 = vld [vmem:[%s7071_s9 + $0x8] sm:$0xff] }
 0xc45   : > { %v2903_v34 = vpop.permute.xlu1 %2902 }
 0xc46   : > { %v2905_v31 = vmul.f32 %v4567_v63, %v2903_v34 }
 0xc48   : > { %v2906_v18 = vadd.f32 %v2905_v31, %v2893_v61 }
 0xc4a   : > { %4923 = vmatmul.mubr.msk.f32.vlgmr.msra.gmra.mxu0 %vm2907_vm10, %v2906_v18  ;;  %v3687_v38 = vpop.permute.xlu1 %3686 }
 0xc4b   : > { %4949 = vmatpush3.msra.mxu0 %v7042_v46  ;;  %v3689_v10 = vmul.f32 %v4608_v4, %v3687_v38  ;;  %4968 = vmatprep.mubr.msk.f32.mxu0 %vm5386_vm1, %v7030_v47  ;;  %v7058_v4 = vld [vmem:[#allocation51_spill] sm:$0xff] }
 0xc4c   : > { %4950 = vmatprep.subr.mxu0 %v7030_v47  ;;  %vm3747_vm8 = vcmp.eq.f32.partialorder %v7058_v4, %v6454_v44 }
 0xc4d   : > { %v3690_v30 = vadd.f32 %v3689_v10, %v3677_v20  ;;  %4951 = vmatpush3.msra.mxu0 %v7044_v22  ;;  %v4613_v38 = vsel %vm3747_vm8, 1.0, %v7030_v47  ;;  %v7059_v10 = vld [vmem:[#allocation62_spill] sm:$0xff] }
 0xc4e   : > { %4952 = vmatprep.subr.mxu0 %v7030_v47  ;;  %vm3410_vm13 = vcmp.eq.f32.partialorder %v7059_v10, %v6454_v44  ;;  %v7061_v22 = vld [vmem:[#allocation66_spill] sm:$0xff] }
 0xc4f   : > { %4953 = vmatpush3.msra.mxu0 %v7045_v59  ;;  %v3185_v50 = vpop.permute.xlu1 %3184  ;;  %v4594_v56 = vsel %vm3410_vm13, 1.0, %v7030_v47  ;;  %vm3436_vm11 = vcmp.eq.f32.partialorder %v7061_v22, %v6454_v44  ;;  %v4595_v59 = vsel %vm3423_vm9, 1.0, %v7030_v47  ;;  %vm3812_vm9 = vcmp.eq.f32.partialorder %v6638_v0, %v6454_v44 }
 0xc50   : > { %4954 = vmatprep.subr.mxu0 %v7030_v47  ;;  %v3187_v62 = vmul.f32 %v4584_v24, %v3185_v50  ;;  %v7063_v24 = vld [vmem:[#allocation68_spill] sm:$0xff] }
 0xc51   : > { %4955 = vmatpush3.msra.mxu0 %v7046_v25  ;;  %vm3449_vm14 = vcmp.eq.f32.partialorder %v7063_v24, %v6454_v44 }
 0xc52   : > { %v3188_v36 = vadd.f32 %v3187_v62, %v3175_v8  ;;  %4956 = vmatprep.subr.mxu0 %v7030_v47  ;;  %v4596_v8 = vsel %vm3436_vm11, 1.0, %v7030_v47 }
 0xc53   : > { %4957 = vmatpush3.msra.mxu0 %v7047_v53 }
 0xc54   : > { %4958 = vmatprep.subr.mxu0 %v7030_v47  ;;  %4946 = vmatmul.mubr.msk.f32.vlgmr.msra.gmra.mxu1 %vm2907_vm10, %v3188_v36  ;;  %v3389_v3 = vpop.permute.xlu1 %3388  ;;  %v4614_v36 = vsel %vm3760_vm12, 1.0, %v7030_v47 }
 0xc55   : > { %4959 = vmatpush3.msra.mxu0 %v3519_v2  ;;  %4972 = vmatpush3.msra.mxu1 %v7048_v49  ;;  %v3391_v17 = vmul.f32 %v4592_v29, %v3389_v3  ;;  %v4612_v2 = vsel %vm3734_vm7, 1.0, %v7030_v47  ;;  %v7064_v49 = vld [vmem:[#allocation55_spill] sm:$0xff] }
 0xc56   : > { %4960 = vmatprep.subr.mxu0 %v7030_v47  ;;  %4973 = vmatprep.subr.mxu1 %v7030_v47  ;;  %vm3462_vm15 = vcmp.eq.f32.partialorder %v7064_v49, %v6454_v44 }
 0xc57   : > { %4961 = vmatpush3.msra.mxu0 %v3517_v16  ;;  %4974 = vmatpush3.msra.mxu1 %v7051_v13  ;;  %v3392_v16 = vadd.f32 %v3391_v17, %v6585_v42  ;;  %v3822_v42 = vpop.permute.xlu0 %3821 }
 0xc58   : > { %4962 = vmatprep.subr.mxu0 %v7030_v47  ;;  %4975 = vmatprep.subr.mxu1 %v7030_v47 }
 0xc59   : > { %4963 = vmatpush3.msra.mxu0 %v3515_v41  ;;  %4976 = vmatpush3.msra.mxu1 %v7052_v6  ;;  %v3700_v45 = vpop.permute.xlu1 %3699  ;;  %v7055_v41 = vld [vmem:[#allocation45_spill] sm:$0xff] }
 0xc5a   : > { %4977 = vmatprep.subr.mxu1 %v7030_v47  ;;  %v3702_v61 = vmul.f32 %v4609_v37, %v3700_v45  ;;  %4964 = vmatprep.subr.mxu0 %v7030_v47  ;;  %vm3708_vm5 = vcmp.eq.f32.partialorder %v7055_v41, %v6454_v44  ;;  %v4598_v37 = vsel %vm3462_vm15, 1.0, %v7030_v47 }
 0xc5b   : > { %4978 = vmatpush3.msra.mxu1 %v7054_v51  ;;  %4991 = vmatprep.mubr.msk.f32.mxu1 %vm5386_vm1, %v7030_v47 }
 0xc5c   : > { %v3703_v20 = vadd.f32 %v3702_v61, %v3690_v30  ;;  %4979 = vmatprep.subr.mxu1 %v7030_v47  ;;  %v7065_v61 = vld [vmem:[#allocation57_spill] sm:$0xff] }
 0xc5d   : > { %4980 = vmatpush3.msra.mxu1 %v6628_v35  ;;  %v4610_v35 = vsel %vm3708_vm5, 1.0, %v7030_v47  ;;  %vm3773_vm5 = vcmp.eq.f32.partialorder %v7065_v61, %v6454_v44  ;;  %v4071_v61 = vld [vmem:[%s7076_s4 + $0x30] sm:$0xff] }
 0xc5e   : > { %4981 = vmatprep.subr.mxu1 %v7030_v47  ;;  %v3402_v54 = vpop.permute.xlu1 %3401  ;;  %v4615_v17 = vsel %vm3773_vm5, 1.0, %v7030_v47 }
 0xc5f   : > { %4982 = vmatpush3.msra.mxu1 %v3830_v9  ;;  %v3404_v15 = vmul.f32 %v4593_v12, %v3402_v54  ;;  %v7066_v12 = vld [vmem:[#allocation59_spill] sm:$0xff] }
 0xc60   : > { %4983 = vmatprep.subr.mxu1 %v7030_v47  ;;  %vm3475_vm6 = vcmp.eq.f32.partialorder %v7066_v12, %v6454_v44 }
 0xc61   : > { %v3405_v21 = vadd.f32 %v3404_v15, %v3392_v16  ;;  %4984 = vmatpush3.msra.mxu1 %v3828_v48  ;;  %v4597_v48 = vsel %vm3449_vm14, 1.0, %v7030_v47  ;;  %v4599_v16 = vsel %vm3475_vm6, 1.0, %v7030_v47 }
 0xc62   : > { %4985 = vmatprep.subr.mxu1 %v7030_v47 }
 0xc63   : > { %4986 = vmatpush3.msra.mxu1 %v3826_v58  ;;  %v3713_v26 = vpop.permute.xlu1 %3712 }
 0xc64   : > { %4987 = vmatprep.subr.mxu1 %v7030_v47  ;;  %v3715_v39 = vmul.f32 %v4610_v35, %v3713_v26 }
 0xc65   : > { %4988 = vmatpush3.msra.mxu1 %v3824_v52  ;;  %v7067_v52 = vld [vmem:[#allocation61_spill] sm:$0xff] }
 0xc66   : > { %v3716_v63 = vadd.f32 %v3715_v39, %v3703_v20  ;;  %4989 = vmatprep.subr.mxu1 %v7030_v47  ;;  %vm3786_vm7 = vcmp.eq.f32.partialorder %v7067_v52, %v6454_v44  ;;  %v4066_v52 = vld [vmem:[%s7076_s4 + $0x8] sm:$0xff] }
 0xc67   : > { %4990 = vmatpush3.msra.mxu1 %v3822_v42  ;;  %v4616_v35 = vsel %vm3786_vm7, 1.0, %v7030_v47  ;;  %v7068_v42 = vld [vmem:[#allocation63_spill] sm:$0xff] }
 0xc68   : > { %v3415_v34 = vpop.permute.xlu1 %3414  ;;  %5005 = vmatprep.subr.mxu1 %v7030_v47  ;;  %vm3488_vm8 = vcmp.eq.f32.partialorder %v7068_v42, %v6454_v44 }
 0xc69   : > { %v3417_v9 = vmul.f32 %v4594_v56, %v3415_v34  ;;  %v4600_v34 = vsel %vm3488_vm8, 1.0, %v7030_v47  ;;  %v3941_v56 = vld [vmem:[%s7071_s9 + $0x10] sm:$0xff] }
 0xc6b   : > { %v3418_v62 = vadd.f32 %v3417_v9, %v3405_v21 }
 0xc6d   : > { %v3726_v31 = vpop.permute.xlu1 %3725 }
 0xc6e   : > { %v3728_v32 = vmul.f32 %v4611_v7, %v3726_v31  ;;  %v7069_v31 = vld [vmem:[#allocation65_spill] sm:$0xff] }
 0xc6f   : > { %vm3799_vm13 = vcmp.eq.f32.partialorder %v7069_v31, %v6454_v44 }
 0xc70   : > { %v3729_v55 = vadd.f32 %v3728_v32, %v3716_v63 }
 0xc72   : > { %v3428_v11 = vpop.permute.xlu1 %3427 }
 0xc73   : > { %v3430_v50 = vmul.f32 %v4595_v59, %v3428_v11  ;;  %v3939_v59 = vld [vmem:[%s7071_s9] sm:$0xff] }
 0xc75   : > { %v3431_v57 = vadd.f32 %v3430_v50, %v3418_v62 }
 0xc77   : > { %v3739_v18 = vpop.permute.xlu1 %3738 }
 0xc78   : > { %v3741_v33 = vmul.f32 %v4612_v2, %v3739_v18 }
 0xc7a   : > { %v3742_v27 = vadd.f32 %v3741_v33, %v3729_v55  ;;  %v4617_v55 = vsel %vm3799_vm13, 1.0, %v7030_v47  ;;  %v7070_v33 = vld [vmem:[#allocation67_spill] sm:$0xff] }
 0xc7b   : > { %vm3501_vm11 = vcmp.eq.f32.partialorder %v7070_v33, %v6454_v44 }
 0xc7c   : > { %v3441_v40 = vpop.permute.xlu1 %3440 }
 0xc7d   : > { %v3443_v25 = vmul.f32 %v4596_v8, %v3441_v40 }
 0xc7f   : > { %v3444_v6 = vadd.f32 %v3443_v25, %v3431_v57  ;;  %v4620_v57 = vld [vmem:[%s7073_s2] ss:$0 sm:$0xff]  ;;  %s7080_s2 = sld [smem:[#allocation24_spill]] }
 0xc81   : > { %v3752_v19 = vpop.permute.xlu1 %3751 }
 0xc82   : > { %v3754_v46 = vmul.f32 %v4613_v38, %v3752_v19  ;;  %v4601_v38 = vsel %vm3501_vm11, 1.0, %v7030_v47 }
 0xc84   : > { %v3755_v23 = vadd.f32 %v3754_v46, %v3742_v27  ;;  %v4618_v27 = vsel %vm3812_vm9, 1.0, %v7030_v47 }
 0xc86   : > { %v3454_v30 = vpop.permute.xlu1 %3453 }
 0xc87   : > { %v3456_v1 = vmul.f32 %v4597_v48, %v3454_v30 }
 0xc89   : > { %v3457_v58 = vadd.f32 %v3456_v1, %v3444_v6 }
 0xc8b   : > { %v3765_v53 = vpop.permute.xlu1 %3764 }
 0xc8c   : > { %v3767_v3 = vmul.f32 %v4614_v36, %v3765_v53 }
 0xc8e   : > { %v3768_v13 = vadd.f32 %v3767_v3, %v3755_v23  ;;  %v3942_v23 = vld [vmem:[%s7071_s9 + $0x18] sm:$0xff] }
 0xc90   : > { %v3467_v45 = vpop.permute.xlu1 %3466 }
 0xc91   : > { %v3469_v29 = vmul.f32 %v4598_v37, %v3467_v45  ;;  %v7077_v37 = vld [vmem:[#allocation30_spill] sm:$0xff] }
 0xc93   : > { %v3470_v5 = vadd.f32 %v3469_v29, %v3457_v58  ;;  %v4072_v29 = vld [vmem:[%s7076_s4 + $0x38] sm:$0xff] }
 0xc95   : > { %v3778_v51 = vpop.permute.xlu1 %3777 }
 0xc96   : > { %v3780_v20 = vmul.f32 %v4615_v17, %v3778_v51 }
 0xc98   : > { %v3781_v54 = vadd.f32 %v3780_v20, %v3768_v13 }
 0xc9a   : > { %v3480_v15 = vpop.permute.xlu1 %3479 }
 0xc9b   : > { %v3482_v41 = vmul.f32 %v4599_v16, %v3480_v15  ;;  %v4069_v16 = vld [vmem:[%s7076_s4 + $0x20] sm:$0xff]  ;;  %v4068_v15 = vld [vmem:[%s7076_s4 + $0x18] sm:$0xff] }
 0xc9d   : > { %v3483_v21 = vadd.f32 %v3482_v41, %v3470_v5  ;;  %v4067_v41 = vld [vmem:[%s7076_s4 + $0x10] sm:$0xff] }
 0xc9f   : > { %v3791_v26 = vpop.permute.xlu1 %3790 }
 0xca0   : > { %v3793_v39 = vmul.f32 %v4616_v35, %v3791_v26  ;;  %v4181_v35 = vld [vmem:[%s7078_s16 + $0x18] sm:$0xff]  ;;  %v4180_v26 = vld [vmem:[%s7078_s16 + $0x10] sm:$0xff] }
 0xca2   : > { %v3794_v63 = vadd.f32 %v3793_v39, %v3781_v54  ;;  %v4070_v54 = vld [vmem:[%s7076_s4 + $0x28] sm:$0xff] }
 0xca3   : > { %v4179_v39 = vld [vmem:[%s7078_s16 + $0x8] sm:$0xff] }
 0xca4   : > { %v3493_v60 = vpop.permute.xlu1 %3492 }
 0xca5   : > { %v3495_v7 = vmul.f32 %v4600_v34, %v3493_v60 }
 0xca7   : > { %v3496_v32 = vadd.f32 %v3495_v7, %v3483_v21  ;;  %v4065_v21 = vld [vmem:[%s7076_s4] sm:$0xff] }
 0xca9   : > { %v3804_v11 = vpop.permute.xlu1 %3803 }
 0xcaa   : > { %v3806_v43 = vmul.f32 %v4617_v55, %v3804_v11 }
 0xcac   : > { %v3807_v2 = vadd.f32 %v3806_v43, %v3794_v63  ;;  %v4178_v43 = vld [vmem:[%s7078_s16] sm:$0xff]  ;;  %s5296_s16 = scalar_lea.vmem %s5295_s14, 256 }
 0xcae   : > { %v3506_v18 = vpop.permute.xlu1 %3505 }
 0xcaf   : > { %v3508_v46 = vmul.f32 %v4601_v38, %v3506_v18 }
 0xcb1   : > { %v3509_v44 = vadd.f32 %v3508_v46, %v3496_v32  ;;  %v4627_v32 = vld [vmem:[%s7080_s2] ss:$0 sm:$0xff]  ;;  %s4647_s2 = sshll.u32 %s5610_s0, 7 }
 0xcb2   : > { %s4318_s6 = scalar_lea.hbm %s5587_s8, %s4647_s2 }
 0xcb3   : > { %v3817_v40 = vpop.permute.xlu1 %3816 }
 0xcb4   : > { %v3819_v4 = vmul.f32 %v4618_v27, %v3817_v40  ;;  %v4638_v40 = vld [vmem:[%s5572_s27] ss:$0 sm:$0xff] }
 0xcb6   : > { %v3820_v19 = vadd.f32 %v3819_v4, %v3807_v2 }
 0xcb7   : > { %v3513_v10 = vpop.permute.xlu1 %3512 }
 0xcb8   : > { %4965 = vmatpush3.msra.mxu0 %v3513_v10  ;;  %4992 = vmatmul.mubr.msk.f32.vlgmr.msra.gmra.mxu1 %vm2907_vm10, %v3820_v19 }
 0xcb9   : > { %4966 = vmatprep.subr.mxu0 %v7030_v47  ;;  %5021 = vmatprep.mubr.msk.f32.mxu1 %vm5386_vm1, %v7030_v47 }
 0xcba   : > { %5006 = vmatpush3.xpose.msk.msra.mxu1 %vm1119_vm0, %v4072_v29 }
 0xcbb   : > { %v3511_v0 = vpop.permute.xlu1 %3510  ;;  %5007 = vmatprep.subr.mxu1 %v7030_v47 }
 0xcbc   : > { %4967 = vmatpush3.msra.mxu0 %v3511_v0 }
 0xcbd   : > { %4969 = vmatmul.mubr.msk.f32.vlgmr.msra.gmra.mxu0 %vm2907_vm10, %v3509_v44  ;;  %4994 = vmatprep.subr.mxu0 %v7030_v47 }
 0xcbe   : > { %5002 = vmatprep.mubr.msk.f32.mxu0 %vm5386_vm1, %v7030_v47  ;;  %4995 = vmatpush3.xpose.msk.msra.mxu0 %vm1119_vm0, %v3942_v23 }
 0xcbf   : > { %4996 = vmatprep.subr.mxu0 %v7030_v47  ;;  %5008 = vmatpush3.xpose.msk.msra.mxu1 %vm1119_vm0, %v4071_v61 }
 0xcc0   : > { %5009 = vmatprep.subr.mxu1 %v7030_v47 }
 0xcc2   : > { %4997 = vmatpush3.xpose.msk.msra.mxu0 %vm1119_vm0, %v3941_v56 }
 0xcc3   : > { %4998 = vmatprep.subr.mxu0 %v7030_v47  ;;  %5010 = vmatpush3.xpose.msk.msra.mxu1 %vm1119_vm0, %v4070_v54 }
 0xcc4   : > { %5011 = vmatprep.subr.mxu1 %v7030_v47 }
 0xcc6   : > { %4999 = vmatpush3.xpose.msk.msra.mxu0 %vm1119_vm0, %v3940_v14 }
 0xcc7   : > { %5000 = vmatprep.subr.mxu0 %v7030_v47  ;;  %5012 = vmatpush3.xpose.msk.msra.mxu1 %vm1119_vm0, %v4069_v16 }
 0xcc8   : > { %5013 = vmatprep.subr.mxu1 %v7030_v47 }
 0xcca   : > { %5001 = vmatpush3.xpose.msk.msra.mxu0 %vm1119_vm0, %v3939_v59  ;;  %v4644_v59 = vld [vmem:[%s5577_s20] ss:$0 sm:$0xff] }
 0xccb   : > { %5024 = vmatprep.subr.mxu0 %v7030_v47  ;;  %5014 = vmatpush3.xpose.msk.msra.mxu1 %vm1119_vm0, %v4068_v15 }
 0xccc   : > { %5015 = vmatprep.subr.mxu1 %v7030_v47 }
 0xccf   : > { %5016 = vmatpush3.xpose.msk.msra.mxu1 %vm1119_vm0, %v4067_v41 }
 0xcd0   : > { %5017 = vmatprep.subr.mxu1 %v7030_v47 }
 0xcd3   : > { %5018 = vmatpush3.xpose.msk.msra.mxu1 %vm1119_vm0, %v4066_v52 }
 0xcd4   : > { %5019 = vmatprep.subr.mxu1 %v7030_v47 }
 0xcd7   : > { %5020 = vmatpush3.xpose.msk.msra.mxu1 %vm1119_vm0, %v4065_v21 }
 0xd0a   : > { %v2977_v28 = vpop.f32.mrf.mxu0 }
 0xd0c   : > { %v4924_v30 = vpop.f32.mrf.mxu0 }
 0xd14   : > { %v3298_v22 = vpop.f32.mrf.mxu1 }
 0xd15   : > { %3925 = vrot.lane.b32.xlu1 %v3298_v22, %s7072_s5  ;;  %s7079_s5 = sld [smem:[#allocation23_spill]] }
 0xd16   : > { %v4947_v9 = vpop.f32.mrf.mxu1 }
 0xd1b   : > { %v4626_v7 = vld [vmem:[%s7079_s5] ss:$0 sm:$0xff] }
 0xd78   : > { %v3920_v24 = vpop.f32.mrf.mxu1 }
 0xd79   : > { %3933 = vrot.lane.b32.xlu1 %v3920_v24, %s7074_s23  ;;  %s7081_s23 = sld [smem:[#allocation26_spill]] }
 0xd7a   : > { %v4993_v50 = vpop.f32.mrf.mxu1 }
 0xd7b   : > { %v4645_v50 = vld [vmem:[%s5582_s3] ss:$0 sm:$0xff] }
 0xd7d   : > { %v3609_v8 = vpop.f32.mrf.mxu0 }
 0xd7e   : > { %3929 = vrot.lane.b32.xlu0 %v3609_v8, %s7075_s22  ;;  %s1072_s22 = sand.u32 1, %s5342_s10  }
 0xd7f   : > { %v4970_v62 = vpop.f32.mrf.mxu0  ;;  %v4628_v2 = vld [vmem:[%s7081_s23] ss:$0 sm:$0xff]  ;;  %s4476_s5 = sshll.u32 %s1072_s22, 3  ;;  %s4307_s9 = scalar_lea.sflag [#allocation3], %s1072_s22 }
 0xd80   : > { %s1074_s23 = scalar_lea.vmem [#allocation2], %s4476_s5 }
 0xd81   : > { %s4320_s4 = sshll.u32 %s1074_s23, 4  ;;  %s4321_s4 = int_to_ptr.vmem [resolvable:$true] %s4320_s4 }
 0xd82   : > { %s5290_s12 = scalar_lea.vmem %s4321_s4, 128  ;;  %p5297_p0 = scmp.lt.s32.totalorder %s4321_s4, %s5295_s14 }
 0xd83   : > { %p5291_p11 = scmp.ne.s32.totalorder %s4321_s4, %s5290_s12  ;;  %p5298_p1 = scmp.lt.s32.totalorder %s5296_s16, %s5290_s12 }
 0xd85   : > { %p5292_p12 = pnand %p5291_p11, %p5627_p5  ;;  %p5299_p2 = por %p5298_p1, %p5297_p0 }
 0xd87   : > { %v3926_v25 = vpop.permute.xlu1 %3925  ;;  %p5293_p13 = pneg %p5292_p12 }
 0xd88   : > { %v3936_v36 = vsel %vm1317_vm2, %v2977_v28, %v3926_v25 }
 0xd89   : > { %p5300_p3 = pnand %p5299_p2, %p5293_p13 }
 0xdeb   : > { %v3934_v48 = vpop.permute.xlu1 %3933 }
 0xdf0   : > { %v3930_v53 = vpop.permute.xlu0 %3929 }
 0xdf1   : > { %v3937_v3 = vsel %vm1986_vm3, %v3936_v36, %v3930_v53 }
 0xdf2   : > { %v3938_v49 = vsel %vm1988_vm4, %v3937_v3, %v3934_v48 }
 0xdf3   : > { %5003 = vmatmul.mubr.msk.f32.vlgmr.msra.gmra.mxu0 %vm1119_vm0, %v3938_v49 }
 0xdf4   : > { %5032 = vmatprep.mubr.msk.f32.mxu0 %vm5386_vm1, %v7030_v47  ;;  %vm4189_vm1 = vcmask 523264  }
 0xdf5   : > { %5025 = vmatpush3.xpose.msk.msra.mxu0 %vm4189_vm1, %v4181_v35 }
 0xdf6   : > { %5026 = vmatprep.subr.mxu0 %v7030_v47 }
 0xdf9   : > { %5027 = vmatpush3.xpose.msk.msra.mxu0 %vm4189_vm1, %v4180_v26 }
 0xdfa   : > { %5028 = vmatprep.subr.mxu0 %v7030_v47 }
 0xdfd   : > { %5029 = vmatpush3.xpose.msk.msra.mxu0 %vm4189_vm1, %v4179_v39 }
 0xdfe   : > { %5030 = vmatprep.subr.mxu0 %v7030_v47 }
 0xe01   : > { %5031 = vmatpush3.xpose.msk.msra.mxu0 %vm4189_vm1, %v4178_v43 }
 0xeb3   : > { %v4031_v1 = vpop.f32.mrf.mxu0 }
 0xeb4   : > { %v4032_v13 = vadd.f32 %v4620_v57, %v4031_v1 }
 0xeb5   : > { %v5004_v6 = vpop.f32.mrf.mxu0 }
 0xeb6   : > { %v4035_v45 = vadd.f32 %v4032_v13, %v7077_v37 }
 0xeb8   : > { %v4038_v58 = vsel %vm1119_vm0, %v4035_v45, 0.0 }
 0xeb9   : > { %4039 = vadd.xlane.f32.xlu0 %v4038_v58 }
 0xf42   : > { %v4040_v5 = vpop.xlane.xlu0 %4039 }
 0xf43   : > { %v4041_v17 = vmul.f32 0.03125, %v4040_v5 }
 0xf45   : > { %v4042_v51 = vsub.f32 %v4035_v45, %v4041_v17 }
 0xf47   : > { %v4043_v20 = vmul.f32 %v4042_v51, %v4042_v51 }
 0xf49   : > { %v4044_v12 = vsel %vm1119_vm0, %v4043_v20, 0.0 }
 0xf4a   : > { %4045 = vadd.xlane.f32.xlu1 %v4044_v12 }
 0xfd3   : > { %v4046_v42 = vpop.xlane.xlu1 %4045 }
 0xfd4   : > { %v4047_v63 = vmul.f32 0.03125, %v4046_v42 }
 0xfd6   : > { %v4048_v34 = vadd.f32 1e-05, %v4047_v63 }
 0xfd8   : > { %5286 = vrsqrt.f32 %v4048_v34 }
 0xfe5   : > { %v5287_v60 = vpop.eup %5286 }
 0xfe6   : > { %v4050_v31 = vmul.f32 %v5287_v60, %v4042_v51 }
 0xfe8   : > { %v4057_v55 = vmul.f32 %v4626_v7, %v4050_v31 }
 0xfea   : > { %v4064_v11 = vadd.f32 %v4627_v32, %v4057_v55 }
 0xfec   : > { %5022 = vmatmul.mubr.msk.f32.vlgmr.msra.gmra.mxu1 %vm1119_vm0, %v4064_v11 }
0x10ac   : > { %v4173_v18 = vpop.f32.mrf.mxu1 }
0x10ad   : > { %v4174_v33 = vadd.f32 %v4628_v2, %v4173_v18 }
0x10ae   : > { %v5023_v47 = vpop.f32.mrf.mxu1 }
0x10af   : > { %v4177_v27 = vmax.f32 %v4174_v33, 0.0 }
0x10b1   : > { %5033 = vmatmul.mubr.msk.f32.vlgmr.msra.gmra.mxu0 %vm4189_vm1, %v4177_v27 }
0x1171   : > { %v4271_v4 = vpop.f32.mrf.mxu0 }
0x1172   : > { %v4272_v38 = vadd.f32 %v4638_v40, %v4271_v4 }
0x1173   : > { %v5034_v19 = vpop.f32.mrf.mxu0 }
0x1174   : > { %v4275_v46 = vadd.f32 %v4272_v38, %v4064_v11 }
0x1176   : > { %v4278_v10 = vsel %vm1119_vm0, %v4275_v46, 0.0 }
0x1177   : > { %4279 = vadd.xlane.f32.xlu0 %v4278_v10 }
0x1200   : > { %v4280_v44 = vpop.xlane.xlu0 %4279 }
0x1201   : > { %v4281_v0 = vmul.f32 0.03125, %v4280_v44 }
0x1203   : > { %v4282_v23 = vsub.f32 %v4275_v46, %v4281_v0 }
0x1205   : > { %v4283_v28 = vmul.f32 %v4282_v23, %v4282_v23 }
0x1207   : > { %v4284_v56 = vsel %vm1119_vm0, %v4283_v28, 0.0 }
0x1208   : > { %4285 = vadd.xlane.f32.xlu0 %v4284_v56 }
0x1291   : > { %v4286_v30 = vpop.xlane.xlu0 %4285 }
0x1292   : > { %v4287_v22 = vmul.f32 0.03125, %v4286_v30 }
0x1294   : > { %v4288_v9 = vadd.f32 1e-05, %v4287_v22 }
0x1296   : > { %5288 = vrsqrt.f32 %v4288_v9 }
0x12a3   : > { %v5289_v14 = vpop.eup %5288 }
0x12a4   : > { %v4290_v24 = vmul.f32 %v5289_v14, %v4282_v23 }
0x12a6   : > { %v4297_v8 = vmul.f32 %v4644_v59, %v4290_v24 }
0x12a8   : > { %v4304_v62 = vadd.f32 %v4645_v50, %v4297_v8 }
0x12aa   : > { %4305 = vst.msk [vmem:[%s1074_s23] sm:$0xff] %vm1119_vm0, %v4304_v62 }
0x12ab   : > { %5303 = shalt.err (!%p5300_p3)
}
0x12ac   : > { %s5304_s0 = scalar_lea.hbm %s4318_s6, 128  ;;  %s5308_s22 = scalar_lea.hbm %s5587_s8, 256 }
0x12ad   : > { %p5305_p4 = scmp.ne.s32.totalorder %s4318_s6, %s5304_s0  ;;  %p5309_p9 = scmp.lt.s32.totalorder %s4318_s6, %s5587_s8 }
0x12ae   : > { %p5310_p10 = scmp.lt.s32.totalorder %s5308_s22, %s5304_s0 }
0x12af   : > { %p5306_p7 = pnand %p5305_p4, %p5627_p5 }
0x12b0   : > { %p5311_p11 = por %p5310_p10, %p5309_p9 }
0x12b1   : > { %p5307_p8 = pneg %p5306_p7 }
0x12b3   : > { %p5312_p12 = pnand %p5311_p11, %p5307_p8 }
0x12b5   : > { %5315 = shalt.err (!%p5312_p12)
}
0x12b6   : > { %5036 = dma.vmem_to_hbm [thread:$0]  (%p5627_p5), %s4321_s4, 128, %s4318_s6, %s4307_s9  }
0x12b7 PF: > { %p5042_p13 = scmp.ge.s32.totalorder %s5350_s15, 2  ;;  %s4332_s13 = sand.u32 1, %s5338_s7  }
0x12b8   : > { %s4333_s14 = scalar_lea.sflag [#allocation3], %s4332_s13 }
0x12b9   : > { %p5039_p0 = pnand %p5042_p13, %p5631_p6 }
0x12bb   : > { %p5040_p1 = pneg %p5039_p0 }
0x12bd   : > { %5333 = dma.done.wait (%p5040_p1), %s4333_s14, 128  }
0x12be   : > { %5335 = vsyncadd (%p5040_p1), %s4333_s14, 4294967168  ;;  %p77_p2 = scmp.ge.s32.totalorder %s5614_s18, 4   ;;  %s7082_s7 = smov %s5342_s10 }
0x12bf   : > { %s7083_s10 = smov %s5346_s11  ;;  %s7084_s11 = smov %s5625_s26 }
0x12c0   : > { %s7085_s15 = smov %s5614_s18  ;;  %79 = sbr.rel (!%p77_p2) target bundleno = 63 (0x3f), region = 235 }
0x12c5   :  { %4338 = vsyncpa [#allocation3], 1 }
0x12c6   :  { %4340 = vsyncpa [#allocation3 + $0x1], 1 }

</bundles_post_ra>
